<compile_context>
chip_gen: v5e
topology: v5e:2x2
jax: 0.10.0
libtpu: 0.0.40
codegen_flags: <defaults>
</compile_context>

<pallas_src>
import jax
import jax.numpy as jnp
from jax import lax
from jax.experimental import pallas as pl
from jax.experimental.pallas import tpu as pltpu

EPS = 1e-5
LANES = 128  # TPU lane width: channel dims are zero-padded to a multiple of this.


def _round_up(v, m):
    return ((v + m - 1) // m) * m


def _compiler_params():
    return pltpu.CompilerParams(
        dimension_semantics=("parallel",),   # image-tile axis: independent per grid step
        vmem_limit_bytes=32 * 1024 * 1024,   # explicit scoped-VMEM budget (tiles are small)
    )


# ---------------------------------------------------------------------------
# Pallas kernels
# ---------------------------------------------------------------------------
def _conv3x3_stats_kernel(xp_ref, w_ref, h_ref, stats_ref):
    """3x3 conv (stride 1) on a spatially pre-padded tile + per-tile BN partial stats.

    xp_ref:    (TN, H+2, W+2, Ci)  bf16   spatially padded input tile
    w_ref:     (9, Ci, Co)         bf16   resident weights, tap-major [ky*3+kx]
    h_ref:     (TN, H, W, Co)      bf16   raw conv output (pre-BN)
    stats_ref: (1, 2, Co)          f32    [sum, sum-of-squares] over this tile's rows
    """
    tn, _, _, ci = xp_ref.shape
    _, h, w, co = h_ref.shape
    xp = xp_ref[...]
    acc = jnp.zeros((tn * h * w, co), jnp.float32)
    for t in range(9):
        ky, kx = divmod(t, 3)
        win = xp[:, ky:ky + h, kx:kx + w, :].reshape(tn * h * w, ci)
        acc = acc + jnp.dot(win, w_ref[t], preferred_element_type=jnp.float32)
    h_ref[...] = acc.reshape(tn, h, w, co).astype(h_ref.dtype)
    stats_ref[:, 0:1, :] = jnp.sum(acc, axis=0, keepdims=True).reshape(1, 1, co)
    stats_ref[:, 1:2, :] = jnp.sum(acc * acc, axis=0, keepdims=True).reshape(1, 1, co)


def _bn_relu_conv1x1_kernel(h1_ref, sc_ref, sh_ref, w2_ref, h2p_ref, stats_ref):
    """Folded BN1 + ReLU + 1x1 conv; writes a spatially padded output tile + BN2 stats.

    h1_ref:    (TN, H, W, C1)      bf16
    sc_ref:    (1, C1)             f32   gamma1 * rsqrt(var1 + eps)
    sh_ref:    (1, C1)             f32   beta1 - mean1 * scale1
    w2_ref:    (C1, C2)            bf16
    h2p_ref:   (TN, H+2, W+2, C2)  bf16  conv2 output with zero spatial halo
    stats_ref: (1, 2, C2)          f32
    """
    tn, h, w, c1 = h1_ref.shape
    c2 = w2_ref.shape[1]
    h1 = h1_ref[...].reshape(tn * h * w, c1).astype(jnp.float32)
    a1 = jnp.maximum(h1 * sc_ref[...] + sh_ref[...], 0.0)
    h2 = jnp.dot(a1.astype(jnp.bfloat16), w2_ref[...],
                 preferred_element_type=jnp.float32)
    stats_ref[:, 0:1, :] = jnp.sum(h2, axis=0, keepdims=True).reshape(1, 1, c2)
    stats_ref[:, 1:2, :] = jnp.sum(h2 * h2, axis=0, keepdims=True).reshape(1, 1, c2)
    # Write the conv2 result with a zero spatial halo so the next kernel's 3x3 conv
    # needs no extra HBM pad pass.
    h2p_ref[...] = jnp.zeros_like(h2p_ref)
    h2p_ref[:, 1:1 + h, 1:1 + w, :] = h2.reshape(tn, h, w, c2).astype(h2p_ref.dtype)


def _bn_relu_conv3x3_kernel(h2p_ref, sc_ref, sh_ref, w_ref, h3_ref, stats_ref):
    """Folded BN2 + ReLU, then 3x3 conv via 9 shifted matmuls; emits BN3 stats.

    h2p_ref:   (TN, H+2, W+2, C1)  bf16  (zero spatial halo from the previous kernel)
    sc_ref, sh_ref: (1, C1)        f32
    w_ref:     (9, C1, Co)         bf16
    h3_ref:    (TN, H, W, Co)      bf16
    stats_ref: (1, 2, Co)          f32
    """
    tn, hp, wp, c1 = h2p_ref.shape
    _, h, w, co = h3_ref.shape
    x = h2p_ref[...].astype(jnp.float32)
    sc = sc_ref[...].reshape(1, 1, 1, c1)
    sh = sh_ref[...].reshape(1, 1, 1, c1)
    a2 = jnp.maximum(x * sc + sh, 0.0)
    # Re-zero the halo: BN shift + ReLU of the zero padding is generally non-zero.
    row = lax.broadcasted_iota(jnp.int32, (1, hp, wp, c1), 1)
    col = lax.broadcasted_iota(jnp.int32, (1, hp, wp, c1), 2)
    interior = (row >= 1) & (row <= h) & (col >= 1) & (col <= w)
    a2 = jnp.where(interior, a2, 0.0).astype(jnp.bfloat16)
    acc = jnp.zeros((tn * h * w, co), jnp.float32)
    for t in range(9):
        ky, kx = divmod(t, 3)
        win = a2[:, ky:ky + h, kx:kx + w, :].reshape(tn * h * w, c1)
        acc = acc + jnp.dot(win, w_ref[t], preferred_element_type=jnp.float32)
    h3_ref[...] = acc.reshape(tn, h, w, co).astype(h3_ref.dtype)
    stats_ref[:, 0:1, :] = jnp.sum(acc, axis=0, keepdims=True).reshape(1, 1, co)
    stats_ref[:, 1:2, :] = jnp.sum(acc * acc, axis=0, keepdims=True).reshape(1, 1, co)


def _bn_residual_relu_kernel(h3_ref, sc_ref, sh_ref, xp_ref, out_ref):
    """Folded BN3 + residual add + ReLU epilogue.

    h3_ref:  (TN, H, W, Co)      bf16
    xp_ref:  (TN, H+2, W+2, Co)  bf16  (spatially padded input; interior = residual)
    out_ref: (TN, H, W, Co)      f32
    """
    _, h, w, co = h3_ref.shape
    h3 = h3_ref[...].astype(jnp.float32)
    res = xp_ref[:, 1:1 + h, 1:1 + w, :].astype(jnp.float32)
    sc = sc_ref[...].reshape(1, 1, 1, co)
    sh = sh_ref[...].reshape(1, 1, 1, co)
    out_ref[...] = jnp.maximum(h3 * sc + sh + res, 0.0).astype(out_ref.dtype)


# ---------------------------------------------------------------------------
# JAX glue: layout prep, BN stat folding, pallas_call wiring
# ---------------------------------------------------------------------------
def _fold_bn(stats, gamma_p, beta_p, n_rows):
    """Fold per-block [sum, sumsq] into per-channel scale/shift (training-mode BN)."""
    s = jnp.sum(stats[:, 0, :], axis=0)
    sq = jnp.sum(stats[:, 1, :], axis=0)
    mean = s / n_rows
    # One-pass variance (f32 accumulation); fine at these magnitudes. For very large
    # activations a shifted formulation would avoid cancellation.
    var = jnp.maximum(sq / n_rows - mean * mean, 0.0)
    scale = gamma_p * lax.rsqrt(var + EPS)
    shift = beta_p - mean * scale
    return (scale.reshape(1, -1).astype(jnp.float32),
            shift.reshape(1, -1).astype(jnp.float32))


def _pad_axis(a, axis, new_size):
    pad = [(0, 0)] * a.ndim
    pad[axis] = (0, new_size - a.shape[axis])
    return jnp.pad(a, pad)


def basic_block_forward(x_nchw, params, *, tile_n=1):
    """Pallas implementation of BasicBlock.forward (stride=1, downsample=None)."""
    # TODO(synk): downsample branch not implemented (it is None for this configuration).
    w1, g1, b1, w2, g2, b2, w3, g3, b3 = params
    n, cin, h, w = x_nchw.shape
    c1 = w1.shape[-1]
    cout = w3.shape[-1]
    assert cin == cout, "identity residual requires inplanes == planes"
    assert n % tile_n == 0
    grid_n = n // tile_n
    m_rows = n * h * w

    cin_p = _round_up(cin, LANES)
    c1_p = _round_up(c1, LANES)
    cout_p = _round_up(cout, LANES)

    # Layout prep (one fused XLA pass per array): NCHW -> NHWC, channel pad to lane
    # width, spatial halo pad for the in-kernel 3x3 taps, bf16 for MXU / HBM savings.
    x_nhwc = jnp.transpose(x_nchw, (0, 2, 3, 1)).astype(jnp.float32)
    xp = jnp.pad(x_nhwc, ((0, 0), (1, 1), (1, 1), (0, cin_p - cin))).astype(jnp.bfloat16)

    w1_k = _pad_axis(_pad_axis(w1, 2, cin_p), 3, c1_p).reshape(9, cin_p, c1_p).astype(jnp.bfloat16)
    w2_k = _pad_axis(_pad_axis(w2, 0, c1_p), 1, c1_p).astype(jnp.bfloat16)
    w3_k = _pad_axis(_pad_axis(w3, 2, c1_p), 3, cout_p).reshape(9, c1_p, cout_p).astype(jnp.bfloat16)
    g1_p = jnp.pad(g1, (0, c1_p - c1), constant_values=1.0)
    b1_p = jnp.pad(b1, (0, c1_p - c1))
    g2_p = jnp.pad(g2, (0, c1_p - c1), constant_values=1.0)
    b2_p = jnp.pad(b2, (0, c1_p - c1))
    g3_p = jnp.pad(g3, (0, cout_p - cout), constant_values=1.0)
    b3_p = jnp.pad(b3, (0, cout_p - cout))

    cp = _compiler_params()
    vec = lambda c: pl.BlockSpec((1, c), lambda i: (0, 0))          # resident per-channel vectors
    tile4 = lambda hh, ww, c: pl.BlockSpec((tile_n, hh, ww, c), lambda i: (i, 0, 0, 0))
    stats_spec = lambda c: pl.BlockSpec((1, 2, c), lambda i: (i, 0, 0))

    # --- stage 1: conv1 (3x3) + bn1 partial stats ------------------------------
    h1, st1 = pl.pallas_call(
        _conv3x3_stats_kernel,
        grid=(grid_n,),
        in_specs=[tile4(h + 2, w + 2, cin_p),
                  pl.BlockSpec((9, cin_p, c1_p), lambda i: (0, 0, 0))],
        out_specs=(tile4(h, w, c1_p), stats_spec(c1_p)),
        out_shape=(jax.ShapeDtypeStruct((n, h, w, c1_p), jnp.bfloat16),
                   jax.ShapeDtypeStruct((grid_n, 2, c1_p), jnp.float32)),
        compiler_params=cp,
    )(xp, w1_k)
    sc1, sh1 = _fold_bn(st1, g1_p, b1_p, m_rows)

    # --- stage 2: bn1 + relu + conv2 (1x1) + bn2 partial stats ------------------
    h2p, st2 = pl.pallas_call(
        _bn_relu_conv1x1_kernel,
        grid=(grid_n,),
        in_specs=[tile4(h, w, c1_p), vec(c1_p), vec(c1_p),
                  pl.BlockSpec((c1_p, c1_p), lambda i: (0, 0))],
        out_specs=(tile4(h + 2, w + 2, c1_p), stats_spec(c1_p)),
        out_shape=(jax.ShapeDtypeStruct((n, h + 2, w + 2, c1_p), jnp.bfloat16),
                   jax.ShapeDtypeStruct((grid_n, 2, c1_p), jnp.float32)),
        compiler_params=cp,
    )(h1, sc1, sh1, w2_k)
    sc2, sh2 = _fold_bn(st2, g2_p, b2_p, m_rows)

    # --- stage 3: bn2 + relu + conv3 (3x3) + bn3 partial stats ------------------
    h3, st3 = pl.pallas_call(
        _bn_relu_conv3x3_kernel,
        grid=(grid_n,),
        in_specs=[tile4(h + 2, w + 2, c1_p), vec(c1_p), vec(c1_p),
                  pl.BlockSpec((9, c1_p, cout_p), lambda i: (0, 0, 0))],
        out_specs=(tile4(h, w, cout_p), stats_spec(cout_p)),
        out_shape=(jax.ShapeDtypeStruct((n, h, w, cout_p), jnp.bfloat16),
                   jax.ShapeDtypeStruct((grid_n, 2, cout_p), jnp.float32)),
        compiler_params=cp,
    )(h2p, sc2, sh2, w3_k)
    sc3, sh3 = _fold_bn(st3, g3_p, b3_p, m_rows)

    # --- stage 4: bn3 + residual add + relu -------------------------------------
    out_p = pl.pallas_call(
        _bn_residual_relu_kernel,
        grid=(grid_n,),
        in_specs=[tile4(h, w, cout_p), vec(cout_p), vec(cout_p),
                  tile4(h + 2, w + 2, cin_p)],
        out_specs=tile4(h, w, cout_p),
        out_shape=jax.ShapeDtypeStruct((n, h, w, cout_p), jnp.float32),
        compiler_params=cp,
    )(h3, sc3, sh3, xp)

    out = out_p[..., :cout]                       # drop lane padding
    return jnp.transpose(out, (0, 3, 1, 2))       # back to NCHW


# ---------------------------------------------------------------------------
# Pure-JAX f32 reference (lax.conv) for a correctness check
# ---------------------------------------------------------------------------
def _bn_ref(x_nhwc, gamma, beta):
    mean = x_nhwc.mean(axis=(0, 1, 2), keepdims=True)
    var = ((x_nhwc - mean) ** 2).mean(axis=(0, 1, 2), keepdims=True)
    return (x_nhwc - mean) * lax.rsqrt(var + EPS) * gamma.reshape(1, 1, 1, -1) \
        + beta.reshape(1, 1, 1, -1)


def basic_block_reference(x_nchw, params):
    w1, g1, b1, w2, g2, b2, w3, g3, b3 = params
    x = jnp.transpose(x_nchw, (0, 2, 3, 1)).astype(jnp.float32)
    dn = ("NHWC", "HWIO", "NHWC")
    hi = lax.Precision.HIGHEST
    y = lax.conv_general_dilated(x, w1, (1, 1), "SAME", dimension_numbers=dn, precision=hi)
    y = jnp.maximum(_bn_ref(y, g1, b1), 0.0)
    y = jnp.einsum("nhwc,cd->nhwd", y, w2, precision=hi)
    y = jnp.maximum(_bn_ref(y, g2, b2), 0.0)
    y = lax.conv_general_dilated(y, w3, (1, 1), "SAME", dimension_numbers=dn, precision=hi)
    y = _bn_ref(y, g3, b3)
    y = jnp.maximum(y + x, 0.0)
    return jnp.transpose(y, (0, 3, 1, 2))


# ---------------------------------------------------------------------------
# Driver
# ---------------------------------------------------------------------------
if __name__ == "__main__":
    # BasicBlock(inplanes=16, planes=16, stride=1, downsample=None)
    N, H, W = 2, 8, 8
    inplanes = planes = 16
    C1 = planes // 4          # = 4
    Cout = planes             # = 16 (expansion = 1)

    key = jax.random.PRNGKey(0)
    ks = jax.random.split(key, 10)

    # Deterministic synthetic parameters (3x3 conv weights in HWIO layout).
    w1 = jax.random.normal(ks[0], (3, 3, inplanes, C1), jnp.float32) * 0.1
    w2 = jax.random.normal(ks[1], (C1, C1), jnp.float32) * 0.2
    w3 = jax.random.normal(ks[2], (3, 3, C1, Cout), jnp.float32) * 0.1
    g1 = jax.random.uniform(ks[3], (C1,), jnp.float32, 0.5, 1.5)
    b1 = jax.random.normal(ks[4], (C1,), jnp.float32) * 0.1
    g2 = jax.random.uniform(ks[5], (C1,), jnp.float32, 0.5, 1.5)
    b2 = jax.random.normal(ks[6], (C1,), jnp.float32) * 0.1
    g3 = jax.random.uniform(ks[7], (Cout,), jnp.float32, 0.5, 1.5)
    b3 = jax.random.normal(ks[8], (Cout,), jnp.float32) * 0.1
    params = (w1, g1, b1, w2, g2, b2, w3, g3, b3)

    x = jax.random.normal(ks[9], (N, inplanes, H, W), jnp.float32)  # NCHW, like PyTorch

    fwd = jax.jit(basic_block_forward)
    out = jax.block_until_ready(fwd(x, params))
    ref = jax.block_until_ready(basic_block_reference(x, params))

    assert out.shape == (N, planes, H, W), out.shape
    assert bool(jnp.all(jnp.isfinite(out)))
    max_err = float(jnp.max(jnp.abs(out - ref)))
    # bf16 MXU inputs + bf16 HBM intermediates vs an all-f32 reference.
    assert max_err < 5e-2, f"mismatch vs reference: max abs err {max_err}"

    print("KERNEL_OK")
</pallas_src>

<mosaic_0001>
module attributes {stable_mosaic.version = 11 : i64} {
  func.func @_conv3x3_stats_kernel(%arg0: i32, %arg1: memref<1x10x10x128xbf16, #tpu.memory_space<vmem>>, %arg2: memref<9x128x128xbf16, #tpu.memory_space<vmem>>, %arg3: memref<1x8x8x128xbf16, #tpu.memory_space<vmem>>, %arg4: memref<1x2x128xf32, #tpu.memory_space<vmem>>) attributes {dimension_semantics = [#tpu.dimension_semantics<parallel>], iteration_bounds = array<i64: 2>, scalar_prefetch = 0 : i64, scratch_operands = 0 : i64, tpu.core_type = #tpu.core_type<tc>, window_params = [{transform_indices = @transform_0, window_bounds = array<i64: 1, 10, 10, 128>}, {pipeline_mode = #tpu.pipeline_mode<synchronous>, transform_indices = @transform_1, window_bounds = array<i64: 9, 128, 128>}, {transform_indices = @transform_2, window_bounds = array<i64: 1, 8, 8, 128>}, {transform_indices = @transform_3, window_bounds = array<i64: 1, 2, 128>}]} {
    %c0 = arith.constant 0 : index
    %c0_0 = arith.constant 0 : index
    %c0_1 = arith.constant 0 : index
    %c0_2 = arith.constant 0 : index
    %0 = vector.load %arg1[%c0, %c0_0, %c0_1, %c0_2] : memref<1x10x10x128xbf16, #tpu.memory_space<vmem>>, vector<1x10x10x128xbf16>
    %cst = arith.constant 0.000000e+00 : f32
    %1 = vector.broadcast %cst : f32 to vector<64x128xf32>
    %2 = vector.extract_strided_slice %0 {offsets = [0, 0, 0, 0], sizes = [1, 8, 8, 128], strides = [1, 1, 1, 1]} : vector<1x10x10x128xbf16> to vector<1x8x8x128xbf16>
    %3 = vector.shape_cast %2 : vector<1x8x8x128xbf16> to vector<64x128xbf16>
    %c0_3 = arith.constant 0 : index
    %c0_4 = arith.constant 0 : index
    %c0_5 = arith.constant 0 : index
    %4 = vector.load %arg2[%c0_3, %c0_4, %c0_5] : memref<9x128x128xbf16, #tpu.memory_space<vmem>>, vector<1x128x128xbf16>
    %5 = vector.shape_cast %4 : vector<1x128x128xbf16> to vector<128x128xbf16>
    %cst_6 = arith.constant dense<0.000000e+00> : vector<64x128xf32>
    %6 = tpu.matmul %3, %5, %cst_6 {dimension_numbers = #tpu.dot_dimension_numbers<[1], [0], [0], [1], [0, 0, 1, 1], [], []>} : vector<64x128xbf16>, vector<128x128xbf16>, vector<64x128xf32> -> vector<64x128xf32>
    %7 = arith.addf %1, %6 : vector<64x128xf32>
    %8 = vector.extract_strided_slice %0 {offsets = [0, 0, 1, 0], sizes = [1, 8, 8, 128], strides = [1, 1, 1, 1]} : vector<1x10x10x128xbf16> to vector<1x8x8x128xbf16>
    %9 = vector.shape_cast %8 : vector<1x8x8x128xbf16> to vector<64x128xbf16>
    %c1 = arith.constant 1 : index
    %c0_7 = arith.constant 0 : index
    %c0_8 = arith.constant 0 : index
    %10 = vector.load %arg2[%c1, %c0_7, %c0_8] : memref<9x128x128xbf16, #tpu.memory_space<vmem>>, vector<1x128x128xbf16>
    %11 = vector.shape_cast %10 : vector<1x128x128xbf16> to vector<128x128xbf16>
    %cst_9 = arith.constant dense<0.000000e+00> : vector<64x128xf32>
    %12 = tpu.matmul %9, %11, %cst_9 {dimension_numbers = #tpu.dot_dimension_numbers<[1], [0], [0], [1], [0, 0, 1, 1], [], []>} : vector<64x128xbf16>, vector<128x128xbf16>, vector<64x128xf32> -> vector<64x128xf32>
    %13 = arith.addf %7, %12 : vector<64x128xf32>
    %14 = vector.extract_strided_slice %0 {offsets = [0, 0, 2, 0], sizes = [1, 8, 8, 128], strides = [1, 1, 1, 1]} : vector<1x10x10x128xbf16> to vector<1x8x8x128xbf16>
    %15 = vector.shape_cast %14 : vector<1x8x8x128xbf16> to vector<64x128xbf16>
    %c2 = arith.constant 2 : index
    %c0_10 = arith.constant 0 : index
    %c0_11 = arith.constant 0 : index
    %16 = vector.load %arg2[%c2, %c0_10, %c0_11] : memref<9x128x128xbf16, #tpu.memory_space<vmem>>, vector<1x128x128xbf16>
    %17 = vector.shape_cast %16 : vector<1x128x128xbf16> to vector<128x128xbf16>
    %cst_12 = arith.constant dense<0.000000e+00> : vector<64x128xf32>
    %18 = tpu.matmul %15, %17, %cst_12 {dimension_numbers = #tpu.dot_dimension_numbers<[1], [0], [0], [1], [0, 0, 1, 1], [], []>} : vector<64x128xbf16>, vector<128x128xbf16>, vector<64x128xf32> -> vector<64x128xf32>
    %19 = arith.addf %13, %18 : vector<64x128xf32>
    %20 = vector.extract_strided_slice %0 {offsets = [0, 1, 0, 0], sizes = [1, 8, 8, 128], strides = [1, 1, 1, 1]} : vector<1x10x10x128xbf16> to vector<1x8x8x128xbf16>
    %21 = vector.shape_cast %20 : vector<1x8x8x128xbf16> to vector<64x128xbf16>
    %c3 = arith.constant 3 : index
    %c0_13 = arith.constant 0 : index
    %c0_14 = arith.constant 0 : index
    %22 = vector.load %arg2[%c3, %c0_13, %c0_14] : memref<9x128x128xbf16, #tpu.memory_space<vmem>>, vector<1x128x128xbf16>
    %23 = vector.shape_cast %22 : vector<1x128x128xbf16> to vector<128x128xbf16>
    %cst_15 = arith.constant dense<0.000000e+00> : vector<64x128xf32>
    %24 = tpu.matmul %21, %23, %cst_15 {dimension_numbers = #tpu.dot_dimension_numbers<[1], [0], [0], [1], [0, 0, 1, 1], [], []>} : vector<64x128xbf16>, vector<128x128xbf16>, vector<64x128xf32> -> vector<64x128xf32>
    %25 = arith.addf %19, %24 : vector<64x128xf32>
    %26 = vector.extract_strided_slice %0 {offsets = [0, 1, 1, 0], sizes = [1, 8, 8, 128], strides = [1, 1, 1, 1]} : vector<1x10x10x128xbf16> to vector<1x8x8x128xbf16>
    %27 = vector.shape_cast %26 : vector<1x8x8x128xbf16> to vector<64x128xbf16>
    %c4 = arith.constant 4 : index
    %c0_16 = arith.constant 0 : index
    %c0_17 = arith.constant 0 : index
    %28 = vector.load %arg2[%c4, %c0_16, %c0_17] : memref<9x128x128xbf16, #tpu.memory_space<vmem>>, vector<1x128x128xbf16>
    %29 = vector.shape_cast %28 : vector<1x128x128xbf16> to vector<128x128xbf16>
    %cst_18 = arith.constant dense<0.000000e+00> : vector<64x128xf32>
    %30 = tpu.matmul %27, %29, %cst_18 {dimension_numbers = #tpu.dot_dimension_numbers<[1], [0], [0], [1], [0, 0, 1, 1], [], []>} : vector<64x128xbf16>, vector<128x128xbf16>, vector<64x128xf32> -> vector<64x128xf32>
    %31 = arith.addf %25, %30 : vector<64x128xf32>
    %32 = vector.extract_strided_slice %0 {offsets = [0, 1, 2, 0], sizes = [1, 8, 8, 128], strides = [1, 1, 1, 1]} : vector<1x10x10x128xbf16> to vector<1x8x8x128xbf16>
    %33 = vector.shape_cast %32 : vector<1x8x8x128xbf16> to vector<64x128xbf16>
    %c5 = arith.constant 5 : index
    %c0_19 = arith.constant 0 : index
    %c0_20 = arith.constant 0 : index
    %34 = vector.load %arg2[%c5, %c0_19, %c0_20] : memref<9x128x128xbf16, #tpu.memory_space<vmem>>, vector<1x128x128xbf16>
    %35 = vector.shape_cast %34 : vector<1x128x128xbf16> to vector<128x128xbf16>
    %cst_21 = arith.constant dense<0.000000e+00> : vector<64x128xf32>
    %36 = tpu.matmul %33, %35, %cst_21 {dimension_numbers = #tpu.dot_dimension_numbers<[1], [0], [0], [1], [0, 0, 1, 1], [], []>} : vector<64x128xbf16>, vector<128x128xbf16>, vector<64x128xf32> -> vector<64x128xf32>
    %37 = arith.addf %31, %36 : vector<64x128xf32>
    %38 = vector.extract_strided_slice %0 {offsets = [0, 2, 0, 0], sizes = [1, 8, 8, 128], strides = [1, 1, 1, 1]} : vector<1x10x10x128xbf16> to vector<1x8x8x128xbf16>
    %39 = vector.shape_cast %38 : vector<1x8x8x128xbf16> to vector<64x128xbf16>
    %c6 = arith.constant 6 : index
    %c0_22 = arith.constant 0 : index
    %c0_23 = arith.constant 0 : index
    %40 = vector.load %arg2[%c6, %c0_22, %c0_23] : memref<9x128x128xbf16, #tpu.memory_space<vmem>>, vector<1x128x128xbf16>
    %41 = vector.shape_cast %40 : vector<1x128x128xbf16> to vector<128x128xbf16>
    %cst_24 = arith.constant dense<0.000000e+00> : vector<64x128xf32>
    %42 = tpu.matmul %39, %41, %cst_24 {dimension_numbers = #tpu.dot_dimension_numbers<[1], [0], [0], [1], [0, 0, 1, 1], [], []>} : vector<64x128xbf16>, vector<128x128xbf16>, vector<64x128xf32> -> vector<64x128xf32>
    %43 = arith.addf %37, %42 : vector<64x128xf32>
    %44 = vector.extract_strided_slice %0 {offsets = [0, 2, 1, 0], sizes = [1, 8, 8, 128], strides = [1, 1, 1, 1]} : vector<1x10x10x128xbf16> to vector<1x8x8x128xbf16>
    %45 = vector.shape_cast %44 : vector<1x8x8x128xbf16> to vector<64x128xbf16>
    %c7 = arith.constant 7 : index
    %c0_25 = arith.constant 0 : index
    %c0_26 = arith.constant 0 : index
    %46 = vector.load %arg2[%c7, %c0_25, %c0_26] : memref<9x128x128xbf16, #tpu.memory_space<vmem>>, vector<1x128x128xbf16>
    %47 = vector.shape_cast %46 : vector<1x128x128xbf16> to vector<128x128xbf16>
    %cst_27 = arith.constant dense<0.000000e+00> : vector<64x128xf32>
    %48 = tpu.matmul %45, %47, %cst_27 {dimension_numbers = #tpu.dot_dimension_numbers<[1], [0], [0], [1], [0, 0, 1, 1], [], []>} : vector<64x128xbf16>, vector<128x128xbf16>, vector<64x128xf32> -> vector<64x128xf32>
    %49 = arith.addf %43, %48 : vector<64x128xf32>
    %50 = vector.extract_strided_slice %0 {offsets = [0, 2, 2, 0], sizes = [1, 8, 8, 128], strides = [1, 1, 1, 1]} : vector<1x10x10x128xbf16> to vector<1x8x8x128xbf16>
    %51 = vector.shape_cast %50 : vector<1x8x8x128xbf16> to vector<64x128xbf16>
    %c8 = arith.constant 8 : index
    %c0_28 = arith.constant 0 : index
    %c0_29 = arith.constant 0 : index
    %52 = vector.load %arg2[%c8, %c0_28, %c0_29] : memref<9x128x128xbf16, #tpu.memory_space<vmem>>, vector<1x128x128xbf16>
    %53 = vector.shape_cast %52 : vector<1x128x128xbf16> to vector<128x128xbf16>
    %cst_30 = arith.constant dense<0.000000e+00> : vector<64x128xf32>
    %54 = tpu.matmul %51, %53, %cst_30 {dimension_numbers = #tpu.dot_dimension_numbers<[1], [0], [0], [1], [0, 0, 1, 1], [], []>} : vector<64x128xbf16>, vector<128x128xbf16>, vector<64x128xf32> -> vector<64x128xf32>
    %55 = arith.addf %49, %54 : vector<64x128xf32>
    %56 = vector.shape_cast %55 : vector<64x128xf32> to vector<1x8x8x128xf32>
    %57 = arith.truncf %56 : vector<1x8x8x128xf32> to vector<1x8x8x128xbf16>
    %c0_31 = arith.constant 0 : index
    %c0_32 = arith.constant 0 : index
    %c0_33 = arith.constant 0 : index
    %c0_34 = arith.constant 0 : index
    %58 = vector.load %arg3[%c0_31, %c0_32, %c0_33, %c0_34] : memref<1x8x8x128xbf16, #tpu.memory_space<vmem>>, vector<1x8x8x128xbf16>
    tpu.vector_store %arg3[%c0_31, %c0_32, %c0_33, %c0_34], %57 {strides = array<i32>} : memref<1x8x8x128xbf16, #tpu.memory_space<vmem>>, vector<1x8x8x128xbf16>,
    %cst_35 = arith.constant dense<0.000000e+00> : vector<128xf32>
    %59 = vector.multi_reduction <add>, %55, %cst_35 [0] : vector<64x128xf32> to vector<128xf32>
    %60 = vector.shape_cast %59 : vector<128xf32> to vector<1x128xf32>
    %61 = vector.shape_cast %60 : vector<1x128xf32> to vector<1x1x128xf32>
    %c0_36 = arith.constant 0 : index
    %c0_37 = arith.constant 0 : index
    %c0_38 = arith.constant 0 : index
    %62 = vector.load %arg4[%c0_36, %c0_37, %c0_38] : memref<1x2x128xf32, #tpu.memory_space<vmem>>, vector<1x1x128xf32>
    tpu.vector_store %arg4[%c0_36, %c0_37, %c0_38], %61 {strides = array<i32>} : memref<1x2x128xf32, #tpu.memory_space<vmem>>, vector<1x1x128xf32>,
    %63 = arith.mulf %55, %55 : vector<64x128xf32>
    %cst_39 = arith.constant dense<0.000000e+00> : vector<128xf32>
    %64 = vector.multi_reduction <add>, %63, %cst_39 [0] : vector<64x128xf32> to vector<128xf32>
    %65 = vector.shape_cast %64 : vector<128xf32> to vector<1x128xf32>
    %66 = vector.shape_cast %65 : vector<1x128xf32> to vector<1x1x128xf32>
    %c0_40 = arith.constant 0 : index
    %c1_41 = arith.constant 1 : index
    %c0_42 = arith.constant 0 : index
    %67 = vector.load %arg4[%c0_40, %c1_41, %c0_42] : memref<1x2x128xf32, #tpu.memory_space<vmem>>, vector<1x1x128xf32>
    tpu.vector_store %arg4[%c0_40, %c1_41, %c0_42], %66 {strides = array<i32>} : memref<1x2x128xf32, #tpu.memory_space<vmem>>, vector<1x1x128xf32>,
    return
  }
  func.func @transform_0(%arg0: i32) -> (i32, i32, i32, i32) {
    %c0_i32 = arith.constant 0 : i32
    %c0_i32_0 = arith.constant 0 : i32
    %c0_i32_1 = arith.constant 0 : i32
    %c0_i32_2 = arith.constant 0 : i32
    return %arg0, %c0_i32, %c0_i32_0, %c0_i32_1 : i32, i32, i32, i32
  }
  func.func @transform_1(%arg0: i32) -> (i32, i32, i32) {
    %c0_i32 = arith.constant 0 : i32
    %c0_i32_0 = arith.constant 0 : i32
    %c0_i32_1 = arith.constant 0 : i32
    %c0_i32_2 = arith.constant 0 : i32
    return %c0_i32, %c0_i32_0, %c0_i32_1 : i32, i32, i32
  }
  func.func @transform_2(%arg0: i32) -> (i32, i32, i32, i32) {
    %c0_i32 = arith.constant 0 : i32
    %c0_i32_0 = arith.constant 0 : i32
    %c0_i32_1 = arith.constant 0 : i32
    %c0_i32_2 = arith.constant 0 : i32
    return %arg0, %c0_i32, %c0_i32_0, %c0_i32_1 : i32, i32, i32, i32
  }
  func.func @transform_3(%arg0: i32) -> (i32, i32, i32) {
    %c0_i32 = arith.constant 0 : i32
    %c0_i32_0 = arith.constant 0 : i32
    %c0_i32_1 = arith.constant 0 : i32
    return %arg0, %c0_i32, %c0_i32_0 : i32, i32, i32
  }
}

module attributes {stable_mosaic.version = 11 : i64} {
  func.func @_bn_relu_conv1x1_kernel(%arg0: i32, %arg1: memref<1x8x8x128xbf16, #tpu.memory_space<vmem>>, %arg2: memref<1x128xf32, #tpu.memory_space<vmem>>, %arg3: memref<1x128xf32, #tpu.memory_space<vmem>>, %arg4: memref<128x128xbf16, #tpu.memory_space<vmem>>, %arg5: memref<1x10x10x128xbf16, #tpu.memory_space<vmem>>, %arg6: memref<1x2x128xf32, #tpu.memory_space<vmem>>) attributes {dimension_semantics = [#tpu.dimension_semantics<parallel>], iteration_bounds = array<i64: 2>, scalar_prefetch = 0 : i64, scratch_operands = 0 : i64, tpu.core_type = #tpu.core_type<tc>, window_params = [{transform_indices = @transform_0, window_bounds = array<i64: 1, 8, 8, 128>}, {pipeline_mode = #tpu.pipeline_mode<synchronous>, transform_indices = @transform_1, window_bounds = array<i64: 1, 128>}, {pipeline_mode = #tpu.pipeline_mode<synchronous>, transform_indices = @transform_2, window_bounds = array<i64: 1, 128>}, {pipeline_mode = #tpu.pipeline_mode<synchronous>, transform_indices = @transform_3, window_bounds = array<i64: 128, 128>}, {transform_indices = @transform_4, window_bounds = array<i64: 1, 10, 10, 128>}, {transform_indices = @transform_5, window_bounds = array<i64: 1, 2, 128>}]} {
    %c0 = arith.constant 0 : index
    %c0_0 = arith.constant 0 : index
    %c0_1 = arith.constant 0 : index
    %c0_2 = arith.constant 0 : index
    %0 = vector.load %arg1[%c0, %c0_0, %c0_1, %c0_2] : memref<1x8x8x128xbf16, #tpu.memory_space<vmem>>, vector<1x8x8x128xbf16>
    %1 = vector.shape_cast %0 : vector<1x8x8x128xbf16> to vector<64x128xbf16>
    %2 = arith.extf %1 : vector<64x128xbf16> to vector<64x128xf32>
    %c0_3 = arith.constant 0 : index
    %c0_4 = arith.constant 0 : index
    %3 = vector.load %arg2[%c0_3, %c0_4] : memref<1x128xf32, #tpu.memory_space<vmem>>, vector<1x128xf32>
    %4 = vector.broadcast %3 : vector<1x128xf32> to vector<64x128xf32>
    %5 = arith.mulf %2, %4 : vector<64x128xf32>
    %c0_5 = arith.constant 0 : index
    %c0_6 = arith.constant 0 : index
    %6 = vector.load %arg3[%c0_5, %c0_6] : memref<1x128xf32, #tpu.memory_space<vmem>>, vector<1x128xf32>
    %7 = vector.broadcast %6 : vector<1x128xf32> to vector<64x128xf32>
    %8 = arith.addf %5, %7 : vector<64x128xf32>
    %cst = arith.constant 0.000000e+00 : f32
    %9 = vector.broadcast %cst : f32 to vector<64x128xf32>
    %10 = arith.maximumf %8, %9 : vector<64x128xf32>
    %11 = arith.truncf %10 : vector<64x128xf32> to vector<64x128xbf16>
    %c0_7 = arith.constant 0 : index
    %c0_8 = arith.constant 0 : index
    %12 = vector.load %arg4[%c0_7, %c0_8] : memref<128x128xbf16, #tpu.memory_space<vmem>>, vector<128x128xbf16>
    %cst_9 = arith.constant dense<0.000000e+00> : vector<64x128xf32>
    %13 = tpu.matmul %11, %12, %cst_9 {dimension_numbers = #tpu.dot_dimension_numbers<[1], [0], [0], [1], [0, 0, 1, 1], [], []>} : vector<64x128xbf16>, vector<128x128xbf16>, vector<64x128xf32> -> vector<64x128xf32>
    %cst_10 = arith.constant dense<0.000000e+00> : vector<128xf32>
    %14 = vector.multi_reduction <add>, %13, %cst_10 [0] : vector<64x128xf32> to vector<128xf32>
    %15 = vector.shape_cast %14 : vector<128xf32> to vector<1x128xf32>
    %16 = vector.shape_cast %15 : vector<1x128xf32> to vector<1x1x128xf32>
    %c0_11 = arith.constant 0 : index
    %c0_12 = arith.constant 0 : index
    %c0_13 = arith.constant 0 : index
    %17 = vector.load %arg6[%c0_11, %c0_12, %c0_13] : memref<1x2x128xf32, #tpu.memory_space<vmem>>, vector<1x1x128xf32>
    tpu.vector_store %arg6[%c0_11, %c0_12, %c0_13], %16 {strides = array<i32>} : memref<1x2x128xf32, #tpu.memory_space<vmem>>, vector<1x1x128xf32>,
    %18 = arith.mulf %13, %13 : vector<64x128xf32>
    %cst_14 = arith.constant dense<0.000000e+00> : vector<128xf32>
    %19 = vector.multi_reduction <add>, %18, %cst_14 [0] : vector<64x128xf32> to vector<128xf32>
    %20 = vector.shape_cast %19 : vector<128xf32> to vector<1x128xf32>
    %21 = vector.shape_cast %20 : vector<1x128xf32> to vector<1x1x128xf32>
    %c0_15 = arith.constant 0 : index
    %c1 = arith.constant 1 : index
    %c0_16 = arith.constant 0 : index
    %22 = vector.load %arg6[%c0_15, %c1, %c0_16] : memref<1x2x128xf32, #tpu.memory_space<vmem>>, vector<1x1x128xf32>
    tpu.vector_store %arg6[%c0_15, %c1, %c0_16], %21 {strides = array<i32>} : memref<1x2x128xf32, #tpu.memory_space<vmem>>, vector<1x1x128xf32>,
    %cst_17 = arith.constant 0.000000e+00 : bf16
    %23 = vector.broadcast %cst_17 : bf16 to vector<1x10x10x128xbf16>
    %c0_18 = arith.constant 0 : index
    %c0_19 = arith.constant 0 : index
    %c0_20 = arith.constant 0 : index
    %c0_21 = arith.constant 0 : index
    %24 = vector.load %arg5[%c0_18, %c0_19, %c0_20, %c0_21] : memref<1x10x10x128xbf16, #tpu.memory_space<vmem>>, vector<1x10x10x128xbf16>
    tpu.vector_store %arg5[%c0_18, %c0_19, %c0_20, %c0_21], %23 {strides = array<i32>} : memref<1x10x10x128xbf16, #tpu.memory_space<vmem>>, vector<1x10x10x128xbf16>,
    %25 = vector.shape_cast %13 : vector<64x128xf32> to vector<1x8x8x128xf32>
    %26 = arith.truncf %25 : vector<1x8x8x128xf32> to vector<1x8x8x128xbf16>
    %c0_22 = arith.constant 0 : index
    %c1_23 = arith.constant 1 : index
    %c1_24 = arith.constant 1 : index
    %c0_25 = arith.constant 0 : index
    %27 = vector.load %arg5[%c0_22, %c1_23, %c1_24, %c0_25] : memref<1x10x10x128xbf16, #tpu.memory_space<vmem>>, vector<1x8x8x128xbf16>
    tpu.vector_store %arg5[%c0_22, %c1_23, %c1_24, %c0_25], %26 {strides = array<i32>} : memref<1x10x10x128xbf16, #tpu.memory_space<vmem>>, vector<1x8x8x128xbf16>,
    return
  }
  func.func @transform_0(%arg0: i32) -> (i32, i32, i32, i32) {
    %c0_i32 = arith.constant 0 : i32
    %c0_i32_0 = arith.constant 0 : i32
    %c0_i32_1 = arith.constant 0 : i32
    %c0_i32_2 = arith.constant 0 : i32
    return %arg0, %c0_i32, %c0_i32_0, %c0_i32_1 : i32, i32, i32, i32
  }
  func.func @transform_1(%arg0: i32) -> (i32, i32) {
    %c0_i32 = arith.constant 0 : i32
    %c0_i32_0 = arith.constant 0 : i32
    %c0_i32_1 = arith.constant 0 : i32
    return %c0_i32, %c0_i32_0 : i32, i32
  }
  func.func @transform_2(%arg0: i32) -> (i32, i32) {
    %c0_i32 = arith.constant 0 : i32
    %c0_i32_0 = arith.constant 0 : i32
    %c0_i32_1 = arith.constant 0 : i32
    return %c0_i32, %c0_i32_0 : i32, i32
  }
  func.func @transform_3(%arg0: i32) -> (i32, i32) {
    %c0_i32 = arith.constant 0 : i32
    %c0_i32_0 = arith.constant 0 : i32
    %c0_i32_1 = arith.constant 0 : i32
    return %c0_i32, %c0_i32_0 : i32, i32
  }
  func.func @transform_4(%arg0: i32) -> (i32, i32, i32, i32) {
    %c0_i32 = arith.constant 0 : i32
    %c0_i32_0 = arith.constant 0 : i32
    %c0_i32_1 = arith.constant 0 : i32
    %c0_i32_2 = arith.constant 0 : i32
    return %arg0, %c0_i32, %c0_i32_0, %c0_i32_1 : i32, i32, i32, i32
  }
  func.func @transform_5(%arg0: i32) -> (i32, i32, i32) {
    %c0_i32 = arith.constant 0 : i32
    %c0_i32_0 = arith.constant 0 : i32
    %c0_i32_1 = arith.constant 0 : i32
    return %arg0, %c0_i32, %c0_i32_0 : i32, i32, i32
  }
}

module attributes {stable_mosaic.version = 11 : i64} {
  func.func @_bn_residual_relu_kernel(%arg0: i32, %arg1: memref<1x8x8x128xbf16, #tpu.memory_space<vmem>>, %arg2: memref<1x128xf32, #tpu.memory_space<vmem>>, %arg3: memref<1x128xf32, #tpu.memory_space<vmem>>, %arg4: memref<1x10x10x128xbf16, #tpu.memory_space<vmem>>, %arg5: memref<1x8x8x128xf32, #tpu.memory_space<vmem>>) attributes {dimension_semantics = [#tpu.dimension_semantics<parallel>], iteration_bounds = array<i64: 2>, scalar_prefetch = 0 : i64, scratch_operands = 0 : i64, tpu.core_type = #tpu.core_type<tc>, window_params = [{transform_indices = @transform_0, window_bounds = array<i64: 1, 8, 8, 128>}, {pipeline_mode = #tpu.pipeline_mode<synchronous>, transform_indices = @transform_1, window_bounds = array<i64: 1, 128>}, {pipeline_mode = #tpu.pipeline_mode<synchronous>, transform_indices = @transform_2, window_bounds = array<i64: 1, 128>}, {transform_indices = @transform_3, window_bounds = array<i64: 1, 10, 10, 128>}, {transform_indices = @transform_4, window_bounds = array<i64: 1, 8, 8, 128>}]} {
    %c0 = arith.constant 0 : index
    %c0_0 = arith.constant 0 : index
    %c0_1 = arith.constant 0 : index
    %c0_2 = arith.constant 0 : index
    %0 = vector.load %arg1[%c0, %c0_0, %c0_1, %c0_2] : memref<1x8x8x128xbf16, #tpu.memory_space<vmem>>, vector<1x8x8x128xbf16>
    %1 = arith.extf %0 : vector<1x8x8x128xbf16> to vector<1x8x8x128xf32>
    %c0_3 = arith.constant 0 : index
    %c1 = arith.constant 1 : index
    %c1_4 = arith.constant 1 : index
    %c0_5 = arith.constant 0 : index
    %2 = vector.load %arg4[%c0_3, %c1, %c1_4, %c0_5] : memref<1x10x10x128xbf16, #tpu.memory_space<vmem>>, vector<1x8x8x128xbf16>
    %3 = arith.extf %2 : vector<1x8x8x128xbf16> to vector<1x8x8x128xf32>
    %c0_6 = arith.constant 0 : index
    %c0_7 = arith.constant 0 : index
    %4 = vector.load %arg2[%c0_6, %c0_7] : memref<1x128xf32, #tpu.memory_space<vmem>>, vector<1x128xf32>
    %5 = vector.shape_cast %4 : vector<1x128xf32> to vector<1x1x1x128xf32>
    %c0_8 = arith.constant 0 : index
    %c0_9 = arith.constant 0 : index
    %6 = vector.load %arg3[%c0_8, %c0_9] : memref<1x128xf32, #tpu.memory_space<vmem>>, vector<1x128xf32>
    %7 = vector.shape_cast %6 : vector<1x128xf32> to vector<1x1x1x128xf32>
    %8 = vector.broadcast %5 : vector<1x1x1x128xf32> to vector<1x8x8x128xf32>
    %9 = arith.mulf %1, %8 : vector<1x8x8x128xf32>
    %10 = vector.broadcast %7 : vector<1x1x1x128xf32> to vector<1x8x8x128xf32>
    %11 = arith.addf %9, %10 : vector<1x8x8x128xf32>
    %12 = arith.addf %11, %3 : vector<1x8x8x128xf32>
    %cst = arith.constant 0.000000e+00 : f32
    %13 = vector.broadcast %cst : f32 to vector<1x8x8x128xf32>
    %14 = arith.maximumf %12, %13 : vector<1x8x8x128xf32>
    %c0_10 = arith.constant 0 : index
    %c0_11 = arith.constant 0 : index
    %c0_12 = arith.constant 0 : index
    %c0_13 = arith.constant 0 : index
    %15 = vector.load %arg5[%c0_10, %c0_11, %c0_12, %c0_13] : memref<1x8x8x128xf32, #tpu.memory_space<vmem>>, vector<1x8x8x128xf32>
    tpu.vector_store %arg5[%c0_10, %c0_11, %c0_12, %c0_13], %14 {strides = array<i32>} : memref<1x8x8x128xf32, #tpu.memory_space<vmem>>, vector<1x8x8x128xf32>,
    return
  }
  func.func @transform_0(%arg0: i32) -> (i32, i32, i32, i32) {
    %c0_i32 = arith.constant 0 : i32
    %c0_i32_0 = arith.constant 0 : i32
    %c0_i32_1 = arith.constant 0 : i32
    %c0_i32_2 = arith.constant 0 : i32
    return %arg0, %c0_i32, %c0_i32_0, %c0_i32_1 : i32, i32, i32, i32
  }
  func.func @transform_1(%arg0: i32) -> (i32, i32) {
    %c0_i32 = arith.constant 0 : i32
    %c0_i32_0 = arith.constant 0 : i32
    %c0_i32_1 = arith.constant 0 : i32
    return %c0_i32, %c0_i32_0 : i32, i32
  }
  func.func @transform_2(%arg0: i32) -> (i32, i32) {
    %c0_i32 = arith.constant 0 : i32
    %c0_i32_0 = arith.constant 0 : i32
    %c0_i32_1 = arith.constant 0 : i32
    return %c0_i32, %c0_i32_0 : i32, i32
  }
  func.func @transform_3(%arg0: i32) -> (i32, i32, i32, i32) {
    %c0_i32 = arith.constant 0 : i32
    %c0_i32_0 = arith.constant 0 : i32
    %c0_i32_1 = arith.constant 0 : i32
    %c0_i32_2 = arith.constant 0 : i32
    return %arg0, %c0_i32, %c0_i32_0, %c0_i32_1 : i32, i32, i32, i32
  }
  func.func @transform_4(%arg0: i32) -> (i32, i32, i32, i32) {
    %c0_i32 = arith.constant 0 : i32
    %c0_i32_0 = arith.constant 0 : i32
    %c0_i32_1 = arith.constant 0 : i32
    %c0_i32_2 = arith.constant 0 : i32
    return %arg0, %c0_i32, %c0_i32_0, %c0_i32_1 : i32, i32, i32, i32
  }
}

module attributes {stable_mosaic.version = 11 : i64} {
  func.func @_bn_relu_conv3x3_kernel(%arg0: i32, %arg1: memref<1x10x10x128xbf16, #tpu.memory_space<vmem>>, %arg2: memref<1x128xf32, #tpu.memory_space<vmem>>, %arg3: memref<1x128xf32, #tpu.memory_space<vmem>>, %arg4: memref<9x128x128xbf16, #tpu.memory_space<vmem>>, %arg5: memref<1x8x8x128xbf16, #tpu.memory_space<vmem>>, %arg6: memref<1x2x128xf32, #tpu.memory_space<vmem>>) attributes {dimension_semantics = [#tpu.dimension_semantics<parallel>], iteration_bounds = array<i64: 2>, scalar_prefetch = 0 : i64, scratch_operands = 0 : i64, tpu.core_type = #tpu.core_type<tc>, window_params = [{transform_indices = @transform_0, window_bounds = array<i64: 1, 10, 10, 128>}, {pipeline_mode = #tpu.pipeline_mode<synchronous>, transform_indices = @transform_1, window_bounds = array<i64: 1, 128>}, {pipeline_mode = #tpu.pipeline_mode<synchronous>, transform_indices = @transform_2, window_bounds = array<i64: 1, 128>}, {pipeline_mode = #tpu.pipeline_mode<synchronous>, transform_indices = @transform_3, window_bounds = array<i64: 9, 128, 128>}, {transform_indices = @transform_4, window_bounds = array<i64: 1, 8, 8, 128>}, {transform_indices = @transform_5, window_bounds = array<i64: 1, 2, 128>}]} {
    %c0 = arith.constant 0 : index
    %c0_0 = arith.constant 0 : index
    %c0_1 = arith.constant 0 : index
    %c0_2 = arith.constant 0 : index
    %0 = vector.load %arg1[%c0, %c0_0, %c0_1, %c0_2] : memref<1x10x10x128xbf16, #tpu.memory_space<vmem>>, vector<1x10x10x128xbf16>
    %1 = arith.extf %0 : vector<1x10x10x128xbf16> to vector<1x10x10x128xf32>
    %c0_3 = arith.constant 0 : index
    %c0_4 = arith.constant 0 : index
    %2 = vector.load %arg2[%c0_3, %c0_4] : memref<1x128xf32, #tpu.memory_space<vmem>>, vector<1x128xf32>
    %3 = vector.shape_cast %2 : vector<1x128xf32> to vector<1x1x1x128xf32>
    %c0_5 = arith.constant 0 : index
    %c0_6 = arith.constant 0 : index
    %4 = vector.load %arg3[%c0_5, %c0_6] : memref<1x128xf32, #tpu.memory_space<vmem>>, vector<1x128xf32>
    %5 = vector.shape_cast %4 : vector<1x128xf32> to vector<1x1x1x128xf32>
    %6 = vector.broadcast %3 : vector<1x1x1x128xf32> to vector<1x10x10x128xf32>
    %7 = arith.mulf %1, %6 : vector<1x10x10x128xf32>
    %8 = vector.broadcast %5 : vector<1x1x1x128xf32> to vector<1x10x10x128xf32>
    %9 = arith.addf %7, %8 : vector<1x10x10x128xf32>
    %cst = arith.constant 0.000000e+00 : f32
    %10 = vector.broadcast %cst : f32 to vector<1x10x10x128xf32>
    %11 = arith.maximumf %9, %10 : vector<1x10x10x128xf32>
    %12 = tpu.iota {dimensions = array<i32: 1>} : vector<1x10x10x128xi32>
    %13 = tpu.iota {dimensions = array<i32: 2>} : vector<1x10x10x128xi32>
    %c1_i32 = arith.constant 1 : i32
    %14 = vector.broadcast %c1_i32 : i32 to vector<1x10x10x128xi32>
    %15 = arith.cmpi sge, %12, %14 : vector<1x10x10x128xi32>
    %c8_i32 = arith.constant 8 : i32
    %16 = vector.broadcast %c8_i32 : i32 to vector<1x10x10x128xi32>
    %17 = arith.cmpi sle, %12, %16 : vector<1x10x10x128xi32>
    %18 = arith.andi %15, %17 : vector<1x10x10x128xi1>
    %c1_i32_7 = arith.constant 1 : i32
    %19 = vector.broadcast %c1_i32_7 : i32 to vector<1x10x10x128xi32>
    %20 = arith.cmpi sge, %13, %19 : vector<1x10x10x128xi32>
    %21 = arith.andi %18, %20 : vector<1x10x10x128xi1>
    %c8_i32_8 = arith.constant 8 : i32
    %22 = vector.broadcast %c8_i32_8 : i32 to vector<1x10x10x128xi32>
    %23 = arith.cmpi sle, %13, %22 : vector<1x10x10x128xi32>
    %24 = arith.andi %21, %23 : vector<1x10x10x128xi1>
    %cst_9 = arith.constant 0.000000e+00 : f32
    %25 = vector.broadcast %cst_9 : f32 to vector<1x10x10x128xf32>
    %26 = arith.select %24, %11, %25 : vector<1x10x10x128xi1>, vector<1x10x10x128xf32>
    %27 = arith.truncf %26 : vector<1x10x10x128xf32> to vector<1x10x10x128xbf16>
    %cst_10 = arith.constant 0.000000e+00 : f32
    %28 = vector.broadcast %cst_10 : f32 to vector<64x128xf32>
    %29 = vector.extract_strided_slice %27 {offsets = [0, 0, 0, 0], sizes = [1, 8, 8, 128], strides = [1, 1, 1, 1]} : vector<1x10x10x128xbf16> to vector<1x8x8x128xbf16>
    %30 = vector.shape_cast %29 : vector<1x8x8x128xbf16> to vector<64x128xbf16>
    %c0_11 = arith.constant 0 : index
    %c0_12 = arith.constant 0 : index
    %c0_13 = arith.constant 0 : index
    %31 = vector.load %arg4[%c0_11, %c0_12, %c0_13] : memref<9x128x128xbf16, #tpu.memory_space<vmem>>, vector<1x128x128xbf16>
    %32 = vector.shape_cast %31 : vector<1x128x128xbf16> to vector<128x128xbf16>
    %cst_14 = arith.constant dense<0.000000e+00> : vector<64x128xf32>
    %33 = tpu.matmul %30, %32, %cst_14 {dimension_numbers = #tpu.dot_dimension_numbers<[1], [0], [0], [1], [0, 0, 1, 1], [], []>} : vector<64x128xbf16>, vector<128x128xbf16>, vector<64x128xf32> -> vector<64x128xf32>
    %34 = arith.addf %28, %33 : vector<64x128xf32>
    %35 = vector.extract_strided_slice %27 {offsets = [0, 0, 1, 0], sizes = [1, 8, 8, 128], strides = [1, 1, 1, 1]} : vector<1x10x10x128xbf16> to vector<1x8x8x128xbf16>
    %36 = vector.shape_cast %35 : vector<1x8x8x128xbf16> to vector<64x128xbf16>
    %c1 = arith.constant 1 : index
    %c0_15 = arith.constant 0 : index
    %c0_16 = arith.constant 0 : index
    %37 = vector.load %arg4[%c1, %c0_15, %c0_16] : memref<9x128x128xbf16, #tpu.memory_space<vmem>>, vector<1x128x128xbf16>
    %38 = vector.shape_cast %37 : vector<1x128x128xbf16> to vector<128x128xbf16>
    %cst_17 = arith.constant dense<0.000000e+00> : vector<64x128xf32>
    %39 = tpu.matmul %36, %38, %cst_17 {dimension_numbers = #tpu.dot_dimension_numbers<[1], [0], [0], [1], [0, 0, 1, 1], [], []>} : vector<64x128xbf16>, vector<128x128xbf16>, vector<64x128xf32> -> vector<64x128xf32>
    %40 = arith.addf %34, %39 : vector<64x128xf32>
    %41 = vector.extract_strided_slice %27 {offsets = [0, 0, 2, 0], sizes = [1, 8, 8, 128], strides = [1, 1, 1, 1]} : vector<1x10x10x128xbf16> to vector<1x8x8x128xbf16>
    %42 = vector.shape_cast %41 : vector<1x8x8x128xbf16> to vector<64x128xbf16>
    %c2 = arith.constant 2 : index
    %c0_18 = arith.constant 0 : index
    %c0_19 = arith.constant 0 : index
    %43 = vector.load %arg4[%c2, %c0_18, %c0_19] : memref<9x128x128xbf16, #tpu.memory_space<vmem>>, vector<1x128x128xbf16>
    %44 = vector.shape_cast %43 : vector<1x128x128xbf16> to vector<128x128xbf16>
    %cst_20 = arith.constant dense<0.000000e+00> : vector<64x128xf32>
    %45 = tpu.matmul %42, %44, %cst_20 {dimension_numbers = #tpu.dot_dimension_numbers<[1], [0], [0], [1], [0, 0, 1, 1], [], []>} : vector<64x128xbf16>, vector<128x128xbf16>, vector<64x128xf32> -> vector<64x128xf32>
    %46 = arith.addf %40, %45 : vector<64x128xf32>
    %47 = vector.extract_strided_slice %27 {offsets = [0, 1, 0, 0], sizes = [1, 8, 8, 128], strides = [1, 1, 1, 1]} : vector<1x10x10x128xbf16> to vector<1x8x8x128xbf16>
    %48 = vector.shape_cast %47 : vector<1x8x8x128xbf16> to vector<64x128xbf16>
    %c3 = arith.constant 3 : index
    %c0_21 = arith.constant 0 : index
    %c0_22 = arith.constant 0 : index
    %49 = vector.load %arg4[%c3, %c0_21, %c0_22] : memref<9x128x128xbf16, #tpu.memory_space<vmem>>, vector<1x128x128xbf16>
    %50 = vector.shape_cast %49 : vector<1x128x128xbf16> to vector<128x128xbf16>
    %cst_23 = arith.constant dense<0.000000e+00> : vector<64x128xf32>
    %51 = tpu.matmul %48, %50, %cst_23 {dimension_numbers = #tpu.dot_dimension_numbers<[1], [0], [0], [1], [0, 0, 1, 1], [], []>} : vector<64x128xbf16>, vector<128x128xbf16>, vector<64x128xf32> -> vector<64x128xf32>
    %52 = arith.addf %46, %51 : vector<64x128xf32>
    %53 = vector.extract_strided_slice %27 {offsets = [0, 1, 1, 0], sizes = [1, 8, 8, 128], strides = [1, 1, 1, 1]} : vector<1x10x10x128xbf16> to vector<1x8x8x128xbf16>
    %54 = vector.shape_cast %53 : vector<1x8x8x128xbf16> to vector<64x128xbf16>
    %c4 = arith.constant 4 : index
    %c0_24 = arith.constant 0 : index
    %c0_25 = arith.constant 0 : index
    %55 = vector.load %arg4[%c4, %c0_24, %c0_25] : memref<9x128x128xbf16, #tpu.memory_space<vmem>>, vector<1x128x128xbf16>
    %56 = vector.shape_cast %55 : vector<1x128x128xbf16> to vector<128x128xbf16>
    %cst_26 = arith.constant dense<0.000000e+00> : vector<64x128xf32>
    %57 = tpu.matmul %54, %56, %cst_26 {dimension_numbers = #tpu.dot_dimension_numbers<[1], [0], [0], [1], [0, 0, 1, 1], [], []>} : vector<64x128xbf16>, vector<128x128xbf16>, vector<64x128xf32> -> vector<64x128xf32>
    %58 = arith.addf %52, %57 : vector<64x128xf32>
    %59 = vector.extract_strided_slice %27 {offsets = [0, 1, 2, 0], sizes = [1, 8, 8, 128], strides = [1, 1, 1, 1]} : vector<1x10x10x128xbf16> to vector<1x8x8x128xbf16>
    %60 = vector.shape_cast %59 : vector<1x8x8x128xbf16> to vector<64x128xbf16>
    %c5 = arith.constant 5 : index
    %c0_27 = arith.constant 0 : index
    %c0_28 = arith.constant 0 : index
    %61 = vector.load %arg4[%c5, %c0_27, %c0_28] : memref<9x128x128xbf16, #tpu.memory_space<vmem>>, vector<1x128x128xbf16>
    %62 = vector.shape_cast %61 : vector<1x128x128xbf16> to vector<128x128xbf16>
    %cst_29 = arith.constant dense<0.000000e+00> : vector<64x128xf32>
    %63 = tpu.matmul %60, %62, %cst_29 {dimension_numbers = #tpu.dot_dimension_numbers<[1], [0], [0], [1], [0, 0, 1, 1], [], []>} : vector<64x128xbf16>, vector<128x128xbf16>, vector<64x128xf32> -> vector<64x128xf32>
    %64 = arith.addf %58, %63 : vector<64x128xf32>
    %65 = vector.extract_strided_slice %27 {offsets = [0, 2, 0, 0], sizes = [1, 8, 8, 128], strides = [1, 1, 1, 1]} : vector<1x10x10x128xbf16> to vector<1x8x8x128xbf16>
    %66 = vector.shape_cast %65 : vector<1x8x8x128xbf16> to vector<64x128xbf16>
    %c6 = arith.constant 6 : index
    %c0_30 = arith.constant 0 : index
    %c0_31 = arith.constant 0 : index
    %67 = vector.load %arg4[%c6, %c0_30, %c0_31] : memref<9x128x128xbf16, #tpu.memory_space<vmem>>, vector<1x128x128xbf16>
    %68 = vector.shape_cast %67 : vector<1x128x128xbf16> to vector<128x128xbf16>
    %cst_32 = arith.constant dense<0.000000e+00> : vector<64x128xf32>
    %69 = tpu.matmul %66, %68, %cst_32 {dimension_numbers = #tpu.dot_dimension_numbers<[1], [0], [0], [1], [0, 0, 1, 1], [], []>} : vector<64x128xbf16>, vector<128x128xbf16>, vector<64x128xf32> -> vector<64x128xf32>
    %70 = arith.addf %64, %69 : vector<64x128xf32>
    %71 = vector.extract_strided_slice %27 {offsets = [0, 2, 1, 0], sizes = [1, 8, 8, 128], strides = [1, 1, 1, 1]} : vector<1x10x10x128xbf16> to vector<1x8x8x128xbf16>
    %72 = vector.shape_cast %71 : vector<1x8x8x128xbf16> to vector<64x128xbf16>
    %c7 = arith.constant 7 : index
    %c0_33 = arith.constant 0 : index
    %c0_34 = arith.constant 0 : index
    %73 = vector.load %arg4[%c7, %c0_33, %c0_34] : memref<9x128x128xbf16, #tpu.memory_space<vmem>>, vector<1x128x128xbf16>
    %74 = vector.shape_cast %73 : vector<1x128x128xbf16> to vector<128x128xbf16>
    %cst_35 = arith.constant dense<0.000000e+00> : vector<64x128xf32>
    %75 = tpu.matmul %72, %74, %cst_35 {dimension_numbers = #tpu.dot_dimension_numbers<[1], [0], [0], [1], [0, 0, 1, 1], [], []>} : vector<64x128xbf16>, vector<128x128xbf16>, vector<64x128xf32> -> vector<64x128xf32>
    %76 = arith.addf %70, %75 : vector<64x128xf32>
    %77 = vector.extract_strided_slice %27 {offsets = [0, 2, 2, 0], sizes = [1, 8, 8, 128], strides = [1, 1, 1, 1]} : vector<1x10x10x128xbf16> to vector<1x8x8x128xbf16>
    %78 = vector.shape_cast %77 : vector<1x8x8x128xbf16> to vector<64x128xbf16>
    %c8 = arith.constant 8 : index
    %c0_36 = arith.constant 0 : index
    %c0_37 = arith.constant 0 : index
    %79 = vector.load %arg4[%c8, %c0_36, %c0_37] : memref<9x128x128xbf16, #tpu.memory_space<vmem>>, vector<1x128x128xbf16>
    %80 = vector.shape_cast %79 : vector<1x128x128xbf16> to vector<128x128xbf16>
    %cst_38 = arith.constant dense<0.000000e+00> : vector<64x128xf32>
    %81 = tpu.matmul %78, %80, %cst_38 {dimension_numbers = #tpu.dot_dimension_numbers<[1], [0], [0], [1], [0, 0, 1, 1], [], []>} : vector<64x128xbf16>, vector<128x128xbf16>, vector<64x128xf32> -> vector<64x128xf32>
    %82 = arith.addf %76, %81 : vector<64x128xf32>
    %83 = vector.shape_cast %82 : vector<64x128xf32> to vector<1x8x8x128xf32>
    %84 = arith.truncf %83 : vector<1x8x8x128xf32> to vector<1x8x8x128xbf16>
    %c0_39 = arith.constant 0 : index
    %c0_40 = arith.constant 0 : index
    %c0_41 = arith.constant 0 : index
    %c0_42 = arith.constant 0 : index
    %85 = vector.load %arg5[%c0_39, %c0_40, %c0_41, %c0_42] : memref<1x8x8x128xbf16, #tpu.memory_space<vmem>>, vector<1x8x8x128xbf16>
    tpu.vector_store %arg5[%c0_39, %c0_40, %c0_41, %c0_42], %84 {strides = array<i32>} : memref<1x8x8x128xbf16, #tpu.memory_space<vmem>>, vector<1x8x8x128xbf16>,
    %cst_43 = arith.constant dense<0.000000e+00> : vector<128xf32>
    %86 = vector.multi_reduction <add>, %82, %cst_43 [0] : vector<64x128xf32> to vector<128xf32>
    %87 = vector.shape_cast %86 : vector<128xf32> to vector<1x128xf32>
    %88 = vector.shape_cast %87 : vector<1x128xf32> to vector<1x1x128xf32>
    %c0_44 = arith.constant 0 : index
    %c0_45 = arith.constant 0 : index
    %c0_46 = arith.constant 0 : index
    %89 = vector.load %arg6[%c0_44, %c0_45, %c0_46] : memref<1x2x128xf32, #tpu.memory_space<vmem>>, vector<1x1x128xf32>
    tpu.vector_store %arg6[%c0_44, %c0_45, %c0_46], %88 {strides = array<i32>} : memref<1x2x128xf32, #tpu.memory_space<vmem>>, vector<1x1x128xf32>,
    %90 = arith.mulf %82, %82 : vector<64x128xf32>
    %cst_47 = arith.constant dense<0.000000e+00> : vector<128xf32>
    %91 = vector.multi_reduction <add>, %90, %cst_47 [0] : vector<64x128xf32> to vector<128xf32>
    %92 = vector.shape_cast %91 : vector<128xf32> to vector<1x128xf32>
    %93 = vector.shape_cast %92 : vector<1x128xf32> to vector<1x1x128xf32>
    %c0_48 = arith.constant 0 : index
    %c1_49 = arith.constant 1 : index
    %c0_50 = arith.constant 0 : index
    %94 = vector.load %arg6[%c0_48, %c1_49, %c0_50] : memref<1x2x128xf32, #tpu.memory_space<vmem>>, vector<1x1x128xf32>
    tpu.vector_store %arg6[%c0_48, %c1_49, %c0_50], %93 {strides = array<i32>} : memref<1x2x128xf32, #tpu.memory_space<vmem>>, vector<1x1x128xf32>,
    return
  }
  func.func @transform_0(%arg0: i32) -> (i32, i32, i32, i32) {
    %c0_i32 = arith.constant 0 : i32
    %c0_i32_0 = arith.constant 0 : i32
    %c0_i32_1 = arith.constant 0 : i32
    %c0_i32_2 = arith.constant 0 : i32
    return %arg0, %c0_i32, %c0_i32_0, %c0_i32_1 : i32, i32, i32, i32
  }
  func.func @transform_1(%arg0: i32) -> (i32, i32) {
    %c0_i32 = arith.constant 0 : i32
    %c0_i32_0 = arith.constant 0 : i32
    %c0_i32_1 = arith.constant 0 : i32
    return %c0_i32, %c0_i32_0 : i32, i32
  }
  func.func @transform_2(%arg0: i32) -> (i32, i32) {
    %c0_i32 = arith.constant 0 : i32
    %c0_i32_0 = arith.constant 0 : i32
    %c0_i32_1 = arith.constant 0 : i32
    return %c0_i32, %c0_i32_0 : i32, i32
  }
  func.func @transform_3(%arg0: i32) -> (i32, i32, i32) {
    %c0_i32 = arith.constant 0 : i32
    %c0_i32_0 = arith.constant 0 : i32
    %c0_i32_1 = arith.constant 0 : i32
    %c0_i32_2 = arith.constant 0 : i32
    return %c0_i32, %c0_i32_0, %c0_i32_1 : i32, i32, i32
  }
  func.func @transform_4(%arg0: i32) -> (i32, i32, i32, i32) {
    %c0_i32 = arith.constant 0 : i32
    %c0_i32_0 = arith.constant 0 : i32
    %c0_i32_1 = arith.constant 0 : i32
    %c0_i32_2 = arith.constant 0 : i32
    return %arg0, %c0_i32, %c0_i32_0, %c0_i32_1 : i32, i32, i32, i32
  }
  func.func @transform_5(%arg0: i32) -> (i32, i32, i32) {
    %c0_i32 = arith.constant 0 : i32
    %c0_i32_0 = arith.constant 0 : i32
    %c0_i32_1 = arith.constant 0 : i32
    return %arg0, %c0_i32, %c0_i32_0 : i32, i32, i32
  }
}

</mosaic_0001>

<bundles_post_ra>
// kernel: basic_block_forward.7
= control target key start
LH: loop header
LB: loop body
LE: loop exit
PB: predicated region body
PF: predicated region fallthrough
CT: control target
= control target key end

     0   :  { %s524_s15 = smov 0   ;;  %s621_s0 = inlined_call_operand.vmem [shape: bf16[2,8,8,128], index: 0, kind: input, shape index: {}]   ;;  %s622_s1 = inlined_call_operand.vmem [shape: f32[1,128], index: 1, kind: input, shape index: {}]   ;;  %s623_s2 = inlined_call_operand.vmem [shape: f32[1,128], index: 2, kind: input, shape index: {}]   ;;  %s624_s3 = inlined_call_operand.vmem [shape: bf16[2,10,10,128], index: 3, kind: input, shape index: {}]   ;;  %s625_s4 = inlined_call_operand.vmem [shape: f32[2,8,8,128], index: 4, kind: output, shape index: {}]  }
   0x1 LB: > { %s431_s16 = sadd.s32 4294967295, %s497_s15   ;;  %p435_p0 = scmp.ge.s32.totalorder %s497_s15, 1  ;;  %s497_s15 = sphi %s524_s15, %s14_s15  }
   0x2   : > { %p172_p1 = scmp.lt.s32.totalorder %s497_s15, 3 }
   0x4   : > { %p173_p2 = pnand %p435_p0, %p172_p1 }
   0x5   : > { %p203_p3 = scmp.lt.s32.totalorder (!%p173_p2), %s431_s16, 1 }
   0x6   : > { %176 = sbr.rel (%p173_p2) target bundleno = 41 (0x29), region = 36 }
   0xb   : > { %s627_s16 = smov (!%p203_p3, %s431_s16), 1  ;;  %v544_v0 = vld [vmem:[%s622_s1] ss:$0 sm:$0xff]  ;;  %vm307_vm0 = vcmask 1046528  }
   0xc   : > { %s459_s17 = sshll.u32 %s627_s16, 5  ;;  %s480_s18 = smul.u32 80, %s627_s16  ;;  %v549_v1 = vld [vmem:[%s623_s2] ss:$0 sm:$0xff] }
   0xd   : > { %s539_s21 = scalar_lea.vmem %s621_s0, %s459_s17  ;;  %s460_s29 = sshll.u32 %s627_s16, 6 }
   0xe   : > { %s554_s28 = scalar_lea.vmem %s624_s3, %s480_s18  ;;  %v462_v2 = vld [vmem:[%s539_s21] sm:$0xff]   ;;  %v477_v3 = vld [vmem:[%s539_s21 + $0x8] sm:$0xff]   ;;  %v559_v4 = vld [vmem:[%s539_s21 + $0x10] sm:$0xff]   ;;  %s584_s6 = scalar_lea.vmem %s625_s4, %s460_s29 }
   0xf   : > { %v463_v5 = vunpack.c.l.bf16 %v462_v2  ;;  %v441_v6 = vld [vmem:[%s554_s28 + $0x8] sm:$0xf]  ;;  %v442_v7 = vld [vmem:[%s554_s28 + $0xc] sm:$0x1]  ;;  %v464_v8 = vunpack.c.h.bf16 %v462_v2  ;;  %v443_v9 = vld [vmem:[%s554_s28 + $0x10] sm:$0xf]  ;;  %v467_v10 = vunpack.c.l.bf16 %v477_v3  ;;  %v468_v11 = vunpack.c.h.bf16 %v477_v3 }
  0x10   : > { %v251_v12 = vunpack.c.l.bf16 %v441_v6  ;;  %v252_v13 = vunpack.c.l.bf16 %v442_v7  ;;  %v444_v14 = vld [vmem:[%s554_s28 + $0x14] sm:$0x1]  ;;  %v253_v15 = vunpack.c.l.bf16 %v443_v9  ;;  %v445_v16 = vld [vmem:[%s554_s28 + $0x18] sm:$0xf]  ;;  %v446_v17 = vld [vmem:[%s554_s28 + $0x1c] sm:$0x1]  ;;  %v471_v18 = vunpack.c.l.bf16 %v559_v4 }
  0x11   : > { %v272_v19 = vmul.f32 %v544_v0, %v463_v5  ;;  %v254_v20 = vunpack.c.l.bf16 %v444_v14  ;;  %v273_v21 = vmul.f32 %v544_v0, %v464_v8  ;;  %v255_v22 = vunpack.c.l.bf16 %v445_v16  ;;  %v447_v23 = vld [vmem:[%s554_s28 + $0x20] sm:$0xf]  ;;  %v448_v28 = vld [vmem:[%s554_s28 + $0x24] sm:$0x1]  ;;  %v449_v37 = vld [vmem:[%s554_s28 + $0x28] sm:$0xf] }
  0x12   : > { %v308_v24 = vrot.slane %v251_v12, 1  ;;  %v309_v25 = vrot.slane %v252_v13, 1  ;;  %v311_v26 = vrot.slane %v253_v15, 1  ;;  %v256_v27 = vunpack.c.l.bf16 %v446_v17  ;;  %v450_v42 = vld [vmem:[%s554_s28 + $0x2c] sm:$0x1]  ;;  %v479_v57 = vld [vmem:[%s539_s21 + $0x18] sm:$0xff]  }
  0x13   : > { %v283_v29 = vadd.f32 %v549_v1, %v272_v19  ;;  %v284_v30 = vadd.f32 %v549_v1, %v273_v21  ;;  %v312_v31 = vrot.slane %v254_v20, 1  ;;  %v274_v32 = vmul.f32 %v544_v0, %v467_v10  ;;  %v451_v51 = vld [vmem:[%s554_s28 + $0x30] sm:$0xf]  ;;  %v452_v56 = vld [vmem:[%s554_s28 + $0x34] sm:$0x1] }
  0x14   : > { %v310_v33 = vsel %vm307_vm0, %v308_v24, %v309_v25  ;;  %v314_v34 = vrot.slane %v255_v22, 1  ;;  %v315_v35 = vrot.slane %v256_v27, 1  ;;  %v257_v36 = vunpack.c.l.bf16 %v447_v23  ;;  %v453_v58 = vld [vmem:[%s554_s28 + $0x38] sm:$0xf]  ;;  %v454_v63 = vld [vmem:[%s554_s28 + $0x3c] sm:$0x1] }
  0x15   : > { %v340_v38 = vadd.f32 %v310_v33, %v283_v29  ;;  %v313_v39 = vsel %vm307_vm0, %v311_v26, %v312_v31  ;;  %v285_v40 = vadd.f32 %v549_v1, %v274_v32  ;;  %v258_v41 = vunpack.c.l.bf16 %v448_v28  ;;  %v456_v15 = vld [vmem:[%s554_s28 + $0x44] sm:$0x1] }
  0x16   : > { %v341_v43 = vadd.f32 %v313_v39, %v284_v30  ;;  %v316_v44 = vsel %vm307_vm0, %v314_v34, %v315_v35  ;;  %v275_v45 = vmul.f32 %v544_v0, %v468_v11  ;;  %v317_v46 = vrot.slane %v257_v36, 1  ;;  %v455_v11 = vld [vmem:[%s554_s28 + $0x40] sm:$0xf] }
  0x17   : > { %v348_v47 = vmax.f32 %v340_v38, 0.0  ;;  %v342_v48 = vadd.f32 %v316_v44, %v285_v40  ;;  %v318_v49 = vrot.slane %v258_v41, 1  ;;  %v259_v50 = vunpack.c.l.bf16 %v449_v37 }
  0x18   : > { %v349_v52 = vmax.f32 %v341_v43, 0.0  ;;  %v286_v53 = vadd.f32 %v549_v1, %v275_v45  ;;  %v260_v54 = vunpack.c.l.bf16 %v450_v42  ;;  %v276_v55 = vmul.f32 %v544_v0, %v471_v18 }
  0x19   : > { %356 = vst [vmem:[%s584_s6] sm:$0xff] %v348_v47  ;;  %v350_v59 = vmax.f32 %v342_v48, 0.0  ;;  %v319_v60 = vsel %vm307_vm0, %v317_v46, %v318_v49  ;;  %v320_v61 = vrot.slane %v259_v50, 1  ;;  %v472_v62 = vunpack.c.h.bf16 %v559_v4 }
  0x1a   : > { %357 = vst [vmem:[%s584_s6 + $0x8] sm:$0xff] %v349_v52  ;;  %v343_v2 = vadd.f32 %v319_v60, %v286_v53  ;;  %v287_v3 = vadd.f32 %v549_v1, %v276_v55  ;;  %v321_v5 = vrot.slane %v260_v54, 1  ;;  %v261_v6 = vunpack.c.l.bf16 %v451_v51 }
  0x1b   : > { %358 = vst [vmem:[%s584_s6 + $0x10] sm:$0xff] %v350_v59  ;;  %v262_v7 = vunpack.c.l.bf16 %v452_v56  ;;  %v277_v8 = vmul.f32 %v544_v0, %v472_v62  ;;  %v475_v9 = vunpack.c.l.bf16 %v479_v57  ;;  %v263_v10 = vunpack.c.l.bf16 %v453_v58 }
  0x1c   : > { %v351_v12 = vmax.f32 %v343_v2, 0.0  ;;  %v322_v13 = vsel %vm307_vm0, %v320_v61, %v321_v5  ;;  %v323_v4 = vrot.slane %v261_v6, 1  ;;  %v264_v14 = vunpack.c.l.bf16 %v454_v63 }
  0x1d   : > { %v344_v16 = vadd.f32 %v322_v13, %v287_v3  ;;  %v288_v17 = vadd.f32 %v549_v1, %v277_v8  ;;  %v324_v18 = vrot.slane %v262_v7, 1  ;;  %v278_v19 = vmul.f32 %v544_v0, %v475_v9 }
  0x1e   : > { %359 = vst [vmem:[%s584_s6 + $0x18] sm:$0xff] %v351_v12  ;;  %v326_v20 = vrot.slane %v263_v10, 1  ;;  %v327_v21 = vrot.slane %v264_v14, 1  ;;  %v476_v22 = vunpack.c.h.bf16 %v479_v57  ;;  %v265_v23 = vunpack.c.l.bf16 %v455_v11 }
  0x1f   : > { %v352_v24 = vmax.f32 %v344_v16, 0.0  ;;  %v325_v25 = vsel %vm307_vm0, %v323_v4, %v324_v18  ;;  %v289_v26 = vadd.f32 %v549_v1, %v278_v19  ;;  %v266_v27 = vunpack.c.l.bf16 %v456_v15 }
  0x20   : > { %v345_v28 = vadd.f32 %v325_v25, %v288_v17  ;;  %v328_v29 = vsel %vm307_vm0, %v326_v20, %v327_v21  ;;  %v279_v30 = vmul.f32 %v544_v0, %v476_v22  ;;  %v329_v31 = vrot.slane %v265_v23, 1 }
  0x21   : > { %360 = vst [vmem:[%s584_s6 + $0x20] sm:$0xff] %v352_v24  ;;  %v346_v32 = vadd.f32 %v328_v29, %v289_v26  ;;  %v330_v33 = vrot.slane %v266_v27, 1 }
  0x22   : > { %v353_v34 = vmax.f32 %v345_v28, 0.0  ;;  %v290_v35 = vadd.f32 %v549_v1, %v279_v30 }
  0x23   : > { %v354_v36 = vmax.f32 %v346_v32, 0.0  ;;  %v331_v37 = vsel %vm307_vm0, %v329_v31, %v330_v33 }
  0x24   : > { %361 = vst [vmem:[%s584_s6 + $0x28] sm:$0xff] %v353_v34  ;;  %v347_v38 = vadd.f32 %v331_v37, %v290_v35 }
  0x25   : > { %362 = vst [vmem:[%s584_s6 + $0x30] sm:$0xff] %v354_v36 }
  0x26   : > { %v355_v39 = vmax.f32 %v347_v38, 0.0 }
  0x28   : > { %363 = vst [vmem:[%s584_s6 + $0x38] sm:$0xff] %v355_v39 }
  0x29 PF: > { %s14_s15 = sadd.s32 1, %s497_s15  }
  0x2a   : > { %p11_p4 = scmp.ge.s32.totalorder %s14_s15, 4  }
  0x2c   :  { %13 = sbr.rel (!%p11_p4) target bundleno = 1 (0x1), region = 70 }

// kernel: basic_block_forward.5
= control target key start
LH: loop header
LB: loop body
LE: loop exit
PB: predicated region body
PF: predicated region fallthrough
CT: control target
= control target key end

     0   :  { %s845_s18 = smov 0   ;;  %s1001_s0 = inlined_call_operand.vmem [shape: bf16[2,8,8,128], index: 0, kind: input, shape index: {}]   ;;  %s1002_s1 = inlined_call_operand.vmem [shape: f32[1,128], index: 1, kind: input, shape index: {}]   ;;  %s1003_s2 = inlined_call_operand.vmem [shape: f32[1,128], index: 2, kind: input, shape index: {}]   ;;  %s1004_s3 = inlined_call_operand.vmem [shape: bf16[128,128], index: 3, kind: input, shape index: {}]   ;;  %s1005_s4 = inlined_call_operand.vmem [shape: bf16[2,10,10,128], index: 4, kind: output, shape index: {0}]   ;;  %s1006_s5 = inlined_call_operand.vmem [shape: f32[2,2,128], index: 5, kind: output, shape index: {1}]  }
   0x1 LB: > { %s667_s19 = sadd.s32 4294967295, %s812_s18   ;;  %p671_p0 = scmp.ge.s32.totalorder %s812_s18, 1  ;;  %s812_s18 = sphi %s845_s18, %s16_s18  }
   0x2   : > { %p190_p1 = scmp.lt.s32.totalorder %s812_s18, 3 }
   0x4   : > { %p191_p2 = pnand %p671_p0, %p190_p1 }
   0x5   : > { %p222_p3 = scmp.lt.s32.totalorder (!%p191_p2), %s667_s19, 1 }
   0x6   : > { %194 = sbr.rel (%p191_p2) target bundleno = 208 (0xd0), region = 36 }
   0xb   : > { %v750_v0 = vld [vmem:[%s1004_s3 + $0x38] sm:$0xff]  ;;  %v749_v1 = vld [vmem:[%s1004_s3 + $0x30] sm:$0xff]  ;;  %s1012_s19 = smov (!%p222_p3, %s667_s19), 1  ;;  %v748_v2 = vld [vmem:[%s1004_s3 + $0x28] sm:$0xff]  ;;  %v814_v50 = vmov 0   ;;  %vm527_vm0 = vcmask 1043456  }
   0xc   : > { %353 = vmatpush.bf16.msra.mxu0 %v750_v0  ;;  %770 = vmatpush.bf16.msra.mxu1 %v750_v0  ;;  %s742_s24 = sshll.u32 %s1012_s19, 5  ;;  %v747_v4 = vld [vmem:[%s1004_s3 + $0x20] sm:$0xff]  ;;  %v746_v14 = vld [vmem:[%s1004_s3 + $0x18] sm:$0xff]  ;;  %v745_v24 = vld [vmem:[%s1004_s3 + $0x10] sm:$0xff]  ;;  %s794_s21 = smul.u32 80, %s1012_s19  ;;  %vm533_vm2 = vcmask 1040384  }
   0xd   : > { %771 = vmatpush.bf16.msra.mxu2 %v750_v0  ;;  %772 = vmatpush.bf16.msra.mxu3 %v750_v0  ;;  %s226_s29 = scalar_lea.vmem %s1001_s0, %s742_s24  ;;  %v804_v9 = vld [vmem:[%s1002_s1] ss:$0 sm:$0xff]  ;;  %v744_v33 = vld [vmem:[%s1004_s3 + $0x8] sm:$0xff]  ;;  %vm528_vm1 = vsmask.f32 7938  ;;  %s675_s25 = sshll.u32 %s1012_s19, 1 }
   0xe   : > { %v752_v3 = vld [vmem:[%s226_s29] sm:$0xff]   ;;  %v767_v5 = vld [vmem:[%s226_s29 + $0x8] sm:$0xff]   ;;  %v768_v6 = vld [vmem:[%s226_s29 + $0x10] sm:$0xff]   ;;  %s893_s24 = scalar_lea.vmem %s1005_s4, %s794_s21  ;;  %vm534_vm3 = vsmask.f32 256  ;;  %s235_s28 = scalar_lea.vmem %s1006_s5, %s675_s25 }
   0xf   : > { %v769_v7 = vld [vmem:[%s226_s29 + $0x18] sm:$0xff]   ;;  %v753_v8 = vunpack.c.l.bf16 %v752_v3  ;;  %v754_v10 = vunpack.c.h.bf16 %v752_v3  ;;  %v757_v11 = vunpack.c.l.bf16 %v767_v5  ;;  %v758_v12 = vunpack.c.h.bf16 %v767_v5  ;;  %v805_v19 = vld [vmem:[%s1003_s2] ss:$0 sm:$0xff]  ;;  %420 = vst [vmem:[%s893_s24 + $0x8] sm:$0xf] %v814_v50  ;;  %vm915_vm4 = vmand %vm527_vm0, %vm528_vm1 }
  0x10   : > { %354 = vmatpush.bf16.msra.mxu0 %v749_v1  ;;  %773 = vmatpush.bf16.msra.mxu1 %v749_v1  ;;  %v761_v13 = vunpack.c.l.bf16 %v768_v6  ;;  %v762_v15 = vunpack.c.h.bf16 %v768_v6  ;;  %v765_v16 = vunpack.c.l.bf16 %v769_v7  ;;  %v766_v17 = vunpack.c.h.bf16 %v769_v7  ;;  %v743_v41 = vld [vmem:[%s1004_s3] sm:$0xff]  ;;  %421 = vst [vmem:[%s893_s24 + $0xc] sm:$0x1] %v814_v50  ;;  %vm920_vm5 = vmand %vm533_vm2, %vm534_vm3 }
  0x11   : > { %774 = vmatpush.bf16.msra.mxu2 %v749_v1  ;;  %775 = vmatpush.bf16.msra.mxu3 %v749_v1  ;;  %v257_v18 = vmul.f32 %v804_v9, %v753_v8  ;;  %v258_v20 = vmul.f32 %v804_v9, %v754_v10  ;;  %v259_v21 = vmul.f32 %v804_v9, %v757_v11 }
  0x12   : > { %v260_v22 = vmul.f32 %v804_v9, %v758_v12  ;;  %v261_v23 = vmul.f32 %v804_v9, %v761_v13  ;;  %v262_v25 = vmul.f32 %v804_v9, %v762_v15  ;;  %v263_v26 = vmul.f32 %v804_v9, %v765_v16  ;;  %418 = vst [vmem:[%s893_s24] sm:$0xf] %v814_v50 }
  0x13   : > { %v264_v27 = vmul.f32 %v804_v9, %v766_v17  ;;  %v269_v28 = vadd.f32 %v805_v19, %v257_v18  ;;  %v270_v29 = vadd.f32 %v805_v19, %v258_v20  ;;  %v271_v30 = vadd.f32 %v805_v19, %v259_v21  ;;  %419 = vst [vmem:[%s893_s24 + $0x4] sm:$0x1] %v814_v50 }
  0x14   : > { %355 = vmatpush.bf16.msra.mxu0 %v748_v2  ;;  %776 = vmatpush.bf16.msra.mxu1 %v748_v2  ;;  %v272_v31 = vadd.f32 %v805_v19, %v260_v22  ;;  %v273_v32 = vadd.f32 %v805_v19, %v261_v23  ;;  %v274_v34 = vadd.f32 %v805_v19, %v262_v25 }
  0x15   : > { %777 = vmatpush.bf16.msra.mxu2 %v748_v2  ;;  %778 = vmatpush.bf16.msra.mxu3 %v748_v2  ;;  %v275_v35 = vadd.f32 %v805_v19, %v263_v26  ;;  %v276_v36 = vadd.f32 %v805_v19, %v264_v27  ;;  %v277_v37 = vmax.f32 %v269_v28, 0.0  ;;  %v278_v38 = vmax.f32 %v270_v29, 0.0  ;;  %422 = vst [vmem:[%s893_s24 + $0x10] sm:$0xf] %v814_v50 }
  0x16   : > { %v279_v39 = vmax.f32 %v271_v30, 0.0  ;;  %v280_v40 = vmax.f32 %v272_v31, 0.0  ;;  %v281_v42 = vmax.f32 %v273_v32, 0.0  ;;  %v282_v43 = vmax.f32 %v274_v34, 0.0  ;;  %423 = vst [vmem:[%s893_s24 + $0x14] sm:$0x1] %v814_v50 }
  0x17   : > { %v283_v44 = vmax.f32 %v275_v35, 0.0  ;;  %v284_v45 = vmax.f32 %v276_v36, 0.0  ;;  %v285_v46 = vpack.c.bf16 %v278_v38, %v277_v37  ;;  %424 = vst [vmem:[%s893_s24 + $0x18] sm:$0xf] %v814_v50  ;;  %v708_v61 = vld [vmem:[%s893_s24 + $0x8] sm:$0xf] }
  0x18   : > { %356 = vmatpush.bf16.msra.mxu0 %v747_v4  ;;  %779 = vmatpush.bf16.msra.mxu1 %v747_v4  ;;  %v286_v47 = vpack.c.bf16 %v280_v40, %v279_v39  ;;  %v287_v48 = vpack.c.bf16 %v282_v43, %v281_v42  ;;  %425 = vst [vmem:[%s893_s24 + $0x1c] sm:$0x1] %v814_v50  ;;  %v710_v0 = vld [vmem:[%s893_s24 + $0xc] sm:$0x1] }
  0x19   : > { %780 = vmatpush.bf16.msra.mxu2 %v747_v4  ;;  %781 = vmatpush.bf16.msra.mxu3 %v747_v4  ;;  %v288_v49 = vpack.c.bf16 %v284_v45, %v283_v44  ;;  %426 = vst [vmem:[%s893_s24 + $0x20] sm:$0xf] %v814_v50 }
  0x1a   : > { %427 = vst [vmem:[%s893_s24 + $0x24] sm:$0x1] %v814_v50 }
  0x1b   : > { %428 = vst [vmem:[%s893_s24 + $0x28] sm:$0xf] %v814_v50 }
  0x1c   : > { %357 = vmatpush.bf16.msra.mxu0 %v746_v14  ;;  %782 = vmatpush.bf16.msra.mxu1 %v746_v14  ;;  %429 = vst [vmem:[%s893_s24 + $0x2c] sm:$0x1] %v814_v50 }
  0x1d   : > { %783 = vmatpush.bf16.msra.mxu2 %v746_v14  ;;  %784 = vmatpush.bf16.msra.mxu3 %v746_v14  ;;  %430 = vst [vmem:[%s893_s24 + $0x30] sm:$0xf] %v814_v50 }
  0x1e   : > { %431 = vst [vmem:[%s893_s24 + $0x34] sm:$0x1] %v814_v50  ;;  %v716_v1 = vld [vmem:[%s893_s24 + $0x18] sm:$0xf] }
  0x1f   : > { %432 = vst [vmem:[%s893_s24 + $0x38] sm:$0xf] %v814_v50  ;;  %v718_v2 = vld [vmem:[%s893_s24 + $0x1c] sm:$0x1] }
  0x20   : > { %358 = vmatpush.bf16.msra.mxu0 %v745_v24  ;;  %785 = vmatpush.bf16.msra.mxu1 %v745_v24  ;;  %433 = vst [vmem:[%s893_s24 + $0x3c] sm:$0x1] %v814_v50 }
  0x21   : > { %786 = vmatpush.bf16.msra.mxu2 %v745_v24  ;;  %787 = vmatpush.bf16.msra.mxu3 %v745_v24  ;;  %434 = vst [vmem:[%s893_s24 + $0x40] sm:$0xf] %v814_v50 }
  0x22   : > { %435 = vst [vmem:[%s893_s24 + $0x44] sm:$0x1] %v814_v50  ;;  %v724_v24 = vld [vmem:[%s893_s24 + $0x28] sm:$0xf] }
  0x23   : > { %436 = vst [vmem:[%s893_s24 + $0x48] sm:$0xf] %v814_v50  ;;  %v726_v25 = vld [vmem:[%s893_s24 + $0x2c] sm:$0x1] }
  0x24   : > { %359 = vmatpush.bf16.msra.mxu0 %v744_v33  ;;  %788 = vmatpush.bf16.msra.mxu1 %v744_v33  ;;  %437 = vst [vmem:[%s893_s24 + $0x4c] sm:$0x1] %v814_v50 }
  0x25   : > { %789 = vmatpush.bf16.msra.mxu2 %v744_v33  ;;  %790 = vmatpush.bf16.msra.mxu3 %v744_v33 }
  0x26   : > { %v732_v31 = vld [vmem:[%s893_s24 + $0x38] sm:$0xf] }
  0x27   : > { %v734_v34 = vld [vmem:[%s893_s24 + $0x3c] sm:$0x1] }
  0x28   : > { %360 = vmatpush.bf16.msra.mxu0 %v743_v41  ;;  %791 = vmatpush.bf16.msra.mxu1 %v743_v41 }
  0x29   : > { %792 = vmatpush.bf16.msra.mxu2 %v743_v41  ;;  %793 = vmatpush.bf16.msra.mxu3 %v743_v41 }
  0x2b   : > { %361 = vmatmul.bf16.vlgmr.msra.gmra.mxu0 %v285_v46  ;;  %366 = vmatmul.bf16.vlgmr.msra.gmra.mxu1 %v286_v47 }
  0x2c   : > { %371 = vmatmul.bf16.vlgmr.msra.gmra.mxu2 %v287_v48  ;;  %376 = vmatmul.bf16.vlgmr.msra.gmra.mxu3 %v288_v49 }
  0xa8   : > { %v362_v51 = vpop.f32.mrf.mxu0  ;;  %v367_v52 = vpop.f32.mrf.mxu1 }
  0xa9   : > { %v438_v53 = vpack.c.bf16 %v362_v51, %v362_v51  ;;  %v440_v54 = vpack.c.bf16 %v367_v52, %v367_v52  ;;  %v396_v9 = vmul.f32 %v362_v51, %v362_v51  ;;  %v398_v10 = vmul.f32 %v367_v52, %v367_v52 }
  0xab   : > { %v447_v55 = vshrl.u32 %v438_v53, 16  ;;  %v463_v56 = vshrl.u32 %v440_v54, 16  ;;  %v466_v57 = vshll.u32 %v440_v54, 16  ;;  %v450_v60 = vshll.u32 %v438_v53, 16  ;;  %v714_v53 = vld [vmem:[%s893_s24 + $0x14] sm:$0x1] }
  0xad   : > { %v449_v59 = vrot.slane %v447_v55, 7  ;;  %v465_v63 = vrot.slane %v463_v56, 7 }
  0xaf   : > { %v452_v3 = vor.u32 %v450_v60, %v449_v59  ;;  %v453_v4 = vrot.slane %v449_v59, 4  ;;  %v468_v5 = vor.u32 %v466_v57, %v465_v63  ;;  %v469_v6 = vrot.slane %v465_v63, 4  ;;  %v372_v7 = vpop.f32.mrf.mxu2  ;;  %v927_v8 = vpop.f32.mrf.mxu3  ;;  %v722_v60 = vld [vmem:[%s893_s24 + $0x24] sm:$0x1] }
  0xb0   : > { %v442_v11 = vpack.c.bf16 %v372_v7, %v372_v7  ;;  %v444_v12 = vpack.c.bf16 %v927_v8, %v927_v8  ;;  %v364_v13 = vpop.f32.mrf.mxu0  ;;  %v369_v18 = vpop.f32.mrf.mxu1  ;;  %v400_v23 = vmul.f32 %v372_v7, %v372_v7 }
  0xb1   : > { %v531_v14 = vsel %vm915_vm4, %v452_v3, %v708_v61  ;;  %v537_v15 = vsel %vm920_vm5, %v453_v4, %v710_v0  ;;  %v546_v16 = vsel %vm915_vm4, %v468_v5, %v716_v1  ;;  %v549_v17 = vsel %vm920_vm5, %v469_v6, %v718_v2  ;;  %v720_v5 = vld [vmem:[%s893_s24 + $0x20] sm:$0xf] }
  0xb2   : > { %709 = vst [vmem:[%s893_s24 + $0x8] sm:$0xf] %v531_v14  ;;  %v479_v19 = vshrl.u32 %v442_v11, 16  ;;  %v482_v20 = vshll.u32 %v442_v11, 16  ;;  %v495_v21 = vshrl.u32 %v444_v12, 16  ;;  %v498_v22 = vshll.u32 %v444_v12, 16 }
  0xb3   : > { %711 = vst [vmem:[%s893_s24 + $0xc] sm:$0x1] %v537_v15  ;;  %v382_v26 = vadd.f32 %v364_v13, %v362_v51  ;;  %v397_v27 = vmul.f32 %v364_v13, %v364_v13  ;;  %v439_v28 = vpack.c.bf16 %v364_v13, %v364_v13  ;;  %v399_v32 = vmul.f32 %v369_v18, %v369_v18 }
  0xb4   : > { %717 = vst [vmem:[%s893_s24 + $0x18] sm:$0xf] %v546_v16  ;;  %v481_v29 = vrot.slane %v479_v19, 7  ;;  %v497_v30 = vrot.slane %v495_v21, 7  ;;  %v441_v33 = vpack.c.bf16 %v369_v18, %v369_v18  ;;  %v402_v11 = vmul.f32 %v927_v8, %v927_v8 }
  0xb5   : > { %719 = vst [vmem:[%s893_s24 + $0x1c] sm:$0x1] %v549_v17  ;;  %v404_v35 = vadd.f32 %v397_v27, %v396_v9  ;;  %v455_v36 = vshrl.u32 %v439_v28, 16  ;;  %v458_v37 = vshll.u32 %v439_v28, 16  ;;  %v383_v38 = vadd.f32 %v382_v26, %v367_v52  ;;  %v712_v52 = vld [vmem:[%s893_s24 + $0x10] sm:$0xf] }
  0xb6   : > { %v484_v39 = vor.u32 %v482_v20, %v481_v29  ;;  %v485_v40 = vrot.slane %v481_v29, 4  ;;  %v500_v41 = vor.u32 %v498_v22, %v497_v30  ;;  %v501_v42 = vrot.slane %v497_v30, 4  ;;  %v730_v20 = vld [vmem:[%s893_s24 + $0x34] sm:$0x1] }
  0xb7   : > { %v457_v43 = vrot.slane %v455_v36, 7  ;;  %v384_v44 = vadd.f32 %v383_v38, %v369_v18  ;;  %v405_v45 = vadd.f32 %v404_v35, %v398_v10  ;;  %v471_v46 = vshrl.u32 %v441_v33, 16  ;;  %v374_v47 = vpop.f32.mrf.mxu2  ;;  %v379_v1 = vpop.f32.mrf.mxu3  ;;  %v728_v18 = vld [vmem:[%s893_s24 + $0x30] sm:$0xf] }
  0xb8   : > { %v558_v48 = vsel %vm915_vm4, %v484_v39, %v724_v24  ;;  %v561_v49 = vsel %vm920_vm5, %v485_v40, %v726_v25  ;;  %v570_v50 = vsel %vm915_vm4, %v500_v41, %v732_v31  ;;  %v573_v51 = vsel %vm920_vm5, %v501_v42, %v734_v34 }
  0xb9   : > { %725 = vst [vmem:[%s893_s24 + $0x28] sm:$0xf] %v558_v48  ;;  %v460_v54 = vor.u32 %v458_v37, %v457_v43  ;;  %v461_v55 = vrot.slane %v457_v43, 4  ;;  %v406_v56 = vadd.f32 %v405_v45, %v399_v32  ;;  %v473_v57 = vrot.slane %v471_v46, 7  ;;  %v736_v32 = vld [vmem:[%s893_s24 + $0x40] sm:$0xf] }
  0xba   : > { %727 = vst [vmem:[%s893_s24 + $0x2c] sm:$0x1] %v561_v49  ;;  %v474_v59 = vshll.u32 %v441_v33, 16  ;;  %v385_v61 = vadd.f32 %v384_v44, %v372_v7  ;;  %v401_v63 = vmul.f32 %v374_v47, %v374_v47  ;;  %v443_v0 = vpack.c.bf16 %v374_v47, %v374_v47  ;;  %v738_v33 = vld [vmem:[%s893_s24 + $0x44] sm:$0x1] }
  0xbb   : > { %733 = vst [vmem:[%s893_s24 + $0x38] sm:$0xf] %v570_v50  ;;  %v540_v2 = vsel %vm915_vm4, %v460_v54, %v712_v52  ;;  %v543_v3 = vsel %vm920_vm5, %v461_v55, %v714_v53  ;;  %v477_v4 = vrot.slane %v473_v57, 4  ;;  %v407_v6 = vadd.f32 %v406_v56, %v400_v23 }
  0xbc   : > { %735 = vst [vmem:[%s893_s24 + $0x3c] sm:$0x1] %v573_v51  ;;  %v476_v9 = vor.u32 %v474_v59, %v473_v57  ;;  %v386_v7 = vadd.f32 %v385_v61, %v374_v47  ;;  %v487_v10 = vshrl.u32 %v443_v0, 16  ;;  %v445_v14 = vpack.c.bf16 %v379_v1, %v379_v1 }
  0xbd   : > { %713 = vst [vmem:[%s893_s24 + $0x10] sm:$0xf] %v540_v2  ;;  %v555_v12 = vsel %vm920_vm5, %v477_v4, %v722_v60  ;;  %v408_v13 = vadd.f32 %v407_v6, %v401_v63  ;;  %v490_v17 = vshll.u32 %v443_v0, 16  ;;  %v403_v21 = vmul.f32 %v379_v1, %v379_v1 }
  0xbe   : > { %715 = vst [vmem:[%s893_s24 + $0x14] sm:$0x1] %v543_v3  ;;  %v552_v15 = vsel %vm915_vm4, %v476_v9, %v720_v5  ;;  %v489_v16 = vrot.slane %v487_v10, 7  ;;  %v387_v19 = vadd.f32 %v386_v7, %v927_v8  ;;  %v503_v23 = vshrl.u32 %v445_v14, 16 }
  0xbf   : > { %721 = vst [vmem:[%s893_s24 + $0x20] sm:$0xf] %v552_v15  ;;  %v409_v22 = vadd.f32 %v408_v13, %v402_v11  ;;  %v506_v29 = vshll.u32 %v445_v14, 16 }
  0xc0   : > { %723 = vst [vmem:[%s893_s24 + $0x24] sm:$0x1] %v555_v12  ;;  %v492_v24 = vor.u32 %v490_v17, %v489_v16  ;;  %v493_v25 = vrot.slane %v489_v16, 4  ;;  %v388_v26 = vadd.f32 %v387_v19, %v379_v1  ;;  %v505_v28 = vrot.slane %v503_v23, 7 }
  0xc1   : > { %v410_v27 = vadd.f32 %v409_v22, %v403_v21 }
  0xc2   : > { %v564_v8 = vsel %vm915_vm4, %v492_v24, %v728_v18  ;;  %v567_v30 = vsel %vm920_vm5, %v493_v25, %v730_v20  ;;  %v389_v31 = vrot.slane %v388_v26, 4  ;;  %v508_v35 = vor.u32 %v506_v29, %v505_v28 }
  0xc3   : > { %729 = vst [vmem:[%s893_s24 + $0x30] sm:$0xf] %v564_v8  ;;  %v411_v34 = vrot.slane %v410_v27, 4  ;;  %v509_v36 = vrot.slane %v505_v28, 4 }
  0xc4   : > { %731 = vst [vmem:[%s893_s24 + $0x34] sm:$0x1] %v567_v30  ;;  %v390_v37 = vadd.f32 %v389_v31, %v388_v26  ;;  %v576_v39 = vsel %vm915_vm4, %v508_v35, %v736_v32 }
  0xc5   : > { %v412_v38 = vadd.f32 %v411_v34, %v410_v27  ;;  %v579_v40 = vsel %vm920_vm5, %v509_v36, %v738_v33  ;;  %737 = vst [vmem:[%s893_s24 + $0x40] sm:$0xf] %v576_v39 }
  0xc6   : > { %v391_v41 = vrot.slane %v390_v37, 2  ;;  %739 = vst [vmem:[%s893_s24 + $0x44] sm:$0x1] %v579_v40 }
  0xc7   : > { %v413_v42 = vrot.slane %v412_v38, 2 }
  0xc8   : > { %v392_v43 = vadd.f32 %v391_v41, %v390_v37 }
  0xc9   : > { %v414_v44 = vadd.f32 %v413_v42, %v412_v38 }
  0xca   : > { %v393_v45 = vrot.slane %v392_v43, 1 }
  0xcb   : > { %v415_v46 = vrot.slane %v414_v44, 1 }
  0xcc   : > { %v394_v47 = vadd.f32 %v393_v45, %v392_v43 }
  0xcd   : > { %v416_v48 = vadd.f32 %v415_v46, %v414_v44 }
  0xce   : > { %395 = vst [vmem:[%s235_s28] sm:$0x1] %v394_v47 }
  0xcf   : > { %417 = vst [vmem:[%s235_s28 + $0x1] sm:$0x1] %v416_v48 }
  0xd0 PF: > { %s16_s18 = sadd.s32 1, %s812_s18  }
  0xd1   : > { %p13_p4 = scmp.ge.s32.totalorder %s16_s18, 4  }
  0xd3   :  { %15 = sbr.rel (!%p13_p4) target bundleno = 1 (0x1), region = 79 }

// kernel: basic_block_forward.4
= control target key start
LH: loop header
LB: loop body
LE: loop exit
PB: predicated region body
PF: predicated region fallthrough
CT: control target
= control target key end

     0   :  { %s2117_s12 = smov 0   ;;  %s2676_s0 = inlined_call_operand.vmem [shape: bf16[2,10,10,128], index: 0, kind: input, shape index: {}]   ;;  %s2677_s1 = inlined_call_operand.vmem [shape: bf16[9,128,128], index: 1, kind: input, shape index: {}]   ;;  %s2678_s2 = inlined_call_operand.vmem [shape: bf16[2,8,8,128], index: 2, kind: output, shape index: {0}]   ;;  %s2679_s3 = inlined_call_operand.vmem [shape: f32[2,2,128], index: 3, kind: output, shape index: {1}]  }
   0x1 LB: > { %s1531_s13 = sadd.s32 4294967295, %s2095_s12   ;;  %p1535_p0 = scmp.ge.s32.totalorder %s2095_s12, 1  ;;  %s2095_s12 = sphi %s2117_s12, %s14_s12  }
   0x2   : > { %p140_p1 = scmp.lt.s32.totalorder %s2095_s12, 3 }
   0x4   : > { %p141_p2 = pnand %p1535_p0, %p140_p1 }
   0x5   : > { %p168_p3 = scmp.lt.s32.totalorder (!%p141_p2), %s1531_s13, 1 }
   0x6   : > { %144 = sbr.rel (%p141_p2) target bundleno = 346 (0x15a), region = 28 }
   0xb   : > { %v1984_v0 = vld [vmem:[%s2677_s1 + $0x78] sm:$0xff]  ;;  %v1983_v2 = vld [vmem:[%s2677_s1 + $0x70] sm:$0xff]  ;;  %s2685_s13 = smov (!%p168_p3, %s1531_s13), 1  ;;  %v1982_v5 = vld [vmem:[%s2677_s1 + $0x68] sm:$0xff]  ;;  %vm218_vm0 = vsmask.f32 3328 }
   0xc   : > { %v1992_v1 = vld [vmem:[%s2677_s1 + $0xb8] sm:$0xff]  ;;  %2064 = vmatpush.bf16.msra.mxu1 %v1984_v0  ;;  %414 = vmatpush.bf16.msra.mxu0 %v1984_v0  ;;  %v1991_v3 = vld [vmem:[%s2677_s1 + $0xb0] sm:$0xff]  ;;  %s2080_s24 = smul.u32 80, %s2685_s13  ;;  %v1990_v7 = vld [vmem:[%s2677_s1 + $0xa8] sm:$0xff]  ;;  %vm219_vm1 = vsmask.f32 7440 }
   0xd   : > { %668 = vmatpush.bf16.msra.mxu2 %v1992_v1  ;;  %v2000_v4 = vld [vmem:[%s2677_s1 + $0xf8] sm:$0xff]  ;;  %v1999_v6 = vld [vmem:[%s2677_s1 + $0xf0] sm:$0xff]  ;;  %vm552_vm2 = vcmask 1042432   ;;  %v1981_v11 = vld [vmem:[%s2677_s1 + $0x60] sm:$0xff]  ;;  %vm553_vm3 = vcmask 1046532   ;;  %s1539_s20 = sshll.u32 %s2685_s13, 1 }
   0xe   : > { %780 = vmatpush.bf16.msra.mxu3 %v2000_v4  ;;  %s2155_s6 = scalar_lea.vmem %s2676_s0, %s2080_s24  ;;  %v1989_v17 = vld [vmem:[%s2677_s1 + $0xa0] sm:$0xff]  ;;  %v1998_v18 = vld [vmem:[%s2677_s1 + $0xe8] sm:$0xff]  ;;  %v1980_v39 = vld [vmem:[%s2677_s1 + $0x58] sm:$0xff]  ;;  %s181_s23 = scalar_lea.vmem %s2679_s3, %s1539_s20 }
   0xf   : > { %v2158_v8 = vld [vmem:[%s2155_s6 + $0x20] sm:$0xf]  ;;  %v2161_v9 = vld [vmem:[%s2155_s6 + $0x24] sm:$0x1]  ;;  %v2164_v10 = vld [vmem:[%s2155_s6 + $0x28] sm:$0xf] }
  0x10   : > { %2065 = vmatpush.bf16.msra.mxu1 %v1983_v2  ;;  %415 = vmatpush.bf16.msra.mxu0 %v1983_v2  ;;  %v2170_v12 = vld [vmem:[%s2155_s6 + $0x2c] sm:$0x1]  ;;  %v278_v13 = vshrl.u32 %v2158_v8, 16  ;;  %v281_v14 = vshll.u32 %v2158_v8, 16  ;;  %v287_v15 = vshll.u32 %v2161_v9, 16  ;;  %v292_v16 = vshrl.u32 %v2164_v10, 16  ;;  %vm2207_vm4 = vmor %vm218_vm0, %vm219_vm1 }
  0x11   : > { %669 = vmatpush.bf16.msra.mxu2 %v1991_v3  ;;  %v295_v19 = vshll.u32 %v2164_v10, 16  ;;  %v2184_v20 = vld [vmem:[%s2155_s6] sm:$0xf]  ;;  %v301_v24 = vshll.u32 %v2170_v12, 16  ;;  %v183_v25 = vld [vmem:[%s2155_s6 + $0x4] sm:$0x1]  ;;  %vm2213_vm5 = vmor %vm552_vm2, %vm553_vm3 }
  0x12   : > { %781 = vmatpush.bf16.msra.mxu3 %v1999_v6  ;;  %v280_v21 = vrot.slane %v278_v13, 4  ;;  %v283_v22 = vrot.slane %v281_v14, 5  ;;  %v294_v23 = vrot.slane %v292_v16, 4  ;;  %v289_v26 = vrot.slane %v287_v15, 5  ;;  %v2189_v28 = vld [vmem:[%s2155_s6 + $0x8] sm:$0xf] }
  0x13   : > { %v297_v27 = vrot.slane %v295_v19, 5  ;;  %v185_v29 = vld [vmem:[%s2155_s6 + $0xc] sm:$0x1]  ;;  %v222_v31 = vshrl.u32 %v2184_v20, 16  ;;  %v225_v32 = vshll.u32 %v2184_v20, 16  ;;  %v231_v33 = vshll.u32 %v183_v25, 16 }
  0x14   : > { %2066 = vmatpush.bf16.msra.mxu1 %v1982_v5  ;;  %416 = vmatpush.bf16.msra.mxu0 %v1982_v5  ;;  %v284_v30 = vor.u32 %v283_v22, %v280_v21  ;;  %v1997_v35 = vld [vmem:[%s2677_s1 + $0xe0] sm:$0xff]  ;;  %v236_v36 = vshrl.u32 %v2189_v28, 16  ;;  %v239_v37 = vshll.u32 %v2189_v28, 16  ;;  %v245_v38 = vshll.u32 %v185_v29, 16  ;;  %v1988_v44 = vld [vmem:[%s2677_s1 + $0x98] sm:$0xff]  ;;  %v1979_v59 = vld [vmem:[%s2677_s1 + $0x50] sm:$0xff] }
  0x15   : > { %670 = vmatpush.bf16.msra.mxu2 %v1990_v7  ;;  %v298_v34 = vor.u32 %v297_v27, %v294_v23  ;;  %v303_v41 = vrot.slane %v301_v24, 5  ;;  %v224_v42 = vrot.slane %v222_v31, 4  ;;  %v227_v43 = vrot.slane %v225_v32, 5  ;;  %v1996_v56 = vld [vmem:[%s2677_s1 + $0xd8] sm:$0xff]  ;;  %v2223_v58 = vld [vmem:[%s2155_s6 + $0x30] sm:$0xf] }
  0x16   : > { %782 = vmatpush.bf16.msra.mxu3 %v1998_v18  ;;  %v285_v40 = vrot.slane %v284_v30, 4  ;;  %v238_v47 = vrot.slane %v236_v36, 4  ;;  %v241_v48 = vrot.slane %v239_v37, 5  ;;  %v233_v50 = vrot.slane %v231_v33, 5  ;;  %v1987_v0 = vld [vmem:[%s2677_s1 + $0x90] sm:$0xff]  ;;  %v1986_v18 = vld [vmem:[%s2677_s1 + $0x88] sm:$0xff] }
  0x17   : > { %v299_v46 = vrot.slane %v298_v34, 4  ;;  %v228_v49 = vor.u32 %v227_v43, %v224_v42  ;;  %v1620_v52 = vrot.slane %v2184_v20, 9  ;;  %v557_v53 = vrot.slane %v183_v25, 5  ;;  %v2238_v3 = vld [vmem:[%s2155_s6 + $0x38] sm:$0xf]  ;;  %v1995_v16 = vld [vmem:[%s2677_s1 + $0xd0] sm:$0xff] }
  0x18   : > { %2067 = vmatpush.bf16.msra.mxu1 %v1981_v11  ;;  %417 = vmatpush.bf16.msra.mxu0 %v1981_v11  ;;  %v242_v54 = vor.u32 %v241_v48, %v238_v47  ;;  %v247_v55 = vrot.slane %v245_v38, 5  ;;  %v1621_v57 = vrot.slane %v2189_v28, 9  ;;  %v290_v60 = vsel %vm2207_vm4, %v285_v40, %v289_v26  ;;  %v2249_v11 = vld [vmem:[%s2155_s6 + $0x10] sm:$0xf]  ;;  %v2273_v25 = vld [vmem:[%s2155_s6 + $0x34] sm:$0x1] }
  0x19   : > { %671 = vmatpush.bf16.msra.mxu2 %v1989_v17  ;;  %v304_v61 = vsel %vm2207_vm4, %v299_v46, %v303_v41  ;;  %v229_v62 = vrot.slane %v228_v49, 4  ;;  %v561_v63 = vrot.slane %v185_v29, 5  ;;  %v558_v2 = vsel %vm2213_vm5, %v1620_v52, %v557_v53  ;;  %v1978_v17 = vld [vmem:[%s2677_s1 + $0x48] sm:$0xff]  ;;  %v2277_v27 = vld [vmem:[%s2155_s6 + $0x18] sm:$0xf]  ;;  %v1977_v34 = vld [vmem:[%s2677_s1 + $0x40] sm:$0xff] }
  0x1a   : > { %783 = vmatpush.bf16.msra.mxu3 %v1997_v35  ;;  %v243_v1 = vrot.slane %v242_v54, 4  ;;  %v306_v6 = vshrl.u32 %v2223_v58, 16  ;;  %v309_v7 = vshll.u32 %v2223_v58, 16  ;;  %v2251_v13 = vunpack.c.l.b16 %v290_v60  ;;  %v2281_v30 = vld [vmem:[%s2155_s6 + $0x3c] sm:$0x1]  ;;  %v1994_v36 = vld [vmem:[%s2677_s1 + $0xc8] sm:$0xff] }
  0x1b   : > { %v234_v4 = vsel %vm2207_vm4, %v229_v62, %v233_v50  ;;  %v2244_v5 = vsel %vm2213_vm5, %v1621_v57, %v561_v63  ;;  %v2253_v14 = vunpack.c.l.b16 %v304_v61  ;;  %v604_v21 = vunpack.c.l.b16 %v558_v2  ;;  %v2296_v40 = vld [vmem:[%s2155_s6 + $0x1c] sm:$0x1]  ;;  %v1985_v47 = vld [vmem:[%s2677_s1 + $0x80] sm:$0xff] }
  0x1c   : > { %2068 = vmatpush.bf16.msra.mxu1 %v1980_v39  ;;  %418 = vmatpush.bf16.msra.mxu0 %v1980_v39  ;;  %v248_v15 = vsel %vm2207_vm4, %v243_v1, %v247_v55  ;;  %v2266_v19 = vunpack.c.l.b16 %v234_v4  ;;  %v320_v22 = vshrl.u32 %v2238_v3, 16  ;;  %v605_v24 = vunpack.c.l.b16 %v2244_v5  ;;  %v187_v39 = vld [vmem:[%s2155_s6 + $0x14] sm:$0x1]  ;;  %v1976_v46 = vld [vmem:[%s2677_s1 + $0x38] sm:$0xff] }
  0x1d   : > { %672 = vmatpush.bf16.msra.mxu2 %v1988_v44  ;;  %v2269_v23 = vunpack.c.l.b16 %v248_v15  ;;  %v323_v26 = vshll.u32 %v2238_v3, 16  ;;  %v250_v29 = vshrl.u32 %v2249_v11, 16  ;;  %v308_v31 = vrot.slane %v306_v6, 4  ;;  %v2008_v53 = vld [vmem:[%s2677_s1 + $0x138] sm:$0xff] }
  0x1e   : > { %784 = vmatpush.bf16.msra.mxu3 %v1996_v56  ;;  %v311_v32 = vrot.slane %v309_v7, 5  ;;  %v253_v33 = vshll.u32 %v2249_v11, 16  ;;  %v2289_v35 = vpack.c.b16 %v2253_v14, %v2251_v13  ;;  %v322_v37 = vrot.slane %v320_v22, 4  ;;  %v2024_v55 = vld [vmem:[%s2677_s1 + $0x1b8] sm:$0xff]  ;;  %v1975_v7 = vld [vmem:[%s2677_s1 + $0x30] sm:$0xff] }
  0x1f   : > { %v325_v38 = vrot.slane %v323_v26, 5  ;;  %v252_v41 = vrot.slane %v250_v29, 4  ;;  %v264_v43 = vshrl.u32 %v2277_v27, 16  ;;  %v267_v44 = vshll.u32 %v2277_v27, 16  ;;  %v2032_v15 = vld [vmem:[%s2677_s1 + $0x1f8] sm:$0xff] }
  0x20   : > { %2069 = vmatpush.bf16.msra.mxu1 %v1979_v59  ;;  %419 = vmatpush.bf16.msra.mxu0 %v1979_v59  ;;  %v255_v42 = vrot.slane %v253_v33, 5  ;;  %v358_v48 = vpack.c.b16 %v2269_v23, %v2266_v19  ;;  %v612_v49 = vpack.c.b16 %v605_v24, %v604_v21  ;;  %v315_v50 = vshll.u32 %v2273_v25, 16  ;;  %v2023_v21 = vld [vmem:[%s2677_s1 + $0x1b0] sm:$0xff] }
  0x21   : > { %673 = vmatpush.bf16.msra.mxu2 %v1987_v0  ;;  %v329_v52 = vshll.u32 %v2281_v30, 16  ;;  %v312_v54 = vor.u32 %v311_v32, %v308_v31  ;;  %v259_v56 = vshll.u32 %v187_v39, 16  ;;  %v266_v57 = vrot.slane %v264_v43, 4  ;;  %v1993_v0 = vld [vmem:[%s2677_s1 + $0xc0] sm:$0xff]  ;;  %v2006_v43 = vld [vmem:[%s2677_s1 + $0x128] sm:$0xff] }
  0x22   : > { %785 = vmatpush.bf16.msra.mxu3 %v1995_v16  ;;  %v269_v59 = vrot.slane %v267_v44, 5  ;;  %v326_v60 = vor.u32 %v325_v38, %v322_v37  ;;  %v273_v61 = vshll.u32 %v2296_v40, 16  ;;  %v452_v62 = vunpack.c.l.b16 %v2189_v28  ;;  %v2007_v16 = vld [vmem:[%s2677_s1 + $0x130] sm:$0xff]  ;;  %v1974_v37 = vld [vmem:[%s2677_s1 + $0x28] sm:$0xff] }
  0x23   : > { %v453_v63 = vunpack.c.l.b16 %v2249_v11  ;;  %v256_v1 = vor.u32 %v255_v42, %v252_v41  ;;  %v1622_v4 = vrot.slane %v2249_v11, 9  ;;  %v565_v6 = vrot.slane %v187_v39, 5  ;;  %v2031_v42 = vld [vmem:[%s2677_s1 + $0x1f0] sm:$0xff]  ;;  %v2022_v44 = vld [vmem:[%s2677_s1 + $0x1a8] sm:$0xff] }
  0x24   : > { %2070 = vmatpush.bf16.msra.mxu1 %v1978_v17  ;;  %420 = vmatpush.bf16.msra.mxu0 %v1978_v17  ;;  %v270_v2 = vor.u32 %v269_v59, %v266_v57  ;;  %v317_v17 = vrot.slane %v315_v50, 5  ;;  %v313_v22 = vrot.slane %v312_v54, 4  ;;  %v261_v26 = vrot.slane %v259_v56, 5  ;;  %v2005_v50 = vld [vmem:[%s2677_s1 + $0x120] sm:$0xff]  ;;  %v1972_v59 = vld [vmem:[%s2677_s1 + $0x18] sm:$0xff]  ;;  %v2014_v28 = vld [vmem:[%s2677_s1 + $0x168] sm:$0xff] }
  0x25   : > { %674 = vmatpush.bf16.msra.mxu2 %v1986_v18  ;;  %v331_v18 = vrot.slane %v329_v52, 5  ;;  %v566_v19 = vsel %vm2213_vm5, %v1622_v4, %v565_v6  ;;  %v724_v29 = vpack.c.b16 %v453_v63, %v452_v62  ;;  %v327_v32 = vrot.slane %v326_v60, 4  ;;  %v2021_v52 = vld [vmem:[%s2677_s1 + $0x1a0] sm:$0xff]  ;;  %v2004_v60 = vld [vmem:[%s2677_s1 + $0x118] sm:$0xff]  ;;  %v1971_v6 = vld [vmem:[%s2677_s1 + $0x10] sm:$0xff] }
  0x26   : > { %786 = vmatpush.bf16.msra.mxu3 %v1994_v36  ;;  %v606_v31 = vunpack.c.l.b16 %v566_v19  ;;  %v257_v33 = vrot.slane %v256_v1, 4  ;;  %v275_v36 = vrot.slane %v273_v61, 5  ;;  %v1623_v38 = vrot.slane %v2277_v27, 9 }
  0x27   : > { %v569_v39 = vrot.slane %v2296_v40, 5  ;;  %v318_v5 = vsel %vm2207_vm4, %v313_v22, %v317_v17  ;;  %v454_v1 = vunpack.c.l.b16 %v2277_v27  ;;  %v2029_v17 = vld [vmem:[%s2677_s1 + $0x1e0] sm:$0xff]  ;;  %v1624_v19 = vrot.slane %v2158_v8, 9 }
  0x28   : > { %2071 = vmatpush.bf16.msra.mxu1 %v1977_v34  ;;  %421 = vmatpush.bf16.msra.mxu0 %v1977_v34  ;;  %v271_v34 = vrot.slane %v270_v2, 4  ;;  %v2351_v41 = vpack.c.b16 %v606_v31, %v605_v24  ;;  %v332_v24 = vsel %vm2207_vm4, %v327_v32, %v331_v18  ;;  %v262_v40 = vsel %vm2207_vm4, %v257_v33, %v261_v26  ;;  %v1970_v18 = vld [vmem:[%s2677_s1 + $0x8] sm:$0xff]  ;;  %v2028_v32 = vld [vmem:[%s2677_s1 + $0x1d8] sm:$0xff]  ;;  %v2025_v27 = vld [vmem:[%s2677_s1 + $0x1c0] sm:$0xff] }
  0x29   : > { %675 = vmatpush.bf16.msra.mxu2 %v1985_v47  ;;  %v1973_v47 = vld [vmem:[%s2677_s1 + $0x20] sm:$0xff]  ;;  %v2388_v54 = vunpack.c.l.b16 %v332_v24  ;;  %v455_v2 = vunpack.c.l.b16 %v2158_v8  ;;  %v1625_v22 = vrot.slane %v2164_v10, 9  ;;  %v577_v26 = vrot.slane %v2170_v12, 5 }
  0x2a   : > { %787 = vmatpush.bf16.msra.mxu3 %v1993_v0  ;;  %v457_v24 = vunpack.c.l.b16 %v2223_v58 }
  0x2b   : > { %432 = vmatmul.bf16.vlgmr.msra.gmra.mxu1 %v2289_v35  ;;  %422 = vmatmul.bf16.vlgmr.msra.gmra.mxu0 %v358_v48  ;;  %v2375_v48 = vsel %vm2213_vm5, %v1623_v38, %v569_v39  ;;  %v2459_v33 = vsel %vm2213_vm5, %v1625_v22, %v577_v26  ;;  %v2040_v38 = vld [vmem:[%s2677_s1 + $0x238] sm:$0xff]  ;;  %v460_v22 = vpack.c.b16 %v454_v1, %v453_v63  ;;  %v2035_v63 = vld [vmem:[%s2677_s1 + $0x210] sm:$0xff] }
  0x2c   : > { %515 = vmatpush.bf16.msrb.mxu1 %v1976_v46  ;;  %905 = vmatpush.bf16.msrb.mxu0 %v2008_v53  ;;  %v276_v46 = vsel %vm2207_vm4, %v271_v34, %v275_v36  ;;  %v2386_v53 = vunpack.c.l.b16 %v318_v5  ;;  %v607_v57 = vunpack.c.l.b16 %v2375_v48  ;;  %v2016_v34 = vld [vmem:[%s2677_s1 + $0x178] sm:$0xff]  ;;  %v2001_v36 = vld [vmem:[%s2677_s1 + $0x100] sm:$0xff]  ;;  %v456_v5 = vunpack.c.l.b16 %v2164_v10  ;;  %v200_v48 = vld [vmem:[%s2155_s6 + $0x48] sm:$0xf] }
  0x2d   : > { %1127 = vmatpush.bf16.msrb.mxu2 %v2024_v55  ;;  %788 = vmatmul.bf16.vlgmr.msra.gmra.mxu3 %v724_v29  ;;  %v2390_v55 = vunpack.c.l.b16 %v262_v40  ;;  %v2392_v56 = vunpack.c.l.b16 %v276_v46  ;;  %v2019_v29 = vld [vmem:[%s2677_s1 + $0x190] sm:$0xff] }
  0x2e   : > { %676 = vmatmul.bf16.vlgmr.msra.gmra.mxu2 %v612_v49  ;;  %1246 = vmatpush.bf16.msrb.mxu3 %v2032_v15  ;;  %v2030_v49 = vld [vmem:[%s2677_s1 + $0x1e8] sm:$0xff]  ;;  %v2403_v61 = vpack.c.b16 %v2388_v54, %v2386_v53  ;;  %v2413_v4 = vpack.c.b16 %v607_v57, %v606_v31  ;;  %v725_v15 = vpack.c.b16 %v455_v2, %v454_v1  ;;  %v2039_v46 = vld [vmem:[%s2677_s1 + $0x230] sm:$0xff] }
  0x2f   : > { %v2407_v0 = vpack.c.b16 %v2392_v56, %v2390_v55  ;;  %v2002_v31 = vld [vmem:[%s2677_s1 + $0x108] sm:$0xff]  ;;  %v850_v26 = vpack.c.b16 %v2251_v13, %v2392_v56  ;;  %v2009_v56 = vld [vmem:[%s2677_s1 + $0x140] sm:$0xff] }
  0x30   : > { %516 = vmatpush.bf16.msrb.mxu1 %v1975_v7  ;;  %906 = vmatpush.bf16.msrb.mxu0 %v2007_v16  ;;  %v2003_v7 = vld [vmem:[%s2677_s1 + $0x110] sm:$0xff]  ;;  %v2020_v16 = vld [vmem:[%s2677_s1 + $0x198] sm:$0xff]  ;;  %v2010_v13 = vld [vmem:[%s2677_s1 + $0x148] sm:$0xff] }
  0x31   : > { %1128 = vmatpush.bf16.msrb.mxu2 %v2023_v21  ;;  %v573_v21 = vrot.slane %v2161_v9, 5  ;;  %v1969_v9 = vld [vmem:[%s2677_s1] sm:$0xff] }
  0x32   : > { %1247 = vmatpush.bf16.msrb.mxu3 %v2031_v42  ;;  %v609_v42 = vunpack.c.l.b16 %v2459_v33 }
  0x33   : > { %v2455_v12 = vsel %vm2213_vm5, %v1624_v19, %v573_v21  ;;  %v2538_v19 = vld [vmem:[%s2155_s6 + $0x40] sm:$0xf]  ;;  %v2011_v21 = vld [vmem:[%s2677_s1 + $0x150] sm:$0xff] }
  0x34   : > { %517 = vmatpush.bf16.msrb.mxu1 %v1974_v37  ;;  %907 = vmatpush.bf16.msrb.mxu0 %v2006_v43  ;;  %v451_v37 = vunpack.c.l.b16 %v2184_v20  ;;  %v608_v39 = vunpack.c.l.b16 %v2455_v12  ;;  %v2015_v43 = vld [vmem:[%s2677_s1 + $0x170] sm:$0xff]  ;;  %v849_v20 = vpack.c.b16 %v2390_v55, %v2269_v23  ;;  %v2018_v23 = vld [vmem:[%s2677_s1 + $0x188] sm:$0xff]  ;;  %v1627_v55 = vrot.slane %v2238_v3, 9 }
  0x35   : > { %1129 = vmatpush.bf16.msrb.mxu2 %v2022_v44  ;;  %v818_v1 = vshrl.u32 %v2538_v19, 16  ;;  %v1168_v12 = vshll.u32 %v200_v48, 16 }
  0x36   : > { %1248 = vmatpush.bf16.msrb.mxu3 %v2030_v49  ;;  %v459_v44 = vpack.c.b16 %v452_v62, %v451_v37  ;;  %v2486_v40 = vpack.c.b16 %v609_v42, %v608_v39  ;;  %v726_v62 = vpack.c.b16 %v457_v24, %v456_v5  ;;  %v2027_v49 = vld [vmem:[%s2677_s1 + $0x1d0] sm:$0xff]  ;;  %v966_v8 = vpack.c.b16 %v608_v39, %v607_v57 }
  0x37   : > { %v1165_v57 = vshrl.u32 %v200_v48, 16 }
  0x38   : > { %518 = vmatpush.bf16.msrb.mxu1 %v1973_v47  ;;  %908 = vmatpush.bf16.msrb.mxu0 %v2005_v50  ;;  %v2038_v47 = vld [vmem:[%s2677_s1 + $0x228] sm:$0xff]  ;;  %v1626_v50 = vrot.slane %v2223_v58, 9 }
  0x39   : > { %1130 = vmatpush.bf16.msrb.mxu2 %v2021_v52  ;;  %v581_v52 = vrot.slane %v2273_v25, 5  ;;  %v2026_v25 = vld [vmem:[%s2677_s1 + $0x1c8] sm:$0xff]  ;;  %v1167_v39 = vrot.slane %v1165_v57, 4 }
  0x3a   : > { %1249 = vmatpush.bf16.msrb.mxu3 %v2029_v17 }
  0x3b   : > { %437 = vmatmul.bf16.gmra.mxu1 %v2403_v61  ;;  %427 = vmatmul.bf16.gmra.mxu0 %v2407_v0 }
  0x3c   : > { %519 = vmatpush.bf16.msrb.mxu1 %v1972_v59  ;;  %909 = vmatpush.bf16.msrb.mxu0 %v2004_v60  ;;  %v585_v59 = vrot.slane %v2281_v30, 5  ;;  %v2017_v60 = vld [vmem:[%s2677_s1 + $0x180] sm:$0xff] }
  0x3d   : > { %1131 = vmatpush.bf16.msrb.mxu2 %v2020_v16  ;;  %793 = vmatmul.bf16.gmra.mxu3 %v725_v15  ;;  %v2037_v30 = vld [vmem:[%s2677_s1 + $0x220] sm:$0xff]  ;;  %v2012_v16 = vld [vmem:[%s2677_s1 + $0x158] sm:$0xff] }
  0x3e   : > { %681 = vmatmul.bf16.gmra.mxu2 %v2413_v4  ;;  %1250 = vmatpush.bf16.msrb.mxu3 %v2028_v32  ;;  %v2530_v15 = vsel %vm2213_vm5, %v1627_v55, %v585_v59  ;;  %v1917_v59 = vrot.slane %v200_v48, 9 }
  0x40   : > { %520 = vmatpush.bf16.msrb.mxu1 %v1971_v6  ;;  %910 = vmatpush.bf16.msrb.mxu0 %v2003_v7  ;;  %v2013_v6 = vld [vmem:[%s2677_s1 + $0x160] sm:$0xff]  ;;  %v2526_v7 = vsel %vm2213_vm5, %v1626_v50, %v581_v52 }
  0x41   : > { %1132 = vmatpush.bf16.msrb.mxu2 %v2019_v29  ;;  %v610_v17 = vunpack.c.l.b16 %v2526_v7  ;;  %v458_v29 = vunpack.c.l.b16 %v2238_v3  ;;  %v2036_v3 = vld [vmem:[%s2677_s1 + $0x218] sm:$0xff] }
  0x42   : > { %1251 = vmatpush.bf16.msrb.mxu3 %v2027_v49  ;;  %v1076_v49 = vunpack.c.l.b16 %v200_v48 }
  0x44   : > { %521 = vmatpush.bf16.msrb.mxu1 %v1970_v18  ;;  %911 = vmatpush.bf16.msrb.mxu0 %v2002_v31  ;;  %v611_v18 = vunpack.c.l.b16 %v2530_v15  ;;  %v723_v31 = vunpack.c.l.b16 %v2538_v19 }
  0x45   : > { %1133 = vmatpush.bf16.msrb.mxu2 %v2018_v23 }
  0x46   : > { %1252 = vmatpush.bf16.msrb.mxu3 %v2026_v25  ;;  %v2555_v32 = vpack.c.b16 %v611_v18, %v610_v17  ;;  %v727_v11 = vpack.c.b16 %v723_v31, %v458_v29  ;;  %v1077_v52 = vpack.c.b16 %v1076_v49, %v723_v31 }
  0x48   : > { %522 = vmatpush.bf16.msrb.mxu1 %v1969_v9  ;;  %912 = vmatpush.bf16.msrb.mxu0 %v2001_v36  ;;  %v821_v9 = vshll.u32 %v2538_v19, 16  ;;  %v820_v36 = vrot.slane %v818_v1, 4 }
  0x49   : > { %1134 = vmatpush.bf16.msrb.mxu2 %v2017_v60 }
  0x4a   : > { %1253 = vmatpush.bf16.msrb.mxu3 %v2025_v27  ;;  %v823_v37 = vrot.slane %v821_v9, 5 }
  0x4b   : > { %523 = vmatmul.bf16.vlgmr.msrb.gmra.mxu1 %v459_v44  ;;  %913 = vmatmul.bf16.vlgmr.msrb.gmra.mxu0 %v849_v20  ;;  %v851_v44 = vpack.c.b16 %v2386_v53, %v2253_v14  ;;  %v462_v53 = vpack.c.b16 %v458_v29, %v457_v24 }
  0x4c   : > { %1021 = vmatpush.bf16.msra.mxu1 %v2016_v34  ;;  %1356 = vmatpush.bf16.msra.mxu0 %v2040_v38  ;;  %v2034_v34 = vld [vmem:[%s2677_s1 + $0x208] sm:$0xff]  ;;  %v824_v20 = vor.u32 %v823_v37, %v820_v36 }
  0x4d   : > { %798 = vmatmul.bf16.gmra.mxu3 %v726_v62  ;;  %2072 = vmatpush.bf16.msra.mxu2 %v2040_v38  ;;  %v199_v38 = vld [vmem:[%s2155_s6 + $0x44] sm:$0x1] }
  0x4e   : > { %686 = vmatmul.bf16.gmra.mxu2 %v2486_v40  ;;  %v825_v23 = vrot.slane %v824_v20, 4  ;;  %v945_v55 = vrot.slane %v199_v38, 5 }
  0x50   : > { %1022 = vmatpush.bf16.msra.mxu1 %v2015_v43  ;;  %1357 = vmatpush.bf16.msra.mxu0 %v2039_v46  ;;  %v461_v43 = vpack.c.b16 %v456_v5, %v455_v2  ;;  %v201_v5 = vld [vmem:[%s2155_s6 + $0x4c] sm:$0x1]  ;;  %s1968_s6 = sshll.u32 %s2685_s13, 5 }
  0x51   : > { %2073 = vmatpush.bf16.msra.mxu2 %v2039_v46  ;;  %v827_v46 = vshll.u32 %v199_v38, 16  ;;  %v1174_v24 = vshll.u32 %v201_v5, 16  ;;  %s2652_s19 = scalar_lea.vmem %s2678_s2, %s1968_s6 }
  0x53   : > { %v829_v62 = vrot.slane %v827_v46, 5 }
  0x54   : > { %1023 = vmatpush.bf16.msra.mxu1 %v2014_v28  ;;  %1358 = vmatpush.bf16.msra.mxu0 %v2038_v47  ;;  %v2033_v28 = vld [vmem:[%s2677_s1 + $0x200] sm:$0xff] }
  0x55   : > { %2074 = vmatpush.bf16.msra.mxu2 %v2038_v47  ;;  %v830_v10 = vsel %vm2207_vm4, %v825_v23, %v829_v62  ;;  %v1176_v47 = vrot.slane %v1174_v24, 5 }
  0x56   : > { %v848_v14 = vunpack.c.l.b16 %v830_v10 }
  0x58   : > { %1024 = vmatpush.bf16.msra.mxu1 %v2013_v6  ;;  %1359 = vmatpush.bf16.msra.mxu0 %v2037_v30  ;;  %v852_v2 = vpack.c.b16 %v848_v14, %v2388_v54 }
  0x59   : > { %2075 = vmatpush.bf16.msra.mxu2 %v2037_v30 }
  0x5b   : > { %528 = vmatmul.bf16.gmra.mxu1 %v460_v22  ;;  %918 = vmatmul.bf16.gmra.mxu0 %v850_v26 }
  0x5c   : > { %1025 = vmatpush.bf16.msra.mxu1 %v2012_v16  ;;  %1360 = vmatpush.bf16.msra.mxu0 %v2036_v3 }
  0x5d   : > { %803 = vmatmul.bf16.gmra.mxu3 %v727_v11  ;;  %2076 = vmatpush.bf16.msra.mxu2 %v2036_v3 }
  0x5e   : > { %691 = vmatmul.bf16.gmra.mxu2 %v2555_v32 }
  0x60   : > { %1026 = vmatpush.bf16.msra.mxu1 %v2011_v21  ;;  %1361 = vmatpush.bf16.msra.mxu0 %v2035_v63 }
  0x61   : > { %2077 = vmatpush.bf16.msra.mxu2 %v2035_v63 }
  0x64   : > { %1027 = vmatpush.bf16.msra.mxu1 %v2010_v13  ;;  %1362 = vmatpush.bf16.msra.mxu0 %v2034_v34 }
  0x65   : > { %2078 = vmatpush.bf16.msra.mxu2 %v2034_v34 }
  0x68   : > { %1028 = vmatpush.bf16.msra.mxu1 %v2009_v56  ;;  %1363 = vmatpush.bf16.msra.mxu0 %v2033_v28 }
  0x69   : > { %2079 = vmatpush.bf16.msra.mxu2 %v2033_v28 }
  0x6b   : > { %533 = vmatmul.bf16.gmra.mxu1 %v461_v43  ;;  %923 = vmatmul.bf16.gmra.mxu0 %v851_v44 }
  0x6d   : > { %1254 = vmatmul.bf16.vlgmr.msrb.gmra.mxu3 %v2407_v0  ;;  %v1170_v0 = vrot.slane %v1168_v12, 5 }
  0x6e   : > { %1135 = vmatmul.bf16.vlgmr.msrb.gmra.mxu2 %v460_v22 }
  0x6f   : > { %v1171_v58 = vor.u32 %v1170_v0, %v1167_v39 }
  0x71   : > { %v1172_v54 = vrot.slane %v1171_v58, 4 }
  0x7b   : > { %538 = vmatmul.bf16.gmra.mxu1 %v462_v53  ;;  %928 = vmatmul.bf16.gmra.mxu0 %v852_v2 }
  0x7d   : > { %1259 = vmatmul.bf16.gmra.mxu3 %v2289_v35  ;;  %v1177_v35 = vsel %vm2207_vm4, %v1172_v54, %v1176_v47 }
  0x7e   : > { %1140 = vmatmul.bf16.gmra.mxu2 %v461_v43  ;;  %v1195_v50 = vunpack.c.l.b16 %v1177_v35 }
  0x8b   : > { %1029 = vmatmul.bf16.vlgmr.msra.gmra.mxu1 %v2351_v41  ;;  %1364 = vmatmul.bf16.vlgmr.msra.gmra.mxu0 %v2413_v4  ;;  %v1196_v41 = vpack.c.b16 %v1195_v50, %v848_v14  ;;  %v1772_v4 = vrot.slane %v2538_v19, 9 }
  0x8d   : > { %1264 = vmatmul.bf16.gmra.mxu3 %v2403_v61  ;;  %v1286_v61 = vrot.slane %v201_v5, 5  ;;  %v946_v60 = vsel %vm2213_vm5, %v1772_v4, %v945_v55 }
  0x8e   : > { %1145 = vmatmul.bf16.gmra.mxu2 %v462_v53  ;;  %v964_v6 = vunpack.c.l.b16 %v946_v60 }
  0x8f   : > { %v1287_v45 = vsel %vm2213_vm5, %v1917_v59, %v1286_v61 }
  0x90   : > { %v1305_v25 = vunpack.c.l.b16 %v1287_v45  ;;  %v968_v51 = vpack.c.b16 %v964_v6, %v611_v18 }
  0x92   : > { %v1306_v19 = vpack.c.b16 %v1305_v25, %v964_v6 }
  0x9b   : > { %1034 = vmatmul.bf16.gmra.mxu1 %v966_v8  ;;  %1369 = vmatmul.bf16.gmra.mxu0 %v2486_v40  ;;  %v967_v40 = vpack.c.b16 %v610_v17, %v609_v42 }
  0x9d   : > { %1269 = vmatmul.bf16.gmra.mxu3 %v1196_v41 }
  0x9e   : > { %1150 = vmatmul.bf16.gmra.mxu2 %v1077_v52 }
  0xa8   : > { %v433_v30 = vpop.f32.mrf.mxu1  ;;  %v423_v16 = vpop.f32.mrf.mxu0 }
  0xab   : > { %1039 = vmatmul.bf16.gmra.mxu1 %v967_v40  ;;  %1374 = vmatmul.bf16.gmra.mxu0 %v2555_v32 }
  0xae   : > { %1379 = vmatmul.bf16.vlgmr.msra.gmra.mxu2 %v1306_v19 }
  0xb0   : > { %v435_v22 = vpop.f32.mrf.mxu1  ;;  %v425_v26 = vpop.f32.mrf.mxu0 }
  0xb1   : > { %v677_v21 = vpop.f32.mrf.mxu2  ;;  %v789_v29 = vpop.f32.mrf.mxu3 }
  0xb8   : > { %v438_v11 = vpop.f32.mrf.mxu1  ;;  %v428_v33 = vpop.f32.mrf.mxu0 }
  0xb9   : > { %v679_v31 = vpop.f32.mrf.mxu2  ;;  %v2623_v13 = vpop.f32.mrf.mxu3 }
  0xbb   : > { %1044 = vmatmul.bf16.gmra.mxu1 %v968_v51 }
  0xc0   : > { %v440_v7 = vpop.f32.mrf.mxu1  ;;  %v430_v17 = vpop.f32.mrf.mxu0 }
  0xc1   : > { %v682_v42 = vpop.f32.mrf.mxu2  ;;  %v794_v3 = vpop.f32.mrf.mxu3 }
  0xc8   : > { %v524_v32 = vpop.f32.mrf.mxu1  ;;  %v914_v63 = vpop.f32.mrf.mxu0 }
  0xc9   : > { %v684_v27 = vpop.f32.mrf.mxu2  ;;  %v525_v56 = vadd.f32 %v524_v32, %v423_v16  ;;  %v2625_v9 = vpop.f32.mrf.mxu3 }
  0xcb   : > { %v697_v1 = vadd.f32 %v677_v21, %v525_v56 }
  0xcd   : > { %v809_v34 = vadd.f32 %v789_v29, %v697_v1 }
  0xcf   : > { %v934_v15 = vadd.f32 %v914_v63, %v809_v34 }
  0xd0   : > { %v526_v36 = vpop.f32.mrf.mxu1  ;;  %v916_v37 = vpop.f32.mrf.mxu0 }
  0xd1   : > { %v687_v18 = vpop.f32.mrf.mxu2  ;;  %v527_v38 = vadd.f32 %v526_v36, %v425_v26  ;;  %v799_v44 = vpop.f32.mrf.mxu3 }
  0xd3   : > { %v698_v43 = vadd.f32 %v679_v31, %v527_v38 }
  0xd8   : > { %v529_v46 = vpop.f32.mrf.mxu1  ;;  %v919_v28 = vpop.f32.mrf.mxu0 }
  0xd9   : > { %v689_v20 = vpop.f32.mrf.mxu2  ;;  %v530_v23 = vadd.f32 %v529_v46, %v428_v33  ;;  %v2627_v53 = vpop.f32.mrf.mxu3  ;;  %v810_v33 = vadd.f32 %v2623_v13, %v698_v43 }
  0xdb   : > { %v699_v62 = vadd.f32 %v682_v42, %v530_v23 }
  0xdd   : > { %v811_v8 = vadd.f32 %v794_v3, %v699_v62 }
  0xdf   : > { %v936_v10 = vadd.f32 %v919_v28, %v811_v8 }
  0xe0   : > { %v531_v2 = vpop.f32.mrf.mxu1  ;;  %v921_v48 = vpop.f32.mrf.mxu0 }
  0xe1   : > { %v692_v14 = vpop.f32.mrf.mxu2  ;;  %v532_v57 = vadd.f32 %v531_v2, %v430_v17  ;;  %v2629_v24 = vpop.f32.mrf.mxu3 }
  0xe3   : > { %v700_v12 = vadd.f32 %v684_v27, %v532_v57 }
  0xe8   : > { %v534_v0 = vpop.f32.mrf.mxu1  ;;  %v924_v5 = vpop.f32.mrf.mxu0 }
  0xe9   : > { %v694_v39 = vpop.f32.mrf.mxu2  ;;  %v535_v58 = vadd.f32 %v534_v0, %v433_v30  ;;  %v2637_v55 = vpop.f32.mrf.mxu3 }
  0xeb   : > { %v701_v54 = vadd.f32 %v687_v18, %v535_v58 }
  0xed   : > { %v813_v47 = vadd.f32 %v799_v44, %v701_v54 }
  0xef   : > { %v2631_v49 = vadd.f32 %v924_v5, %v813_v47 }
  0xf0   : > { %v536_v50 = vpop.f32.mrf.mxu1  ;;  %v2633_v52 = vpop.f32.mrf.mxu0 }
  0xf1   : > { %v1136_v35 = vpop.f32.mrf.mxu2  ;;  %v537_v41 = vadd.f32 %v536_v50, %v435_v22  ;;  %v1255_v25 = vpop.f32.mrf.mxu3 }
  0xf3   : > { %v2635_v4 = vadd.f32 %v689_v20, %v537_v41  ;;  %v812_v20 = vadd.f32 %v2625_v9, %v700_v12 }
  0xf8   : > { %v539_v61 = vpop.f32.mrf.mxu1  ;;  %v2639_v60 = vpop.f32.mrf.mxu0 }
  0xf9   : > { %v1138_v59 = vpop.f32.mrf.mxu2  ;;  %v540_v45 = vadd.f32 %v539_v61, %v438_v11  ;;  %v1257_v22 = vpop.f32.mrf.mxu3  ;;  %v935_v11 = vadd.f32 %v916_v37, %v810_v33 }
  0xfb   : > { %v2641_v6 = vadd.f32 %v692_v14, %v540_v45  ;;  %v937_v14 = vadd.f32 %v921_v48, %v812_v20 }
 0x100   : > { %v541_v30 = vpop.f32.mrf.mxu1  ;;  %v2643_v16 = vpop.f32.mrf.mxu0 }
 0x101   : > { %v1141_v40 = vpop.f32.mrf.mxu2  ;;  %v542_v19 = vadd.f32 %v541_v30, %v440_v7  ;;  %v1260_v63 = vpop.f32.mrf.mxu3 }
 0x103   : > { %v2645_v21 = vadd.f32 %v694_v39, %v542_v19 }
 0x108   : > { %v1030_v26 = vpop.f32.mrf.mxu1  ;;  %v1365_v29 = vpop.f32.mrf.mxu0 }
 0x109   : > { %v1050_v51 = vadd.f32 %v1030_v26, %v934_v15  ;;  %v1143_v31 = vpop.f32.mrf.mxu2  ;;  %v1262_v23 = vpop.f32.mrf.mxu3 }
 0x10b   : > { %v1156_v42 = vadd.f32 %v1136_v35, %v1050_v51 }
 0x10d   : > { %v1275_v17 = vadd.f32 %v1255_v25, %v1156_v42  ;;  %v814_v25 = vadd.f32 %v2627_v53, %v2635_v4 }
 0x10f   : > { %v1385_v1 = vadd.f32 %v1365_v29, %v1275_v17 }
 0x110   : > { %v1032_v3 = vpop.f32.mrf.mxu1  ;;  %v1367_v27 = vpop.f32.mrf.mxu0 }
 0x111   : > { %v1051_v32 = vadd.f32 %v1032_v3, %v935_v11  ;;  %v1146_v7 = vpop.f32.mrf.mxu2  ;;  %v1423_v36 = vmul.f32 %v1385_v1, %v1385_v1 }
 0x113   : > { %v1157_v56 = vadd.f32 %v1138_v59, %v1051_v32 }
 0x115   : > { %v1276_v34 = vadd.f32 %v1257_v22, %v1157_v56  ;;  %v939_v22 = vadd.f32 %v2633_v52, %v814_v25 }
 0x117   : > { %v1386_v18 = vadd.f32 %v1367_v27, %v1276_v34 }
 0x118   : > { %v1035_v13 = vpop.f32.mrf.mxu1  ;;  %v1370_v15 = vpop.f32.mrf.mxu0 }
 0x119   : > { %v2044_v37 = vpack.c.bf16 %v1386_v18, %v1385_v1  ;;  %v1409_v38 = vadd.f32 %v1386_v18, %v1385_v1  ;;  %v1424_v43 = vmul.f32 %v1386_v18, %v1386_v18  ;;  %v1052_v44 = vadd.f32 %v1035_v13, %v936_v10  ;;  %v1148_v8 = vpop.f32.mrf.mxu2  ;;  %v1265_v10 = vpop.f32.mrf.mxu3 }
 0x11a   : > { %v816_v18 = vadd.f32 %v2637_v55, %v2645_v21 }
 0x11b   : > { %2045 = vst [vmem:[%s2652_s19] sm:$0xff] %v2044_v37   ;;  %v1431_v46 = vadd.f32 %v1424_v43, %v1423_v36  ;;  %v1158_v28 = vadd.f32 %v1141_v40, %v1052_v44 }
 0x11d   : > { %v1277_v62 = vadd.f32 %v1260_v63, %v1158_v28 }
 0x11f   : > { %v1387_v2 = vadd.f32 %v1370_v15, %v1277_v62  ;;  %v941_v15 = vadd.f32 %v2643_v16, %v816_v18 }
 0x120   : > { %v1037_v57 = vpop.f32.mrf.mxu1  ;;  %v1372_v39 = vpop.f32.mrf.mxu0 }
 0x121   : > { %v1410_v0 = vadd.f32 %v1409_v38, %v1387_v2  ;;  %v1425_v5 = vmul.f32 %v1387_v2, %v1387_v2  ;;  %v1053_v58 = vadd.f32 %v1037_v57, %v937_v14  ;;  %v1151_v9 = vpop.f32.mrf.mxu2  ;;  %v1267_v29 = vpop.f32.mrf.mxu3 }
 0x123   : > { %v1432_v54 = vadd.f32 %v1431_v46, %v1425_v5  ;;  %v1159_v47 = vadd.f32 %v1143_v31, %v1053_v58 }
 0x125   : > { %v1278_v35 = vadd.f32 %v1262_v23, %v1159_v47 }
 0x127   : > { %v1388_v50 = vadd.f32 %v1372_v39, %v1278_v35 }
 0x128   : > { %v1040_v12 = vpop.f32.mrf.mxu1  ;;  %v1375_v48 = vpop.f32.mrf.mxu0 }
 0x129   : > { %v2049_v41 = vpack.c.bf16 %v1388_v50, %v1387_v2  ;;  %v1411_v59 = vadd.f32 %v1410_v0, %v1388_v50  ;;  %v1426_v61 = vmul.f32 %v1388_v50, %v1388_v50  ;;  %v1054_v45 = vadd.f32 %v1040_v12, %v2631_v49  ;;  %v1153_v11 = vpop.f32.mrf.mxu2  ;;  %v1270_v34 = vpop.f32.mrf.mxu3 }
 0x12a   : > { %v815_v49 = vadd.f32 %v2629_v24, %v2641_v6 }
 0x12b   : > { %2061 = vst [vmem:[%s2652_s19 + $0x8] sm:$0xff] %v2049_v41   ;;  %v1433_v40 = vadd.f32 %v1432_v54, %v1426_v61  ;;  %v1160_v30 = vadd.f32 %v1146_v7, %v1054_v45 }
 0x12c   : > { %v940_v27 = vadd.f32 %v2639_v60, %v815_v49 }
 0x12d   : > { %v1279_v19 = vadd.f32 %v1265_v10, %v1160_v30 }
 0x12f   : > { %v1389_v26 = vadd.f32 %v1375_v48, %v1279_v19 }
 0x130   : > { %v1042_v51 = vpop.f32.mrf.mxu1  ;;  %v1377_v53 = vpop.f32.mrf.mxu0 }
 0x131   : > { %v1412_v31 = vadd.f32 %v1411_v59, %v1389_v26  ;;  %v1427_v33 = vmul.f32 %v1389_v26, %v1389_v26  ;;  %v1055_v42 = vadd.f32 %v1042_v51, %v939_v22  ;;  %v1380_v24 = vpop.f32.mrf.mxu2  ;;  %v1272_v28 = vpop.f32.mrf.mxu3 }
 0x133   : > { %v1434_v17 = vadd.f32 %v1433_v40, %v1427_v33  ;;  %v1161_v3 = vadd.f32 %v1148_v8, %v1055_v42 }
 0x135   : > { %v1280_v4 = vadd.f32 %v1267_v29, %v1161_v3 }
 0x137   : > { %v1390_v32 = vadd.f32 %v1377_v53, %v1280_v4 }
 0x138   : > { %v1045_v63 = vpop.f32.mrf.mxu1 }
 0x139   : > { %v2054_v52 = vpack.c.bf16 %v1390_v32, %v1389_v26  ;;  %v1413_v56 = vadd.f32 %v1412_v31, %v1390_v32  ;;  %v1428_v1 = vmul.f32 %v1390_v32, %v1390_v32  ;;  %v1056_v7 = vadd.f32 %v1045_v63, %v940_v27  ;;  %v1382_v62 = vpop.f32.mrf.mxu2 }
 0x13b   : > { %2062 = vst [vmem:[%s2652_s19 + $0x10] sm:$0xff] %v2054_v52   ;;  %v1435_v36 = vadd.f32 %v1434_v17, %v1428_v1  ;;  %v1162_v13 = vadd.f32 %v1151_v9, %v1056_v7 }
 0x13d   : > { %v1281_v6 = vadd.f32 %v1270_v34, %v1162_v13 }
 0x13f   : > { %v1391_v37 = vadd.f32 %v1380_v24, %v1281_v6 }
 0x140   : > { %v1047_v60 = vpop.f32.mrf.mxu1 }
 0x141   : > { %v1414_v38 = vadd.f32 %v1413_v56, %v1391_v37  ;;  %v1429_v43 = vmul.f32 %v1391_v37, %v1391_v37  ;;  %v1057_v44 = vadd.f32 %v1047_v60, %v941_v15 }
 0x143   : > { %v1436_v20 = vadd.f32 %v1435_v36, %v1429_v43  ;;  %v1163_v46 = vadd.f32 %v1153_v11, %v1057_v44 }
 0x145   : > { %v1282_v23 = vadd.f32 %v1272_v28, %v1163_v46 }
 0x147   : > { %v1392_v55 = vadd.f32 %v1382_v62, %v1282_v23 }
 0x149   : > { %v2059_v21 = vpack.c.bf16 %v1392_v55, %v1391_v37  ;;  %v1415_v8 = vadd.f32 %v1414_v38, %v1392_v55  ;;  %v1430_v14 = vmul.f32 %v1392_v55, %v1392_v55 }
 0x14b   : > { %2063 = vst [vmem:[%s2652_s19 + $0x18] sm:$0xff] %v2059_v21   ;;  %v1416_v2 = vrot.slane %v1415_v8, 4  ;;  %v1437_v57 = vadd.f32 %v1436_v20, %v1430_v14 }
 0x14d   : > { %v1417_v39 = vadd.f32 %v1416_v2, %v1415_v8  ;;  %v1438_v16 = vrot.slane %v1437_v57, 4 }
 0x14f   : > { %v1418_v0 = vrot.slane %v1417_v39, 2  ;;  %v1439_v5 = vadd.f32 %v1438_v16, %v1437_v57 }
 0x151   : > { %v1419_v58 = vadd.f32 %v1418_v0, %v1417_v39  ;;  %v1440_v54 = vrot.slane %v1439_v5, 2 }
 0x153   : > { %v1420_v47 = vrot.slane %v1419_v58, 1  ;;  %v1441_v35 = vadd.f32 %v1440_v54, %v1439_v5 }
 0x155   : > { %v1421_v10 = vadd.f32 %v1420_v47, %v1419_v58  ;;  %v1442_v50 = vrot.slane %v1441_v35, 1 }
 0x157   : > { %1422 = vst [vmem:[%s181_s23] sm:$0x1] %v1421_v10  ;;  %v1443_v9 = vadd.f32 %v1442_v50, %v1441_v35 }
 0x159   : > { %1444 = vst [vmem:[%s181_s23 + $0x1] sm:$0x1] %v1443_v9 }
 0x15a PF: > { %s14_s12 = sadd.s32 1, %s2095_s12  }
 0x15b   : > { %p11_p4 = scmp.ge.s32.totalorder %s14_s12, 4  }
 0x15d   :  { %13 = sbr.rel (!%p11_p4) target bundleno = 1 (0x1), region = 78 }

// kernel: basic_block_forward.6
= control target key start
LH: loop header
LB: loop body
LE: loop exit
PB: predicated region body
PF: predicated region fallthrough
CT: control target
= control target key end

     0   :  { %s2330_s18 = smov 0   ;;  %s2950_s0 = inlined_call_operand.vmem [shape: bf16[2,10,10,128], index: 0, kind: input, shape index: {}]   ;;  %s2951_s1 = inlined_call_operand.vmem [shape: f32[1,128], index: 1, kind: input, shape index: {}]   ;;  %s2952_s2 = inlined_call_operand.vmem [shape: f32[1,128], index: 2, kind: input, shape index: {}]   ;;  %s2953_s3 = inlined_call_operand.vmem [shape: bf16[9,128,128], index: 3, kind: input, shape index: {}]   ;;  %s2954_s4 = inlined_call_operand.vmem [shape: bf16[2,8,8,128], index: 4, kind: output, shape index: {0}]   ;;  %s2955_s5 = inlined_call_operand.vmem [shape: f32[2,2,128], index: 5, kind: output, shape index: {1}]  }
   0x1 LB: > { %s1728_s19 = sadd.s32 4294967295, %s2296_s18   ;;  %p1732_p0 = scmp.ge.s32.totalorder %s2296_s18, 1  ;;  %s2296_s18 = sphi %s2330_s18, %s16_s18  }
   0x2   : > { %p190_p1 = scmp.lt.s32.totalorder %s2296_s18, 3 }
   0x4   : > { %p191_p2 = pnand %p1732_p0, %p190_p1 }
   0x5   : > { %p222_p3 = scmp.lt.s32.totalorder (!%p191_p2), %s1728_s19, 1 }
   0x6   : > { %194 = sbr.rel (%p191_p2) target bundleno = 352 (0x160), region = 36 }
   0xb   : > { %v2181_v0 = vld [vmem:[%s2953_s3 + $0x78] sm:$0xff]  ;;  %v344_v1 = vlaneseq  ;;  %v2180_v3 = vld [vmem:[%s2953_s3 + $0x70] sm:$0xff]  ;;  %s2961_s19 = smov (!%p222_p3, %s1728_s19), 1  ;;  %v2298_v4 = vmov 0   ;;  %v2179_v10 = vld [vmem:[%s2953_s3 + $0x68] sm:$0xff]  ;;  %vm749_vm4 = vcmask 1042432  }
   0xc   : > { %v2189_v2 = vld [vmem:[%s2953_s3 + $0xb8] sm:$0xff]  ;;  %2261 = vmatpush.bf16.msra.mxu1 %v2181_v0  ;;  %611 = vmatpush.bf16.msra.mxu0 %v2181_v0  ;;  %v421_v5 = vrot.slane %v2298_v4, 4  ;;  %v2188_v6 = vld [vmem:[%s2953_s3 + $0xb0] sm:$0xff]  ;;  %v424_v9 = vrot.slane %v2298_v4, 5  ;;  %s2277_s7 = smul.u32 80, %s2961_s19  ;;  %v2187_v14 = vld [vmem:[%s2953_s3 + $0xa8] sm:$0xff] }
   0xd   : > { %865 = vmatpush.bf16.msra.mxu2 %v2189_v2  ;;  %v2197_v7 = vld [vmem:[%s2953_s3 + $0xf8] sm:$0xff]  ;;  %v2355_v8 = vshrl.u32 %v344_v1, 7  ;;  %vm415_vm0 = vsmask.f32 3328  ;;  %v2196_v11 = vld [vmem:[%s2953_s3 + $0xf0] sm:$0xff]  ;;  %v2178_v24 = vld [vmem:[%s2953_s3 + $0x60] sm:$0xff] }
   0xe   : > { %977 = vmatpush.bf16.msra.mxu3 %v2197_v7  ;;  %vm416_vm1 = vsmask.f32 7440  ;;  %v425_v13 = vor.u32 %v424_v9, %v421_v5  ;;  %s2373_s14 = scalar_lea.vmem %s2950_s0, %s2277_s7  ;;  %v2378_v15 = vld [vmem:[%s2951_s1] ss:$0 sm:$0xff]  ;;  %v2195_v25 = vld [vmem:[%s2953_s3 + $0xe8] sm:$0xff]  ;;  %vm750_vm5 = vcmask 1046532  }
   0xf   : > { %v2365_v12 = vadd.s32 8, %v2355_v8  ;;  %v244_v16 = vld [vmem:[%s2373_s14 + $0x20] sm:$0xf]  ;;  %v245_v17 = vld [vmem:[%s2373_s14 + $0x24] sm:$0x1]  ;;  %vm347_vm2 = vcmp.ge.s32.totalorder %v2355_v8, 1  ;;  %vm2405_vm6 = vmor %vm415_vm0, %vm416_vm1 }
  0x10   : > { %2262 = vmatpush.bf16.msra.mxu1 %v2180_v3  ;;  %612 = vmatpush.bf16.msra.mxu0 %v2180_v3  ;;  %v246_v18 = vld [vmem:[%s2373_s14 + $0x28] sm:$0xf]  ;;  %v247_v19 = vld [vmem:[%s2373_s14 + $0x2c] sm:$0x1]  ;;  %v264_v20 = vunpack.c.l.bf16 %v244_v16  ;;  %v265_v21 = vunpack.c.l.bf16 %v245_v17  ;;  %v2387_v23 = vld [vmem:[%s2952_s2] ss:$0 sm:$0xff] }
  0x11   : > { %866 = vmatpush.bf16.msra.mxu2 %v2188_v6  ;;  %v266_v22 = vunpack.c.l.bf16 %v246_v18  ;;  %v267_v26 = vunpack.c.l.bf16 %v247_v19  ;;  %vm354_vm3 = vcmp.le.s32.totalorder %v2365_v12, 8  ;;  %v426_v27 = vrot.slane %v425_v13, 4  ;;  %v238_v34 = vld [vmem:[%s2373_s14 + $0x8] sm:$0xf]  ;;  %v239_v35 = vld [vmem:[%s2373_s14 + $0xc] sm:$0x1]  ;;  %vm2481_vm7 = vmor %vm749_vm4, %vm750_vm5 }
  0x12   : > { %978 = vmatpush.bf16.msra.mxu3 %v2196_v11  ;;  %v2299_v28 = vmov 0.0|0.0   ;;  %v289_v30 = vmul.f32 %v2378_v15, %v264_v20  ;;  %v290_v31 = vmul.f32 %v2378_v15, %v265_v21  ;;  %v2186_v37 = vld [vmem:[%s2953_s3 + $0xa0] sm:$0xff]  ;;  %v258_v39 = vunpack.c.l.bf16 %v238_v34  ;;  %v2177_v53 = vld [vmem:[%s2953_s3 + $0x58] sm:$0xff]  ;;  %v2184_v16 = vld [vmem:[%s2953_s3 + $0x90] sm:$0xff]  ;;  %s2165_s10 = sshll.u32 %s2961_s19, 5  ;;  %s1736_s15 = sshll.u32 %s2961_s19, 1 }
  0x13   : > { %v2398_v29 = vrot.slane %v2299_v28, 9  ;;  %v291_v32 = vmul.f32 %v2378_v15, %v266_v22  ;;  %v2412_v36 = vrot.slane %v2299_v28, 5  ;;  %v292_v38 = vmul.f32 %v2378_v15, %v267_v26  ;;  %v252_v46 = vld [vmem:[%s2373_s14 + $0x40] sm:$0xf]  ;;  %v253_v47 = vld [vmem:[%s2373_s14 + $0x44] sm:$0x1]  ;;  %s2927_s13 = scalar_lea.vmem %s2954_s4, %s2165_s10  ;;  %s235_s20 = scalar_lea.vmem %s2955_s5, %s1736_s15 }
  0x14   : > { %2263 = vmatpush.bf16.msra.mxu1 %v2179_v10  ;;  %613 = vmatpush.bf16.msra.mxu0 %v2179_v10  ;;  %v259_v40 = vunpack.c.l.bf16 %v239_v35  ;;  %v431_v41 = vsel %vm2405_vm6, %v426_v27, %v424_v9  ;;  %v312_v42 = vadd.f32 %v2387_v23, %v289_v30  ;;  %v313_v43 = vadd.f32 %v2387_v23, %v290_v31  ;;  %v2194_v49 = vld [vmem:[%s2953_s3 + $0xe0] sm:$0xff]  ;;  %v2185_v58 = vld [vmem:[%s2953_s3 + $0x98] sm:$0xff]  ;;  %v2176_v9 = vld [vmem:[%s2953_s3 + $0x50] sm:$0xff] }
  0x15   : > { %867 = vmatpush.bf16.msra.mxu2 %v2187_v14  ;;  %v314_v44 = vadd.f32 %v2387_v23, %v291_v32  ;;  %v2423_v45 = vunpack.c.l.b16 %v431_v41  ;;  %v315_v48 = vadd.f32 %v2387_v23, %v292_v38  ;;  %v283_v50 = vmul.f32 %v2378_v15, %v258_v39  ;;  %v2193_v7 = vld [vmem:[%s2953_s3 + $0xd8] sm:$0xff]  ;;  %v2192_v34 = vld [vmem:[%s2953_s3 + $0xd0] sm:$0xff]  ;;  %v2175_v35 = vld [vmem:[%s2953_s3 + $0x48] sm:$0xff] }
  0x16   : > { %979 = vmatpush.bf16.msra.mxu3 %v2195_v25  ;;  %v284_v51 = vmul.f32 %v2378_v15, %v259_v40  ;;  %v272_v52 = vunpack.c.l.bf16 %v252_v46  ;;  %v332_v54 = vmax.f32 %v312_v42, 0.0  ;;  %v333_v55 = vmax.f32 %v313_v43, 0.0  ;;  %v2183_v42 = vld [vmem:[%s2953_s3 + $0x88] sm:$0xff]  ;;  %v2228_v8 = vld [vmem:[%s2953_s3 + $0x1f0] sm:$0xff]  ;;  %v2218_v12 = vld [vmem:[%s2953_s3 + $0x1a0] sm:$0xff] }
  0x17   : > { %v334_v56 = vmax.f32 %v314_v44, 0.0  ;;  %v273_v57 = vunpack.c.l.bf16 %v253_v47  ;;  %v335_v59 = vmax.f32 %v315_v48, 0.0  ;;  %v306_v60 = vadd.f32 %v2387_v23, %v283_v50  ;;  %v2232_v33 = vld [vmem:[%s2953_s3 + $0x210] sm:$0xff] }
  0x18   : > { %2264 = vmatpush.bf16.msra.mxu1 %v2178_v24  ;;  %614 = vmatpush.bf16.msra.mxu0 %v2178_v24  ;;  %v307_v61 = vadd.f32 %v2387_v23, %v284_v51  ;;  %v297_v62 = vmul.f32 %v2378_v15, %v272_v52  ;;  %v367_v63 = vsel %vm347_vm2, %v332_v54, 0.0  ;;  %v368_v0 = vsel %vm354_vm3, %v333_v55, 0.0  ;;  %v2191_v55 = vld [vmem:[%s2953_s3 + $0xc8] sm:$0xff] }
  0x19   : > { %868 = vmatpush.bf16.msra.mxu2 %v2186_v37  ;;  %v369_v1 = vsel %vm347_vm2, %v334_v56, 0.0  ;;  %v298_v2 = vmul.f32 %v2378_v15, %v273_v57  ;;  %v370_v3 = vsel %vm354_vm3, %v335_v59, 0.0  ;;  %v2451_v4 = vpack.c.bf16 %v367_v63, %v367_v63  ;;  %v2173_v56 = vld [vmem:[%s2953_s3 + $0x38] sm:$0xff] }
  0x1a   : > { %v2453_v5 = vpack.c.bf16 %v368_v0, %v368_v0  ;;  %v2455_v6 = vpack.c.bf16 %v369_v1, %v369_v1  ;;  %980 = vmatpush.bf16.msra.mxu3 %v2194_v49  ;;  %v2463_v10 = vpack.c.bf16 %v370_v3, %v370_v3  ;;  %v326_v11 = vmax.f32 %v306_v60, 0.0 }
  0x1b   : > { %v327_v13 = vmax.f32 %v307_v61, 0.0  ;;  %v320_v14 = vadd.f32 %v2387_v23, %v297_v62  ;;  %v475_v17 = vshrl.u32 %v2451_v4, 16  ;;  %v478_v18 = vshll.u32 %v2451_v4, 16  ;;  %v2182_v61 = vld [vmem:[%s2953_s3 + $0x80] sm:$0xff]  ;;  %v2205_v62 = vld [vmem:[%s2953_s3 + $0x138] sm:$0xff] }
  0x1c   : > { %2265 = vmatpush.bf16.msra.mxu1 %v2177_v53  ;;  %615 = vmatpush.bf16.msra.mxu0 %v2177_v53  ;;  %v484_v19 = vshll.u32 %v2453_v5, 16  ;;  %v489_v20 = vshrl.u32 %v2455_v6, 16  ;;  %v492_v21 = vshll.u32 %v2455_v6, 16  ;;  %v498_v22 = vshll.u32 %v2463_v10, 16 }
  0x1d   : > { %869 = vmatpush.bf16.msra.mxu2 %v2185_v58  ;;  %v361_v24 = vsel %vm347_vm2, %v326_v11, 0.0  ;;  %v362_v25 = vsel %vm354_vm3, %v327_v13, 0.0  ;;  %v477_v27 = vrot.slane %v475_v17, 4  ;;  %v480_v30 = vrot.slane %v478_v18, 5  ;;  %v249_v13 = vld [vmem:[%s2373_s14 + $0x34] sm:$0x1] }
  0x1e   : > { %v486_v31 = vrot.slane %v484_v19, 5  ;;  %v491_v32 = vrot.slane %v489_v20, 4  ;;  %981 = vmatpush.bf16.msra.mxu3 %v2193_v7  ;;  %v494_v37 = vrot.slane %v492_v21, 5  ;;  %v500_v38 = vrot.slane %v498_v22, 5  ;;  %v2221_v21 = vld [vmem:[%s2953_s3 + $0x1b8] sm:$0xff] }
  0x1f   : > { %v2491_v39 = vpack.c.bf16 %v361_v24, %v361_v24  ;;  %v382_v40 = vpack.c.bf16 %v362_v25, %v362_v25  ;;  %v481_v41 = vor.u32 %v480_v30, %v477_v27  ;;  %v321_v43 = vadd.f32 %v2387_v23, %v298_v2  ;;  %v248_v2 = vld [vmem:[%s2373_s14 + $0x30] sm:$0xf]  ;;  %v2190_v30 = vld [vmem:[%s2953_s3 + $0xc0] sm:$0xff] }
  0x20   : > { %2266 = vmatpush.bf16.msra.mxu1 %v2176_v9  ;;  %616 = vmatpush.bf16.msra.mxu0 %v2176_v9  ;;  %v340_v44 = vmax.f32 %v320_v14, 0.0  ;;  %v755_v46 = vsel %vm2481_vm7, %v2398_v29, %v2412_v36  ;;  %v495_v47 = vor.u32 %v494_v37, %v491_v32  ;;  %v2174_v29 = vld [vmem:[%s2953_s3 + $0x40] sm:$0xff]  ;;  %v250_v14 = vld [vmem:[%s2373_s14 + $0x38] sm:$0xf]  ;;  %v268_v27 = vunpack.c.l.bf16 %v248_v2  ;;  %v2172_v32 = vld [vmem:[%s2953_s3 + $0x30] sm:$0xff] }
  0x21   : > { %870 = vmatpush.bf16.msra.mxu2 %v2184_v16  ;;  %v433_v48 = vshrl.u32 %v2491_v39, 16  ;;  %v436_v49 = vshll.u32 %v2491_v39, 16  ;;  %v442_v50 = vshll.u32 %v382_v40, 16  ;;  %v482_v51 = vrot.slane %v481_v41, 4  ;;  %v251_v16 = vld [vmem:[%s2373_s14 + $0x3c] sm:$0x1] }
  0x22   : > { %v341_v52 = vmax.f32 %v321_v43, 0.0  ;;  %v375_v53 = vsel %vm347_vm2, %v340_v44, 0.0  ;;  %v1818_v54 = vrot.slane %v2491_v39, 9  ;;  %982 = vmatpush.bf16.msra.mxu3 %v2192_v34  ;;  %v496_v36 = vrot.slane %v495_v47, 4  ;;  %v2204_v44 = vld [vmem:[%s2953_s3 + $0x130] sm:$0xff] }
  0x23   : > { %v435_v57 = vrot.slane %v433_v48, 4  ;;  %v438_v58 = vrot.slane %v436_v49, 5  ;;  %v444_v59 = vrot.slane %v442_v50, 5  ;;  %v487_v60 = vsel %vm2405_vm6, %v482_v51, %v486_v31  ;;  %v242_v47 = vld [vmem:[%s2373_s14 + $0x18] sm:$0xf] }
  0x24   : > { %2267 = vmatpush.bf16.msra.mxu1 %v2175_v35  ;;  %617 = vmatpush.bf16.msra.mxu0 %v2175_v35  ;;  %v376_v63 = vsel %vm354_vm3, %v341_v52, 0.0  ;;  %v2525_v0 = vpack.c.bf16 %v375_v53, %v375_v53  ;;  %v758_v1 = vrot.slane %v382_v40, 5  ;;  %v501_v3 = vsel %vm2405_vm6, %v496_v36, %v500_v38  ;;  %v240_v38 = vld [vmem:[%s2373_s14 + $0x10] sm:$0xf]  ;;  %v241_v40 = vld [vmem:[%s2373_s14 + $0x14] sm:$0x1] }
  0x25   : > { %871 = vmatpush.bf16.msra.mxu2 %v2183_v42  ;;  %v2530_v7 = vunpack.c.l.b16 %v487_v60  ;;  %v439_v9 = vor.u32 %v438_v58, %v435_v57  ;;  %v2532_v11 = vpack.c.bf16 %v376_v63, %v376_v63  ;;  %v2537_v17 = vunpack.c.l.b16 %v501_v3  ;;  %v243_v52 = vld [vmem:[%s2373_s14 + $0x1c] sm:$0x1]  ;;  %v2220_v53 = vld [vmem:[%s2953_s3 + $0x1b0] sm:$0xff]  ;;  %v2171_v58 = vld [vmem:[%s2953_s3 + $0x28] sm:$0xff] }
  0x26   : > { %v2541_v18 = vsel %vm2481_vm7, %v1818_v54, %v758_v1  ;;  %v801_v19 = vunpack.c.l.b16 %v755_v46  ;;  %v1969_v20 = vrot.slane %v2525_v0, 9  ;;  %983 = vmatpush.bf16.msra.mxu3 %v2191_v55  ;;  %v269_v34 = vunpack.c.l.bf16 %v249_v13  ;;  %v2229_v54 = vld [vmem:[%s2953_s3 + $0x1f8] sm:$0xff] }
  0x27   : > { %v440_v22 = vrot.slane %v439_v9, 4  ;;  %v802_v24 = vunpack.c.l.b16 %v2541_v18  ;;  %v1142_v25 = vrot.slane %v2532_v11, 5  ;;  %v2554_v31 = vpack.c.b16 %v2537_v17, %v2530_v7 }
  0x28   : > { %2268 = vmatpush.bf16.msra.mxu1 %v2174_v29  ;;  %618 = vmatpush.bf16.msra.mxu0 %v2174_v29  ;;  %v270_v35 = vunpack.c.l.bf16 %v250_v14  ;;  %v271_v37 = vunpack.c.l.bf16 %v251_v16  ;;  %v293_v46 = vmul.f32 %v2378_v15, %v268_v27  ;;  %v294_v50 = vmul.f32 %v2378_v15, %v269_v34 }
  0x29   : > { %872 = vmatpush.bf16.msra.mxu2 %v2182_v61  ;;  %v445_v41 = vsel %vm2405_vm6, %v440_v22, %v444_v59  ;;  %v809_v42 = vpack.c.b16 %v802_v24, %v801_v19  ;;  %v2567_v43 = vsel %vm2481_vm7, %v1969_v20, %v1142_v25  ;;  %v260_v36 = vunpack.c.l.bf16 %v240_v38  ;;  %v2170_v25 = vld [vmem:[%s2953_s3 + $0x20] sm:$0xff] }
  0x2a   : > { %v2575_v48 = vunpack.c.l.b16 %v445_v41  ;;  %v1161_v49 = vunpack.c.l.b16 %v2567_v43  ;;  %v295_v51 = vmul.f32 %v2378_v15, %v270_v35  ;;  %v296_v55 = vmul.f32 %v2378_v15, %v271_v37  ;;  %984 = vmatpush.bf16.msra.mxu3 %v2190_v30  ;;  %v2219_v35 = vld [vmem:[%s2953_s3 + $0x1a8] sm:$0xff] }
  0x2b   : > { %629 = vmatmul.bf16.vlgmr.msra.gmra.mxu1 %v2554_v31  ;;  %v316_v29 = vadd.f32 %v2387_v23, %v293_v46  ;;  %v317_v60 = vadd.f32 %v2387_v23, %v294_v50  ;;  %v262_v2 = vunpack.c.l.bf16 %v242_v47  ;;  %v263_v3 = vunpack.c.l.bf16 %v243_v52 }
  0x2c   : > { %712 = vmatpush.bf16.msrb.mxu1 %v2173_v56  ;;  %1102 = vmatpush.bf16.msrb.mxu0 %v2205_v62  ;;  %v261_v56 = vunpack.c.l.bf16 %v241_v40  ;;  %v555_v57 = vpack.c.b16 %v2575_v48, %v2423_v45  ;;  %v2596_v59 = vpack.c.b16 %v801_v19, %v1161_v49  ;;  %v318_v61 = vadd.f32 %v2387_v23, %v295_v51  ;;  %v2203_v62 = vld [vmem:[%s2953_s3 + $0x128] sm:$0xff]  ;;  %v2202_v40 = vld [vmem:[%s2953_s3 + $0x120] sm:$0xff] }
  0x2d   : > { %1324 = vmatpush.bf16.msrb.mxu2 %v2221_v21  ;;  %v319_v63 = vadd.f32 %v2387_v23, %v296_v55  ;;  %v336_v1 = vmax.f32 %v316_v29, 0.0  ;;  %v337_v9 = vmax.f32 %v317_v60, 0.0  ;;  %v285_v14 = vmul.f32 %v2378_v15, %v260_v36  ;;  %v2169_v36 = vld [vmem:[%s2953_s3 + $0x18] sm:$0xff] }
  0x2e   : > { %873 = vmatmul.bf16.vlgmr.msra.gmra.mxu2 %v809_v42  ;;  %1443 = vmatpush.bf16.msrb.mxu3 %v2229_v54  ;;  %v338_v13 = vmax.f32 %v318_v61, 0.0  ;;  %v286_v16 = vmul.f32 %v2378_v15, %v261_v56  ;;  %v287_v21 = vmul.f32 %v2378_v15, %v262_v2  ;;  %v288_v22 = vmul.f32 %v2378_v15, %v263_v3 }
  0x2f   : > { %619 = vmatmul.bf16.vlgmr.msra.gmra.mxu0 %v555_v57  ;;  %v339_v19 = vmax.f32 %v319_v63, 0.0  ;;  %v371_v20 = vsel %vm347_vm2, %v336_v1, 0.0  ;;  %v372_v27 = vsel %vm354_vm3, %v337_v9, 0.0  ;;  %v308_v34 = vadd.f32 %v2387_v23, %v285_v14 }
  0x30   : > { %713 = vmatpush.bf16.msrb.mxu1 %v2172_v32  ;;  %1103 = vmatpush.bf16.msrb.mxu0 %v2204_v44  ;;  %v373_v30 = vsel %vm347_vm2, %v338_v13, 0.0  ;;  %v2617_v32 = vpack.c.bf16 %v371_v20, %v371_v20  ;;  %v2625_v37 = vpack.c.bf16 %v372_v27, %v372_v27  ;;  %v309_v41 = vadd.f32 %v2387_v23, %v286_v16 }
  0x31   : > { %1325 = vmatpush.bf16.msrb.mxu2 %v2220_v53  ;;  %v374_v15 = vsel %vm354_vm3, %v339_v19, 0.0  ;;  %v2627_v38 = vpack.c.bf16 %v373_v30, %v373_v30  ;;  %v310_v47 = vadd.f32 %v2387_v23, %v287_v21  ;;  %v311_v53 = vadd.f32 %v2387_v23, %v288_v22  ;;  %v2168_v19 = vld [vmem:[%s2953_s3 + $0x10] sm:$0xff] }
  0x32   : > { %v2633_v42 = vpack.c.bf16 %v374_v15, %v374_v15  ;;  %v503_v44 = vshrl.u32 %v2617_v32, 16  ;;  %v506_v46 = vshll.u32 %v2617_v32, 16  ;;  %v512_v50 = vshll.u32 %v2625_v37, 16  ;;  %1444 = vmatpush.bf16.msrb.mxu3 %v2228_v8 }
  0x33   : > { %v517_v51 = vshrl.u32 %v2627_v38, 16  ;;  %v520_v52 = vshll.u32 %v2627_v38, 16  ;;  %v328_v56 = vmax.f32 %v308_v34, 0.0  ;;  %v329_v61 = vmax.f32 %v309_v41, 0.0 }
  0x34   : > { %714 = vmatpush.bf16.msrb.mxu1 %v2171_v58  ;;  %1104 = vmatpush.bf16.msrb.mxu0 %v2203_v62  ;;  %v505_v54 = vrot.slane %v503_v44, 4  ;;  %v508_v55 = vrot.slane %v506_v46, 5  ;;  %v526_v29 = vshll.u32 %v2633_v42, 16  ;;  %v514_v57 = vrot.slane %v512_v50, 5  ;;  %v2201_v62 = vld [vmem:[%s2953_s3 + $0x118] sm:$0xff] }
  0x35   : > { %1326 = vmatpush.bf16.msrb.mxu2 %v2219_v35  ;;  %v519_v58 = vrot.slane %v517_v51, 4  ;;  %v522_v60 = vrot.slane %v520_v52, 5  ;;  %v330_v1 = vmax.f32 %v310_v47, 0.0  ;;  %v331_v2 = vmax.f32 %v311_v53, 0.0  ;;  %v2200_v35 = vld [vmem:[%s2953_s3 + $0x110] sm:$0xff] }
  0x36   : > { %v509_v23 = vor.u32 %v508_v55, %v505_v54  ;;  %v528_v63 = vrot.slane %v526_v29, 5  ;;  %v363_v9 = vsel %vm347_vm2, %v328_v56, 0.0  ;;  %v364_v13 = vsel %vm354_vm3, %v329_v61, 0.0  ;;  %v2227_v29 = vld [vmem:[%s2953_s3 + $0x1e8] sm:$0xff] }
  0x37   : > { %v523_v3 = vor.u32 %v522_v60, %v519_v58  ;;  %v649_v14 = vunpack.c.l.b16 %v2491_v39  ;;  %v365_v20 = vsel %vm347_vm2, %v330_v1, 0.0  ;;  %v366_v21 = vsel %vm354_vm3, %v331_v2, 0.0  ;;  %v2167_v60 = vld [vmem:[%s2953_s3 + $0x8] sm:$0xff]  ;;  %1445 = vmatpush.bf16.msrb.mxu3 %v2227_v29 }
  0x38   : > { %715 = vmatpush.bf16.msrb.mxu1 %v2170_v25  ;;  %1105 = vmatpush.bf16.msrb.mxu0 %v2202_v40  ;;  %v510_v16 = vrot.slane %v509_v23, 4  ;;  %v2661_v22 = vpack.c.bf16 %v363_v9, %v363_v9  ;;  %v384_v27 = vpack.c.bf16 %v364_v13, %v364_v13  ;;  %v2663_v30 = vpack.c.bf16 %v365_v20, %v365_v20  ;;  %v2199_v61 = vld [vmem:[%s2953_s3 + $0x108] sm:$0xff]  ;;  %v2217_v20 = vld [vmem:[%s2953_s3 + $0x198] sm:$0xff] }
  0x39   : > { %v524_v25 = vrot.slane %v523_v3, 4  ;;  %v386_v34 = vpack.c.bf16 %v366_v21, %v366_v21  ;;  %1327 = vmatpush.bf16.msrb.mxu2 %v2218_v12  ;;  %v652_v29 = vunpack.c.l.b16 %v2451_v4  ;;  %v2215_v39 = vld [vmem:[%s2953_s3 + $0x188] sm:$0xff] }
  0x3a   : > { %v515_v15 = vsel %vm2405_vm6, %v510_v16, %v514_v57  ;;  %v447_v40 = vshrl.u32 %v2661_v22, 16  ;;  %v450_v41 = vshll.u32 %v2661_v22, 16  ;;  %v650_v44 = vunpack.c.l.b16 %v2661_v22 }
  0x3b   : > { %v529_v46 = vsel %vm2405_vm6, %v524_v25, %v528_v63  ;;  %v2681_v47 = vunpack.c.l.b16 %v515_v15  ;;  %v456_v50 = vshll.u32 %v384_v27, 16  ;;  %v461_v51 = vshrl.u32 %v2663_v30, 16 }
  0x3c   : > { %716 = vmatpush.bf16.msrb.mxu1 %v2169_v36  ;;  %1106 = vmatpush.bf16.msrb.mxu0 %v2201_v62  ;;  %v2684_v52 = vunpack.c.l.b16 %v529_v46  ;;  %v449_v53 = vrot.slane %v447_v40, 4  ;;  %v452_v54 = vrot.slane %v450_v41, 5  ;;  %v464_v55 = vshll.u32 %v2663_v30, 16  ;;  %v2213_v40 = vld [vmem:[%s2953_s3 + $0x178] sm:$0xff] }
  0x3d   : > { %v458_v36 = vrot.slane %v456_v50, 5  ;;  %v463_v56 = vrot.slane %v461_v51, 4  ;;  %v470_v57 = vshll.u32 %v386_v34, 16  ;;  %v921_v58 = vpack.c.b16 %v650_v44, %v649_v14  ;;  %1328 = vmatpush.bf16.msrb.mxu2 %v2217_v20  ;;  %v2237_v46 = vld [vmem:[%s2953_s3 + $0x238] sm:$0xff]  ;;  %v2214_v20 = vld [vmem:[%s2953_s3 + $0x180] sm:$0xff] }
  0x3e   : > { %v2702_v62 = vpack.c.b16 %v2684_v52, %v2681_v47  ;;  %v453_v23 = vor.u32 %v452_v54, %v449_v53  ;;  %v466_v63 = vrot.slane %v464_v55, 5  ;;  %v1819_v1 = vrot.slane %v2661_v22, 9  ;;  %v2207_v22 = vld [vmem:[%s2953_s3 + $0x148] sm:$0xff] }
  0x3f   : > { %985 = vmatmul.bf16.vlgmr.msra.gmra.mxu3 %v921_v58  ;;  %v762_v2 = vrot.slane %v384_v27, 5  ;;  %v1820_v3 = vrot.slane %v2663_v30, 9  ;;  %v766_v9 = vrot.slane %v386_v34, 5  ;;  %v2166_v27 = vld [vmem:[%s2953_s3] sm:$0xff]  ;;  %v651_v55 = vunpack.c.l.b16 %v2663_v30 }
  0x40   : > { %717 = vmatpush.bf16.msrb.mxu1 %v2168_v19  ;;  %1107 = vmatpush.bf16.msrb.mxu0 %v2200_v35  ;;  %v454_v13 = vrot.slane %v453_v23, 4  ;;  %v467_v16 = vor.u32 %v466_v63, %v463_v56  ;;  %v472_v19 = vrot.slane %v470_v57, 5  ;;  %v2198_v34 = vld [vmem:[%s2953_s3 + $0x100] sm:$0xff]  ;;  %v2212_v56 = vld [vmem:[%s2953_s3 + $0x170] sm:$0xff]  ;;  %v1822_v57 = vrot.slane %v2455_v6, 9 }
  0x41   : > { %634 = vmatmul.bf16.gmra.mxu1 %v2702_v62  ;;  %v763_v21 = vsel %vm2481_vm7, %v1819_v1, %v762_v2  ;;  %v2714_v25 = vsel %vm2481_vm7, %v1820_v3, %v766_v9  ;;  %v774_v58 = vrot.slane %v2463_v10, 5  ;;  %v2757_v30 = vunpack.c.l.b16 %v2299_v28  ;;  %v2236_v28 = vld [vmem:[%s2953_s3 + $0x230] sm:$0xff]  ;;  %v2225_v2 = vld [vmem:[%s2953_s3 + $0x1d8] sm:$0xff] }
  0x42   : > { %v459_v35 = vsel %vm2405_vm6, %v454_v13, %v458_v36  ;;  %v468_v8 = vrot.slane %v467_v16, 4  ;;  %v803_v12 = vunpack.c.l.b16 %v763_v21  ;;  %v804_v15 = vunpack.c.l.b16 %v2714_v25  ;;  %v2210_v13 = vld [vmem:[%s2953_s3 + $0x160] sm:$0xff] }
  0x43   : > { %v549_v41 = vunpack.c.l.b16 %v459_v35  ;;  %v1821_v36 = vrot.slane %v2451_v4, 9  ;;  %v922_v10 = vpack.c.b16 %v652_v29, %v651_v55  ;;  %v2780_v63 = vsel %vm2481_vm7, %v1822_v57, %v774_v58 }
  0x44   : > { %718 = vmatpush.bf16.msrb.mxu1 %v2167_v60  ;;  %1108 = vmatpush.bf16.msrb.mxu0 %v2199_v61  ;;  %v473_v50 = vsel %vm2405_vm6, %v468_v8, %v472_v19  ;;  %v2735_v51 = vpack.c.b16 %v804_v15, %v803_v12  ;;  %v2739_v53 = vpack.c.b16 %v803_v12, %v802_v24  ;;  %v770_v24 = vrot.slane %v2453_v5, 5  ;;  %v2226_v60 = vld [vmem:[%s2953_s3 + $0x1e0] sm:$0xff]  ;;  %v2216_v61 = vld [vmem:[%s2953_s3 + $0x190] sm:$0xff]  ;;  %v2211_v5 = vld [vmem:[%s2953_s3 + $0x168] sm:$0xff] }
  0x45   : > { %v2741_v54 = vunpack.c.l.b16 %v473_v50  ;;  %1446 = vmatpush.bf16.msrb.mxu3 %v2226_v60  ;;  %1329 = vmatpush.bf16.msrb.mxu2 %v2216_v61  ;;  %v656_v1 = vpack.c.b16 %v649_v14, %v2757_v30  ;;  %v806_v9 = vunpack.c.l.b16 %v2780_v63  ;;  %v2235_v14 = vld [vmem:[%s2953_s3 + $0x228] sm:$0xff]  ;;  %v2209_v19 = vld [vmem:[%s2953_s3 + $0x158] sm:$0xff]  ;;  %v1046_v21 = vpack.c.b16 %v549_v41, %v2575_v48  ;;  %v2224_v48 = vld [vmem:[%s2953_s3 + $0x1d0] sm:$0xff] }
  0x46   : > { %878 = vmatmul.bf16.gmra.mxu2 %v2735_v51  ;;  %v2776_v23 = vsel %vm2481_vm7, %v1821_v36, %v770_v24  ;;  %v1823_v35 = vrot.slane %v2617_v32, 9  ;;  %v778_v8 = vrot.slane %v2625_v37, 5  ;;  %v1824_v12 = vrot.slane %v2627_v38, 9  ;;  %v2223_v36 = vld [vmem:[%s2953_s3 + $0x1c8] sm:$0xff] }
  0x47   : > { %v2751_v18 = vpack.c.b16 %v2741_v54, %v549_v41  ;;  %v805_v3 = vunpack.c.l.b16 %v2776_v23  ;;  %v2234_v41 = vld [vmem:[%s2953_s3 + $0x220] sm:$0xff]  ;;  %v657_v50 = vpack.c.b16 %v651_v55, %v650_v44  ;;  %v1018_v24 = vshll.u32 %v2525_v0, 16  ;;  %v2233_v44 = vld [vmem:[%s2953_s3 + $0x218] sm:$0xff] }
  0x48   : > { %719 = vmatpush.bf16.msrb.mxu1 %v2166_v27  ;;  %1109 = vmatpush.bf16.msrb.mxu0 %v2198_v34  ;;  %v653_v27 = vunpack.c.l.b16 %v2455_v6  ;;  %v654_v34 = vunpack.c.l.b16 %v2617_v32  ;;  %v2208_v6 = vld [vmem:[%s2953_s3 + $0x150] sm:$0xff]  ;;  %v2222_v55 = vld [vmem:[%s2953_s3 + $0x1c0] sm:$0xff] }
  0x49   : > { %624 = vmatmul.bf16.gmra.mxu0 %v2751_v18  ;;  %1447 = vmatpush.bf16.msrb.mxu3 %v2225_v2  ;;  %v2803_v16 = vpack.c.b16 %v806_v9, %v805_v3  ;;  %v1020_v60 = vrot.slane %v1018_v24, 5  ;;  %v1163_v4 = vpack.c.b16 %v805_v3, %v804_v15 }
  0x4a   : > { %1330 = vmatpush.bf16.msrb.mxu2 %v2215_v39  ;;  %v923_v37 = vpack.c.b16 %v654_v34, %v653_v27 }
  0x4c   : > { %1218 = vmatpush.bf16.msra.mxu1 %v2213_v40  ;;  %1553 = vmatpush.bf16.msra.mxu0 %v2237_v46  ;;  %v782_v40 = vrot.slane %v2633_v42, 5  ;;  %v2832_v42 = vsel %vm2481_vm7, %v1823_v35, %v778_v8 }
  0x4d   : > { %1448 = vmatpush.bf16.msrb.mxu3 %v2224_v48  ;;  %v807_v57 = vunpack.c.l.b16 %v2832_v42 }
  0x4e   : > { %1331 = vmatpush.bf16.msrb.mxu2 %v2214_v20  ;;  %v2206_v20 = vld [vmem:[%s2953_s3 + $0x140] sm:$0xff] }
  0x4f   : > { %990 = vmatmul.bf16.gmra.mxu3 %v922_v10 }
  0x50   : > { %1219 = vmatpush.bf16.msra.mxu1 %v2212_v56  ;;  %1554 = vmatpush.bf16.msra.mxu0 %v2236_v28  ;;  %v1015_v56 = vshrl.u32 %v2525_v0, 16 }
  0x51   : > { %720 = vmatmul.bf16.vlgmr.msrb.gmra.mxu1 %v656_v1  ;;  %1449 = vmatpush.bf16.msrb.mxu3 %v2223_v36 }
  0x52   : > { %2269 = vmatpush.bf16.msra.mxu2 %v2237_v46  ;;  %v2836_v46 = vsel %vm2481_vm7, %v1824_v12, %v782_v40  ;;  %v1017_v58 = vrot.slane %v1015_v56, 4 }
  0x53   : > { %v808_v26 = vunpack.c.l.b16 %v2836_v46 }
  0x54   : > { %1220 = vmatpush.bf16.msra.mxu1 %v2211_v5  ;;  %1555 = vmatpush.bf16.msra.mxu0 %v2235_v14  ;;  %v1021_v61 = vor.u32 %v1020_v60, %v1017_v58  ;;  %v1024_v5 = vshll.u32 %v2532_v11, 16  ;;  %v655_v11 = vunpack.c.l.b16 %v2627_v38  ;;  %v2231_v38 = vld [vmem:[%s2953_s3 + $0x208] sm:$0xff] }
  0x55   : > { %1450 = vmatpush.bf16.msrb.mxu3 %v2222_v55 }
  0x56   : > { %883 = vmatmul.bf16.gmra.mxu2 %v2803_v16  ;;  %v1022_v10 = vrot.slane %v1021_v61, 4  ;;  %v1026_v1 = vrot.slane %v1024_v5, 5 }
  0x57   : > { %2270 = vmatpush.bf16.msra.mxu2 %v2236_v28  ;;  %v812_v28 = vpack.c.b16 %v808_v26, %v807_v57 }
  0x58   : > { %1221 = vmatpush.bf16.msra.mxu1 %v2210_v13  ;;  %1556 = vmatpush.bf16.msra.mxu0 %v2234_v41  ;;  %v1027_v2 = vsel %vm2405_vm6, %v1022_v10, %v1026_v1  ;;  %v1047_v13 = vpack.c.b16 %v2530_v7, %v2741_v54  ;;  %v1048_v54 = vpack.c.b16 %v2681_v47, %v2537_v17 }
  0x59   : > { %1110 = vmatmul.bf16.vlgmr.msrb.gmra.mxu0 %v1046_v21  ;;  %v1045_v39 = vunpack.c.l.b16 %v1027_v2  ;;  %v1164_v21 = vpack.c.b16 %v807_v57, %v806_v9 }
  0x5b   : > { %2271 = vmatpush.bf16.msra.mxu2 %v2235_v14  ;;  %v920_v14 = vunpack.c.l.b16 %v2525_v0  ;;  %v658_v0 = vpack.c.b16 %v653_v27, %v652_v29  ;;  %v659_v29 = vpack.c.b16 %v655_v11, %v654_v34  ;;  %v1393_v47 = vpack.c.b16 %v2423_v45, %v1045_v39 }
  0x5c   : > { %1222 = vmatpush.bf16.msra.mxu1 %v2209_v19  ;;  %1557 = vmatpush.bf16.msra.mxu0 %v2233_v44  ;;  %v1049_v19 = vpack.c.b16 %v1045_v39, %v2684_v52  ;;  %v2230_v52 = vld [vmem:[%s2953_s3 + $0x200] sm:$0xff] }
  0x5d   : > { %v924_v7 = vpack.c.b16 %v920_v14, %v655_v11  ;;  %v1274_v17 = vpack.c.b16 %v2757_v30, %v920_v14 }
  0x5f   : > { %995 = vmatmul.bf16.gmra.mxu3 %v923_v37  ;;  %2272 = vmatpush.bf16.msra.mxu2 %v2234_v41 }
  0x60   : > { %1223 = vmatpush.bf16.msra.mxu1 %v2208_v6  ;;  %1558 = vmatpush.bf16.msra.mxu0 %v2232_v33 }
  0x61   : > { %725 = vmatmul.bf16.gmra.mxu1 %v657_v50 }
  0x63   : > { %2273 = vmatpush.bf16.msra.mxu2 %v2233_v44 }
  0x64   : > { %1224 = vmatpush.bf16.msra.mxu1 %v2207_v22  ;;  %1559 = vmatpush.bf16.msra.mxu0 %v2231_v38 }
  0x66   : > { %888 = vmatmul.bf16.gmra.mxu2 %v812_v28 }
  0x67   : > { %2274 = vmatpush.bf16.msra.mxu2 %v2232_v33 }
  0x68   : > { %1225 = vmatpush.bf16.msra.mxu1 %v2206_v20  ;;  %1560 = vmatpush.bf16.msra.mxu0 %v2230_v52 }
  0x69   : > { %1115 = vmatmul.bf16.gmra.mxu0 %v1047_v13 }
  0x6b   : > { %2275 = vmatpush.bf16.msra.mxu2 %v2231_v38 }
  0x6f   : > { %1000 = vmatmul.bf16.gmra.mxu3 %v924_v7  ;;  %2276 = vmatpush.bf16.msra.mxu2 %v2230_v52 }
  0x71   : > { %730 = vmatmul.bf16.gmra.mxu1 %v658_v0 }
  0x76   : > { %1332 = vmatmul.bf16.vlgmr.msrb.gmra.mxu2 %v657_v50 }
  0x79   : > { %1120 = vmatmul.bf16.gmra.mxu0 %v1048_v54 }
  0x7f   : > { %1451 = vmatmul.bf16.vlgmr.msrb.gmra.mxu3 %v2751_v18 }
  0x81   : > { %735 = vmatmul.bf16.gmra.mxu1 %v659_v29 }
  0x86   : > { %1337 = vmatmul.bf16.gmra.mxu2 %v658_v0 }
  0x89   : > { %1125 = vmatmul.bf16.gmra.mxu0 %v1049_v19 }
  0x8f   : > { %1456 = vmatmul.bf16.gmra.mxu3 %v2554_v31 }
  0x91   : > { %1226 = vmatmul.bf16.vlgmr.msra.gmra.mxu1 %v2739_v53 }
  0x96   : > { %1342 = vmatmul.bf16.gmra.mxu2 %v659_v29 }
  0x99   : > { %1561 = vmatmul.bf16.vlgmr.msra.gmra.mxu0 %v2735_v51 }
  0x9f   : > { %1461 = vmatmul.bf16.gmra.mxu3 %v2702_v62  ;;  %v1165_v62 = vpack.c.b16 %v1161_v49, %v808_v26 }
  0xa1   : > { %1231 = vmatmul.bf16.gmra.mxu1 %v1163_v4 }
  0xa6   : > { %1347 = vmatmul.bf16.gmra.mxu2 %v1274_v17 }
  0xa8   : > { %v630_v32 = vpop.f32.mrf.mxu1 }
  0xa9   : > { %1566 = vmatmul.bf16.gmra.mxu0 %v2803_v16 }
  0xac   : > { %v620_v25 = vpop.f32.mrf.mxu0 }
  0xaf   : > { %1466 = vmatmul.bf16.gmra.mxu3 %v1393_v47 }
  0xb0   : > { %v632_v31 = vpop.f32.mrf.mxu1 }
  0xb1   : > { %1236 = vmatmul.bf16.gmra.mxu1 %v1164_v21  ;;  %v874_v15 = vpop.f32.mrf.mxu2 }
  0xb4   : > { %v622_v51 = vpop.f32.mrf.mxu0 }
  0xb6   : > { %1576 = vmatmul.bf16.vlgmr.msra.gmra.mxu2 %v2596_v59 }
  0xb9   : > { %1571 = vmatmul.bf16.gmra.mxu0 %v812_v28  ;;  %v876_v18 = vpop.f32.mrf.mxu2 }
  0xbe   : > { %v635_v53 = vpop.f32.mrf.mxu1 }
  0xc1   : > { %1241 = vmatmul.bf16.gmra.mxu1 %v1165_v62 }
  0xc2   : > { %v986_v30 = vpop.f32.mrf.mxu3 }
  0xc6   : > { %v637_v23 = vpop.f32.mrf.mxu1  ;;  %v625_v45 = vpop.f32.mrf.mxu0 }
  0xc9   : > { %v879_v63 = vpop.f32.mrf.mxu2 }
  0xca   : > { %v988_v3 = vpop.f32.mrf.mxu3 }
  0xce   : > { %v721_v9 = vpop.f32.mrf.mxu1  ;;  %v627_v16 = vpop.f32.mrf.mxu0 }
  0xcf   : > { %v722_v27 = vadd.f32 %v721_v9, %v620_v25 }
  0xd1   : > { %v894_v34 = vadd.f32 %v874_v15, %v722_v27  ;;  %v881_v59 = vpop.f32.mrf.mxu2 }
  0xd2   : > { %v991_v8 = vpop.f32.mrf.mxu3 }
  0xd3   : > { %v1006_v35 = vadd.f32 %v986_v30, %v894_v34 }
  0xd6   : > { %v723_v12 = vpop.f32.mrf.mxu1  ;;  %v1111_v40 = vpop.f32.mrf.mxu0 }
  0xd7   : > { %v724_v48 = vadd.f32 %v723_v12, %v622_v51  ;;  %v1131_v43 = vadd.f32 %v1111_v40, %v1006_v35 }
  0xd9   : > { %v895_v49 = vadd.f32 %v876_v18, %v724_v48  ;;  %v884_v6 = vpop.f32.mrf.mxu2 }
  0xda   : > { %v993_v41 = vpop.f32.mrf.mxu3 }
  0xdb   : > { %v1007_v62 = vadd.f32 %v988_v3, %v895_v49 }
  0xde   : > { %v726_v37 = vpop.f32.mrf.mxu1  ;;  %v1113_v42 = vpop.f32.mrf.mxu0 }
  0xdf   : > { %v727_v46 = vadd.f32 %v726_v37, %v625_v45 }
  0xe1   : > { %v896_v50 = vadd.f32 %v879_v63, %v727_v46  ;;  %v886_v36 = vpop.f32.mrf.mxu2 }
  0xe2   : > { %v996_v24 = vpop.f32.mrf.mxu3 }
  0xe3   : > { %v1008_v56 = vadd.f32 %v991_v8, %v896_v50 }
  0xe6   : > { %v728_v57 = vpop.f32.mrf.mxu1  ;;  %v1116_v26 = vpop.f32.mrf.mxu0 }
  0xe7   : > { %v729_v58 = vadd.f32 %v728_v57, %v627_v16  ;;  %v1133_v60 = vadd.f32 %v1116_v26, %v1008_v56 }
  0xe9   : > { %v897_v22 = vadd.f32 %v881_v59, %v729_v58  ;;  %v889_v44 = vpop.f32.mrf.mxu2 }
  0xea   : > { %v2903_v55 = vpop.f32.mrf.mxu3 }
  0xeb   : > { %v1009_v37 = vadd.f32 %v993_v41, %v897_v22 }
  0xee   : > { %v731_v61 = vpop.f32.mrf.mxu1  ;;  %v1118_v5 = vpop.f32.mrf.mxu0 }
  0xef   : > { %v732_v28 = vadd.f32 %v731_v61, %v630_v32  ;;  %v1134_v57 = vadd.f32 %v1118_v5, %v1009_v37 }
  0xf1   : > { %v898_v10 = vadd.f32 %v884_v6, %v732_v28  ;;  %v891_v1 = vpop.f32.mrf.mxu2 }
  0xf2   : > { %v2905_v13 = vpop.f32.mrf.mxu3 }
  0xf3   : > { %v1010_v2 = vadd.f32 %v996_v24, %v898_v10 }
  0xf6   : > { %v733_v39 = vpop.f32.mrf.mxu1  ;;  %v1121_v11 = vpop.f32.mrf.mxu0 }
  0xf7   : > { %v734_v14 = vadd.f32 %v733_v39, %v632_v31  ;;  %v2907_v19 = vadd.f32 %v1121_v11, %v1010_v2 }
  0xf9   : > { %v2909_v20 = vadd.f32 %v886_v36, %v734_v14  ;;  %v1333_v33 = vpop.f32.mrf.mxu2 }
  0xfa   : > { %v2911_v7 = vpop.f32.mrf.mxu3 }
  0xfb   : > { %v1011_v5 = vadd.f32 %v2903_v55, %v2909_v20 }
  0xfe   : > { %v736_v38 = vpop.f32.mrf.mxu1  ;;  %v2913_v0 = vpop.f32.mrf.mxu0 }
  0xff   : > { %v737_v52 = vadd.f32 %v736_v38, %v635_v53  ;;  %v1132_v53 = vadd.f32 %v1113_v42, %v1007_v62 }
 0x101   : > { %v2915_v54 = vadd.f32 %v889_v44, %v737_v52  ;;  %v1335_v4 = vpop.f32.mrf.mxu2 }
 0x102   : > { %v1452_v29 = vpop.f32.mrf.mxu3 }
 0x106   : > { %v738_v21 = vpop.f32.mrf.mxu1  ;;  %v2917_v17 = vpop.f32.mrf.mxu0 }
 0x107   : > { %v739_v32 = vadd.f32 %v738_v21, %v637_v23 }
 0x109   : > { %v2919_v47 = vadd.f32 %v891_v1, %v739_v32  ;;  %v1338_v25 = vpop.f32.mrf.mxu2 }
 0x10a   : > { %v1454_v15 = vpop.f32.mrf.mxu3 }
 0x10e   : > { %v1227_v31 = vpop.f32.mrf.mxu1  ;;  %v2921_v51 = vpop.f32.mrf.mxu0 }
 0x10f   : > { %v1247_v18 = vadd.f32 %v1227_v31, %v1131_v43 }
 0x111   : > { %v1340_v30 = vpop.f32.mrf.mxu2  ;;  %v1353_v45 = vadd.f32 %v1333_v33, %v1247_v18 }
 0x112   : > { %v1457_v27 = vpop.f32.mrf.mxu3 }
 0x113   : > { %v1472_v59 = vadd.f32 %v1452_v29, %v1353_v45 }
 0x116   : > { %v1229_v63 = vpop.f32.mrf.mxu1  ;;  %v1562_v9 = vpop.f32.mrf.mxu0 }
 0x117   : > { %v1248_v16 = vadd.f32 %v1229_v63, %v1132_v53  ;;  %v1582_v8 = vadd.f32 %v1562_v9, %v1472_v59 }
 0x119   : > { %v1354_v34 = vadd.f32 %v1335_v4, %v1248_v16  ;;  %v1343_v23 = vpop.f32.mrf.mxu2  ;;  %v1620_v43 = vmul.f32 %v1582_v8, %v1582_v8 }
 0x11a   : > { %v1459_v50 = vpop.f32.mrf.mxu3 }
 0x11b   : > { %v1473_v35 = vadd.f32 %v1454_v15, %v1354_v34 }
 0x11e   : > { %v1232_v12 = vpop.f32.mrf.mxu1  ;;  %v1564_v40 = vpop.f32.mrf.mxu0 }
 0x11f   : > { %v1249_v48 = vadd.f32 %v1232_v12, %v1133_v60  ;;  %v1583_v6 = vadd.f32 %v1564_v40, %v1473_v35  ;;  %v1013_v35 = vadd.f32 %v2911_v7, %v2919_v47 }
 0x121   : > { %v1355_v3 = vadd.f32 %v1338_v25, %v1249_v48  ;;  %v2241_v49 = vpack.c.bf16 %v1583_v6, %v1582_v8  ;;  %v1606_v42 = vadd.f32 %v1583_v6, %v1582_v8  ;;  %v1621_v46 = vmul.f32 %v1583_v6, %v1583_v6  ;;  %v1345_v56 = vpop.f32.mrf.mxu2 }
 0x122   : > { %v1462_v10 = vpop.f32.mrf.mxu3  ;;  %v1136_v25 = vadd.f32 %v2913_v0, %v1011_v5  ;;  %v1138_v37 = vadd.f32 %v2921_v51, %v1013_v35 }
 0x123   : > { %2242 = vst [vmem:[%s2927_s13] sm:$0xff] %v2241_v49   ;;  %v1628_v36 = vadd.f32 %v1621_v46, %v1620_v43  ;;  %v1474_v24 = vadd.f32 %v1457_v27, %v1355_v3 }
 0x126   : > { %v1234_v26 = vpop.f32.mrf.mxu1  ;;  %v1567_v58 = vpop.f32.mrf.mxu0 }
 0x127   : > { %v1250_v41 = vadd.f32 %v1234_v26, %v1134_v57  ;;  %v1584_v60 = vadd.f32 %v1567_v58, %v1474_v24 }
 0x129   : > { %v1356_v22 = vadd.f32 %v1340_v30, %v1250_v41  ;;  %v1607_v44 = vadd.f32 %v1606_v42, %v1584_v60  ;;  %v1622_v61 = vmul.f32 %v1584_v60, %v1584_v60  ;;  %v1348_v2 = vpop.f32.mrf.mxu2 }
 0x12a   : > { %v1464_v31 = vpop.f32.mrf.mxu3 }
 0x12b   : > { %v1629_v28 = vadd.f32 %v1628_v36, %v1622_v61  ;;  %v1475_v1 = vadd.f32 %v1459_v50, %v1356_v22 }
 0x12e   : > { %v1237_v39 = vpop.f32.mrf.mxu1  ;;  %v1569_v11 = vpop.f32.mrf.mxu0 }
 0x12f   : > { %v1251_v14 = vadd.f32 %v1237_v39, %v2907_v19  ;;  %v1585_v33 = vadd.f32 %v1569_v11, %v1475_v1  ;;  %v1012_v19 = vadd.f32 %v2905_v13, %v2915_v54 }
 0x131   : > { %v1357_v38 = vadd.f32 %v1343_v23, %v1251_v14  ;;  %v2246_v52 = vpack.c.bf16 %v1585_v33, %v1584_v60  ;;  %v1608_v4 = vadd.f32 %v1607_v44, %v1585_v33  ;;  %v1623_v29 = vmul.f32 %v1585_v33, %v1585_v33  ;;  %v1350_v30 = vpop.f32.mrf.mxu2 }
 0x132   : > { %v1137_v16 = vadd.f32 %v2917_v17, %v1012_v19  ;;  %v1467_v59 = vpop.f32.mrf.mxu3 }
 0x133   : > { %2258 = vst [vmem:[%s2927_s13 + $0x8] sm:$0xff] %v2246_v52   ;;  %v1630_v21 = vadd.f32 %v1629_v28, %v1623_v29  ;;  %v1476_v32 = vadd.f32 %v1462_v10, %v1357_v38 }
 0x136   : > { %v1239_v15 = vpop.f32.mrf.mxu1  ;;  %v1572_v62 = vpop.f32.mrf.mxu0 }
 0x137   : > { %v1252_v18 = vadd.f32 %v1239_v15, %v1136_v25  ;;  %v1586_v53 = vadd.f32 %v1572_v62, %v1476_v32 }
 0x139   : > { %v1358_v45 = vadd.f32 %v1345_v56, %v1252_v18  ;;  %v1609_v55 = vadd.f32 %v1608_v4, %v1586_v53  ;;  %v1624_v20 = vmul.f32 %v1586_v53, %v1586_v53  ;;  %v1577_v54 = vpop.f32.mrf.mxu2 }
 0x13a   : > { %v1469_v7 = vpop.f32.mrf.mxu3 }
 0x13b   : > { %v1631_v63 = vadd.f32 %v1630_v21, %v1624_v20  ;;  %v1477_v9 = vadd.f32 %v1464_v31, %v1358_v45 }
 0x13e   : > { %v1242_v27 = vpop.f32.mrf.mxu1  ;;  %v1574_v34 = vpop.f32.mrf.mxu0 }
 0x13f   : > { %v1253_v0 = vadd.f32 %v1242_v27, %v1137_v16  ;;  %v1587_v23 = vadd.f32 %v1574_v34, %v1477_v9 }
 0x141   : > { %v1359_v8 = vadd.f32 %v1348_v2, %v1253_v0  ;;  %v2251_v12 = vpack.c.bf16 %v1587_v23, %v1586_v53  ;;  %v1610_v40 = vadd.f32 %v1609_v55, %v1587_v23  ;;  %v1625_v13 = vmul.f32 %v1587_v23, %v1587_v23  ;;  %v1579_v36 = vpop.f32.mrf.mxu2 }
 0x143   : > { %v1478_v48 = vadd.f32 %v1467_v59, %v1359_v8  ;;  %2259 = vst [vmem:[%s2927_s13 + $0x10] sm:$0xff] %v2251_v12   ;;  %v1632_v6 = vadd.f32 %v1631_v63, %v1625_v13 }
 0x145   : > { %v1588_v17 = vadd.f32 %v1577_v54, %v1478_v48 }
 0x146   : > { %v1244_v3 = vpop.f32.mrf.mxu1 }
 0x147   : > { %v1611_v43 = vadd.f32 %v1610_v40, %v1588_v17  ;;  %v1626_v49 = vmul.f32 %v1588_v17, %v1588_v17  ;;  %v1254_v42 = vadd.f32 %v1244_v3, %v1138_v37 }
 0x149   : > { %v1633_v46 = vadd.f32 %v1632_v6, %v1626_v49  ;;  %v1360_v50 = vadd.f32 %v1350_v30, %v1254_v42 }
 0x14b   : > { %v1479_v47 = vadd.f32 %v1469_v7, %v1360_v50 }
 0x14d   : > { %v1589_v56 = vadd.f32 %v1579_v36, %v1479_v47 }
 0x14f   : > { %v2256_v24 = vpack.c.bf16 %v1589_v56, %v1588_v17  ;;  %v1612_v57 = vadd.f32 %v1611_v43, %v1589_v56  ;;  %v1627_v26 = vmul.f32 %v1589_v56, %v1589_v56 }
 0x151   : > { %2260 = vst [vmem:[%s2927_s13 + $0x18] sm:$0xff] %v2256_v24   ;;  %v1613_v58 = vrot.slane %v1612_v57, 4  ;;  %v1634_v41 = vadd.f32 %v1633_v46, %v1627_v26 }
 0x153   : > { %v1614_v60 = vadd.f32 %v1613_v58, %v1612_v57  ;;  %v1635_v51 = vrot.slane %v1634_v41, 4 }
 0x155   : > { %v1615_v22 = vrot.slane %v1614_v60, 2  ;;  %v1636_v44 = vadd.f32 %v1635_v51, %v1634_v41 }
 0x157   : > { %v1616_v61 = vadd.f32 %v1615_v22, %v1614_v60  ;;  %v1637_v28 = vrot.slane %v1636_v44, 2 }
 0x159   : > { %v1617_v10 = vrot.slane %v1616_v61, 1  ;;  %v1638_v1 = vadd.f32 %v1637_v28, %v1636_v44 }
 0x15b   : > { %v1618_v2 = vadd.f32 %v1617_v10, %v1616_v61  ;;  %v1639_v39 = vrot.slane %v1638_v1, 1 }
 0x15d   : > { %1619 = vst [vmem:[%s235_s20] sm:$0x1] %v1618_v2  ;;  %v1640_v11 = vadd.f32 %v1639_v39, %v1638_v1 }
 0x15f   : > { %1641 = vst [vmem:[%s235_s20 + $0x1] sm:$0x1] %v1640_v11 }
 0x160 PF: > { %s16_s18 = sadd.s32 1, %s2296_s18  }
 0x161   : > { %p13_p4 = scmp.ge.s32.totalorder %s16_s18, 4  }
 0x163   :  { %15 = sbr.rel (!%p13_p4) target bundleno = 1 (0x1), region = 86 }

</bundles_post_ra>
